<compile_context>
chip_gen: v7x
topology: tpu7x:2x2x1
jax: 0.10.0
libtpu: 0.0.40
codegen_flags: <defaults>
</compile_context>

<pallas_src>
import functools

import jax
import jax.numpy as jnp
from jax.experimental import pallas as pl
from jax.experimental.pallas import tpu as pltpu

EPS = 1e-5
LANE = 128                             # channel padding target (vreg lane width)
VMEM_LIMIT_BYTES = 32 * 1024 * 1024    # fits v5e/v6e (128 MiB) and v7x (64 MiB) with headroom


def _rup(x, m):
    return (x + m - 1) // m * m


def _pad_to(a, shape):
    return jnp.pad(a, [(0, s - d) for d, s in zip(a.shape, shape)])


def _stats_block(v):
    """Per-channel partial (sum, sum_sq) packed into a lane-dense (1, 8, C) block."""
    s = jnp.sum(v, axis=0, keepdims=True)
    ss = jnp.sum(v * v, axis=0, keepdims=True)
    pad = jnp.zeros((6, v.shape[-1]), jnp.float32)
    return jnp.concatenate([s, ss, pad], axis=0)[None]


def _finalize_bn(stats, count, gamma, beta):
    """Reduce per-tile partial stats -> per-channel (scale, shift); all f32."""
    s = jnp.sum(stats[:, 0, :], axis=0)
    ss = jnp.sum(stats[:, 1, :], axis=0)
    mean = s / count
    var = jnp.maximum(ss / count - mean * mean, 0.0)
    scale = gamma * jax.lax.rsqrt(var + EPS)      # (1, C)
    shift = beta - mean * scale                   # (1, C)
    return scale, shift


# ---------------- kernels ----------------

def _conv1x1_stats_kernel(x_ref, w_ref, y_ref, st_ref, *, cdt):
    # Row-tiled 1x1 conv (pure channel matmul) + partial BN stats in f32.
    y = jnp.dot(x_ref[...].astype(cdt), w_ref[...], preferred_element_type=jnp.float32)
    y_ref[...] = y.astype(y_ref.dtype)
    st_ref[...] = _stats_block(y)


def _conv3x3_stats_kernel(y1_ref, sc_ref, sh_ref, w_ref, y2_ref, st_ref, pad_ref,
                          *, cdt, H, W, Ho, Wo, stride, C):
    # bn1 + relu (f32), then 3x3 conv (stride, pad=1) as ONE im2col matmul (K = 9*C).
    a = jnp.maximum(y1_ref[0].astype(jnp.float32) * sc_ref[...] + sh_ref[...], 0.0)

    # Halo lives in a VMEM scratch: zero the 1-wide borders, write the interior.
    zr = jnp.zeros((1, W + 2, C), cdt)
    zc = jnp.zeros((H + 2, 1, C), cdt)
    pad_ref[pl.ds(0, 1), :, :] = zr
    pad_ref[pl.ds(H + 1, 1), :, :] = zr
    pad_ref[:, pl.ds(0, 1), :] = zc
    pad_ref[:, pl.ds(W + 1, 1), :] = zc
    pad_ref[pl.ds(1, H), pl.ds(1, W), :] = a.astype(cdt)

    taps = []
    for dy in range(3):
        for dx in range(3):
            if stride == 1:
                win = pad_ref[pl.ds(dy, Ho), pl.ds(dx, Wo), :]
            else:
                win = pad_ref[pl.ds(dy, Ho, stride), pl.ds(dx, Wo, stride), :]
            taps.append(win)
    patches = jnp.concatenate(taps, axis=-1).reshape(Ho * Wo, 9 * C)
    y2 = jnp.dot(patches, w_ref[...], preferred_element_type=jnp.float32)

    y2_ref[...] = y2.reshape(1, Ho, Wo, C).astype(y2_ref.dtype)
    st_ref[...] = _stats_block(y2)


def _stage3_kernel(y2_ref, sc_ref, sh_ref, w3_ref, *rest, cdt, rows_valid, tm, has_proj):
    # bn2 + relu, conv3 (1x1), optional projection shortcut conv; partial BN stats.
    if has_proj:
        xs_ref, ws_ref, h3_ref, st3_ref, scut_ref, sts_ref = rest
    else:
        h3_ref, st3_ref = rest
    i = pl.program_id(0)
    valid = (jax.lax.broadcasted_iota(jnp.int32, (tm, 1), 0) + i * tm) < rows_valid

    a = jnp.maximum(y2_ref[...].astype(jnp.float32) * sc_ref[...] + sh_ref[...], 0.0)
    h3 = jnp.dot(a.astype(cdt), w3_ref[...], preferred_element_type=jnp.float32)
    h3_ref[...] = h3.astype(h3_ref.dtype)
    st3_ref[...] = _stats_block(jnp.where(valid, h3, 0.0))

    if has_proj:
        scut = jnp.dot(xs_ref[...], ws_ref[...], preferred_element_type=jnp.float32)
        scut_ref[...] = scut.astype(scut_ref.dtype)
        sts_ref[...] = _stats_block(jnp.where(valid, scut, 0.0))


def _add_relu_kernel(h3_ref, sc_ref, a3_ref, b3_ref, as_ref, bs_ref, o_ref):
    # bn3(h3) + (bn_s(shortcut) | identity) + relu, all as per-channel scale/shift.
    o_ref[...] = jnp.maximum(
        h3_ref[...].astype(jnp.float32) * a3_ref[...] + b3_ref[...]
        + sc_ref[...].astype(jnp.float32) * as_ref[...] + bs_ref[...], 0.0)


# ---------------- wrapper ----------------

@functools.partial(jax.jit, static_argnames=("stride", "compute_dtype", "tm"))
def residual_block(x, params, stride=1, *, compute_dtype=jnp.bfloat16, tm=256):
    """x: (N, H, W, Cin) float32 NHWC -> (N, Ho, Wo, Cout) float32."""
    cdt = compute_dtype
    N, H, W, Cin = x.shape
    Cmid = params["w1"].shape[1]
    Cout = params["w3"].shape[1]
    has_proj = (stride != 1) or (Cin != Cout)
    Ho = (H - 1) // stride + 1
    Wo = (W - 1) // stride + 1

    Cin_p, Cm_p, Co_p = _rup(Cin, LANE), _rup(Cmid, LANE), _rup(Cout, LANE)
    isz = jnp.dtype(cdt).itemsize

    M = N * H * W
    tm1 = min(tm, _rup(M, 8))
    Mp = _rup(M, tm1)
    T1 = Mp // tm1
    Mo = N * Ho * Wo
    tm3 = min(tm, _rup(Mo, 8))
    Mop = _rup(Mo, tm3)
    T3 = Mop // tm3

    # Lane-dense zero-padding of activations / weights / BN params.
    x_flat = _pad_to(x.reshape(M, Cin), (Mp, Cin_p)).astype(cdt)
    w1p = _pad_to(params["w1"], (Cin_p, Cm_p)).astype(cdt)
    w2p = _pad_to(params["w2"], (3, 3, Cm_p, Cm_p)).reshape(9 * Cm_p, Cm_p).astype(cdt)
    w3p = _pad_to(params["w3"], (Cm_p, Co_p)).astype(cdt)
    g1, b1 = _pad_to(params["g1"], (1, Cm_p)), _pad_to(params["b1"], (1, Cm_p))
    g2, b2 = _pad_to(params["g2"], (1, Cm_p)), _pad_to(params["b2"], (1, Cm_p))
    g3, b3 = _pad_to(params["g3"], (1, Co_p)), _pad_to(params["b3"], (1, Co_p))

    cparams = pltpu.CompilerParams(dimension_semantics=("parallel",),
                                   vmem_limit_bytes=VMEM_LIMIT_BYTES)

    # ---- stage 1: conv1 (1x1) row-tiled matmul + partial BN1 stats ----
    y1, st1 = pl.pallas_call(
        functools.partial(_conv1x1_stats_kernel, cdt=cdt),
        grid=(T1,),
        in_specs=[pl.BlockSpec((tm1, Cin_p), lambda i: (i, 0)),
                  pl.BlockSpec((Cin_p, Cm_p), lambda i: (0, 0))],
        out_specs=[pl.BlockSpec((tm1, Cm_p), lambda i: (i, 0)),
                   pl.BlockSpec((1, 8, Cm_p), lambda i: (i, 0, 0))],
        out_shape=[jax.ShapeDtypeStruct((Mp, Cm_p), cdt),
                   jax.ShapeDtypeStruct((T1, 8, Cm_p), jnp.float32)],
        compiler_params=cparams,
        cost_estimate=pl.CostEstimate(
            flops=int(2 * Mp * Cin_p * Cm_p), transcendentals=0,
            bytes_accessed=int((Mp * Cin_p + Cin_p * Cm_p + Mp * Cm_p) * isz
                               + T1 * 8 * Cm_p * 4)),
    )(x_flat, w1p)
    scale1, shift1 = _finalize_bn(st1, M, g1, b1)

    # ---- stage 2: bn1+relu + 3x3 conv (im2col matmul) + partial BN2 stats ----
    y1_img = y1[:M].reshape(N, H, W, Cm_p)
    y2_img, st2 = pl.pallas_call(
        functools.partial(_conv3x3_stats_kernel, cdt=cdt, H=H, W=W, Ho=Ho, Wo=Wo,
                          stride=stride, C=Cm_p),
        grid=(N,),
        in_specs=[pl.BlockSpec((1, H, W, Cm_p), lambda n: (n, 0, 0, 0)),
                  pl.BlockSpec((1, Cm_p), lambda n: (0, 0)),
                  pl.BlockSpec((1, Cm_p), lambda n: (0, 0)),
                  pl.BlockSpec((9 * Cm_p, Cm_p), lambda n: (0, 0))],
        out_specs=[pl.BlockSpec((1, Ho, Wo, Cm_p), lambda n: (n, 0, 0, 0)),
                   pl.BlockSpec((1, 8, Cm_p), lambda n: (n, 0, 0))],
        out_shape=[jax.ShapeDtypeStruct((N, Ho, Wo, Cm_p), cdt),
                   jax.ShapeDtypeStruct((N, 8, Cm_p), jnp.float32)],
        scratch_shapes=[pltpu.VMEM((H + 2, W + 2, Cm_p), cdt)],
        compiler_params=cparams,
        cost_estimate=pl.CostEstimate(
            flops=int(2 * N * Ho * Wo * 9 * Cm_p * Cm_p), transcendentals=0,
            bytes_accessed=int((N * H * W * Cm_p + 9 * Cm_p * Cm_p
                                + N * Ho * Wo * Cm_p) * isz + N * 8 * Cm_p * 4)),
    )(y1_img, scale1, shift1, w2p)
    scale2, shift2 = _finalize_bn(st2, Mo, g2, b2)

    # ---- stage 3: bn2+relu + conv3 (1x1) [+ projection shortcut] + partial stats ----
    y2_flat = _pad_to(y2_img.reshape(Mo, Cm_p), (Mop, Cm_p))
    in_specs3 = [pl.BlockSpec((tm3, Cm_p), lambda i: (i, 0)),
                 pl.BlockSpec((1, Cm_p), lambda i: (0, 0)),
                 pl.BlockSpec((1, Cm_p), lambda i: (0, 0)),
                 pl.BlockSpec((Cm_p, Co_p), lambda i: (0, 0))]
    out_specs3 = [pl.BlockSpec((tm3, Co_p), lambda i: (i, 0)),
                  pl.BlockSpec((1, 8, Co_p), lambda i: (i, 0, 0))]
    out_shape3 = [jax.ShapeDtypeStruct((Mop, Co_p), cdt),
                  jax.ShapeDtypeStruct((T3, 8, Co_p), jnp.float32)]
    args3 = [y2_flat, scale2, shift2, w3p]
    flops3 = 2 * Mop * Cm_p * Co_p
    if has_proj:
        # Strided 1x1 projection: stride applied HBM-side (no in-kernel gather).
        xs = _pad_to(x[:, ::stride, ::stride, :].reshape(Mo, Cin), (Mop, Cin_p)).astype(cdt)
        wsp = _pad_to(params["ws"], (Cin_p, Co_p)).astype(cdt)
        gs, bs = _pad_to(params["gs"], (1, Co_p)), _pad_to(params["bs"], (1, Co_p))
        in_specs3 += [pl.BlockSpec((tm3, Cin_p), lambda i: (i, 0)),
                      pl.BlockSpec((Cin_p, Co_p), lambda i: (0, 0))]
        out_specs3 += [pl.BlockSpec((tm3, Co_p), lambda i: (i, 0)),
                       pl.BlockSpec((1, 8, Co_p), lambda i: (i, 0, 0))]
        out_shape3 += [jax.ShapeDtypeStruct((Mop, Co_p), cdt),
                       jax.ShapeDtypeStruct((T3, 8, Co_p), jnp.float32)]
        args3 += [xs, wsp]
        flops3 += 2 * Mop * Cin_p * Co_p

    outs3 = pl.pallas_call(
        functools.partial(_stage3_kernel, cdt=cdt, rows_valid=Mo, tm=tm3, has_proj=has_proj),
        grid=(T3,),
        in_specs=in_specs3, out_specs=out_specs3, out_shape=out_shape3,
        compiler_params=cparams,
        cost_estimate=pl.CostEstimate(
            flops=int(flops3), transcendentals=0,
            bytes_accessed=int((Mop * Cm_p + Cm_p * Co_p + 2 * Mop * Co_p) * isz)),
    )(*args3)

    if has_proj:
        h3, st3, scut, sts = outs3
        scale_s, shift_s = _finalize_bn(sts, Mo, gs, bs)
    else:
        h3, st3 = outs3
        scut = x_flat                                  # identity shortcut
        scale_s = jnp.ones((1, Co_p), jnp.float32)
        shift_s = jnp.zeros((1, Co_p), jnp.float32)
    scale3, shift3 = _finalize_bn(st3, Mo, g3, b3)

    # ---- stage 4: bn3 + shortcut add + relu (row-tiled, lane-dense elementwise) ----
    out = pl.pallas_call(
        _add_relu_kernel,
        grid=(T3,),
        in_specs=[pl.BlockSpec((tm3, Co_p), lambda i: (i, 0)),
                  pl.BlockSpec((tm3, Co_p), lambda i: (i, 0)),
                  pl.BlockSpec((1, Co_p), lambda i: (0, 0)),
                  pl.BlockSpec((1, Co_p), lambda i: (0, 0)),
                  pl.BlockSpec((1, Co_p), lambda i: (0, 0)),
                  pl.BlockSpec((1, Co_p), lambda i: (0, 0))],
        out_specs=pl.BlockSpec((tm3, Co_p), lambda i: (i, 0)),
        out_shape=jax.ShapeDtypeStruct((Mop, Co_p), jnp.float32),
        compiler_params=cparams,
        cost_estimate=pl.CostEstimate(
            flops=int(4 * Mop * Co_p), transcendentals=0,
            bytes_accessed=int(2 * Mop * Co_p * isz + Mop * Co_p * 4)),
    )(h3, scut, scale3, shift3, scale_s, shift_s)

    return out[:Mo, :Cout].reshape(N, Ho, Wo, Cout)


# ---------------- pure-JAX reference & params ----------------

def residual_block_ref(x, params, stride=1):
    def conv(y, w, s=1, p=0):
        return jax.lax.conv_general_dilated(
            y, w, (s, s), [(p, p), (p, p)],
            dimension_numbers=("NHWC", "HWIO", "NHWC"))

    def bn(y, g, b):
        mu = jnp.mean(y, axis=(0, 1, 2), keepdims=True)
        var = jnp.mean((y - mu) ** 2, axis=(0, 1, 2), keepdims=True)
        return (y - mu) * jax.lax.rsqrt(var + EPS) * g + b

    Cin = x.shape[-1]
    Cout = params["w3"].shape[1]
    out = jax.nn.relu(bn(conv(x, params["w1"][None, None]), params["g1"], params["b1"]))
    out = jax.nn.relu(bn(conv(out, params["w2"], stride, 1), params["g2"], params["b2"]))
    out = bn(conv(out, params["w3"][None, None]), params["g3"], params["b3"])
    if stride != 1 or Cin != Cout:
        sc = bn(conv(x, params["ws"][None, None], stride), params["gs"], params["bs"])
    else:
        sc = x
    return jax.nn.relu(out + sc)


def init_params(key, in_channels, out_channels):
    Cmid = out_channels // 2
    ks = jax.random.split(key, 12)
    return {
        "w1": jax.random.normal(ks[0], (in_channels, Cmid), jnp.float32) * 0.5,
        "g1": jax.random.uniform(ks[1], (1, Cmid), jnp.float32, 0.5, 1.5),
        "b1": jax.random.normal(ks[2], (1, Cmid), jnp.float32) * 0.1,
        "w2": jax.random.normal(ks[3], (3, 3, Cmid, Cmid), jnp.float32) * 0.2,
        "g2": jax.random.uniform(ks[4], (1, Cmid), jnp.float32, 0.5, 1.5),
        "b2": jax.random.normal(ks[5], (1, Cmid), jnp.float32) * 0.1,
        "w3": jax.random.normal(ks[6], (Cmid, out_channels), jnp.float32) * 0.5,
        "g3": jax.random.uniform(ks[7], (1, out_channels), jnp.float32, 0.5, 1.5),
        "b3": jax.random.normal(ks[8], (1, out_channels), jnp.float32) * 0.1,
        "ws": jax.random.normal(ks[9], (in_channels, out_channels), jnp.float32) * 0.5,
        "gs": jax.random.uniform(ks[10], (1, out_channels), jnp.float32, 0.5, 1.5),
        "bs": jax.random.normal(ks[11], (1, out_channels), jnp.float32) * 0.1,
    }


if __name__ == "__main__":
    key = jax.random.PRNGKey(0)
    N, H, W = 2, 16, 16

    configs = [
        # (Cin, Cout, stride, compute_dtype, atol, rtol)
        (4, 8, 1, jnp.float32, 2e-3, 2e-3),    # projection shortcut, exact f32 MXU path
        (4, 8, 1, jnp.bfloat16, 1e-1, 1e-1),   # default bf16 MXU operands (loose tol vs f32 ref)
        (8, 8, 1, jnp.float32, 2e-3, 2e-3),    # identity shortcut
        (8, 8, 2, jnp.float32, 2e-3, 2e-3),    # strided conv + strided projection shortcut
    ]
    for idx, (cin, cout, stride, cdt, atol, rtol) in enumerate(configs):
        kx, kp = jax.random.split(jax.random.fold_in(key, idx))
        x = jax.random.normal(kx, (N, H, W, cin), jnp.float32)     # NHWC
        params = init_params(kp, cin, cout)

        out = jax.block_until_ready(
            residual_block(x, params, stride=stride, compute_dtype=cdt))
        ref = jax.block_until_ready(residual_block_ref(x, params, stride=stride))

        assert out.shape == ref.shape, (out.shape, ref.shape)
        err = float(jnp.max(jnp.abs(out - ref)))
        assert jnp.allclose(out, ref, atol=atol, rtol=rtol), (idx, err)

    print("KERNEL_OK")
</pallas_src>

<mosaic_0001>
module attributes {stable_mosaic.version = 11 : i64} {
  func.func @_conv1x1_stats_kernel(%arg0: i32, %arg1: memref<256x128xf32, #tpu.memory_space<vmem>>, %arg2: memref<128x128xf32, #tpu.memory_space<vmem>>, %arg3: memref<256x128xf32, #tpu.memory_space<vmem>>, %arg4: memref<1x8x128xf32, #tpu.memory_space<vmem>>) attributes {dimension_semantics = [#tpu.dimension_semantics<parallel>], iteration_bounds = array<i64: 2>, scalar_prefetch = 0 : i64, scratch_operands = 0 : i64, tpu.core_type = #tpu.core_type<tc>, window_params = [{transform_indices = @transform_0, window_bounds = array<i64: 256, 128>}, {pipeline_mode = #tpu.pipeline_mode<synchronous>, transform_indices = @transform_1, window_bounds = array<i64: 128, 128>}, {transform_indices = @transform_2, window_bounds = array<i64: 256, 128>}, {transform_indices = @transform_3, window_bounds = array<i64: 1, 8, 128>}]} {
    %c0 = arith.constant 0 : index
    %c0_0 = arith.constant 0 : index
    %0 = vector.load %arg1[%c0, %c0_0] : memref<256x128xf32, #tpu.memory_space<vmem>>, vector<256x128xf32>
    %c0_1 = arith.constant 0 : index
    %c0_2 = arith.constant 0 : index
    %1 = vector.load %arg2[%c0_1, %c0_2] : memref<128x128xf32, #tpu.memory_space<vmem>>, vector<128x128xf32>
    %cst = arith.constant dense<0.000000e+00> : vector<256x128xf32>
    %2 = tpu.matmul %0, %1, %cst {dimension_numbers = #tpu.dot_dimension_numbers<[1], [0], [0], [1], [0, 0, 1, 1], [], []>} : vector<256x128xf32>, vector<128x128xf32>, vector<256x128xf32> -> vector<256x128xf32>
    %c0_3 = arith.constant 0 : index
    %c0_4 = arith.constant 0 : index
    %3 = vector.load %arg3[%c0_3, %c0_4] : memref<256x128xf32, #tpu.memory_space<vmem>>, vector<256x128xf32>
    tpu.vector_store %arg3[%c0_3, %c0_4], %2 {strides = array<i32>} : memref<256x128xf32, #tpu.memory_space<vmem>>, vector<256x128xf32>,
    %cst_5 = arith.constant dense<0.000000e+00> : vector<128xf32>
    %4 = vector.multi_reduction <add>, %2, %cst_5 [0] : vector<256x128xf32> to vector<128xf32>
    %5 = vector.shape_cast %4 : vector<128xf32> to vector<1x128xf32>
    %6 = arith.mulf %2, %2 : vector<256x128xf32>
    %cst_6 = arith.constant dense<0.000000e+00> : vector<128xf32>
    %7 = vector.multi_reduction <add>, %6, %cst_6 [0] : vector<256x128xf32> to vector<128xf32>
    %8 = vector.shape_cast %7 : vector<128xf32> to vector<1x128xf32>
    %cst_7 = arith.constant 0.000000e+00 : f32
    %9 = vector.broadcast %cst_7 : f32 to vector<6x128xf32>
    %10 = tpu.concatenate %5, %8, %9 in 0 : vector<1x128xf32>, vector<1x128xf32>, vector<6x128xf32> -> vector<8x128xf32>
    %11 = vector.shape_cast %10 : vector<8x128xf32> to vector<1x8x128xf32>
    %c0_8 = arith.constant 0 : index
    %c0_9 = arith.constant 0 : index
    %c0_10 = arith.constant 0 : index
    %12 = vector.load %arg4[%c0_8, %c0_9, %c0_10] : memref<1x8x128xf32, #tpu.memory_space<vmem>>, vector<1x8x128xf32>
    tpu.vector_store %arg4[%c0_8, %c0_9, %c0_10], %11 {strides = array<i32>} : memref<1x8x128xf32, #tpu.memory_space<vmem>>, vector<1x8x128xf32>,
    return
  }
  func.func @transform_0(%arg0: i32) -> (i32, i32) {
    %c0_i32 = arith.constant 0 : i32
    %c0_i32_0 = arith.constant 0 : i32
    return %arg0, %c0_i32 : i32, i32
  }
  func.func @transform_1(%arg0: i32) -> (i32, i32) {
    %c0_i32 = arith.constant 0 : i32
    %c0_i32_0 = arith.constant 0 : i32
    %c0_i32_1 = arith.constant 0 : i32
    return %c0_i32, %c0_i32_0 : i32, i32
  }
  func.func @transform_2(%arg0: i32) -> (i32, i32) {
    %c0_i32 = arith.constant 0 : i32
    %c0_i32_0 = arith.constant 0 : i32
    return %arg0, %c0_i32 : i32, i32
  }
  func.func @transform_3(%arg0: i32) -> (i32, i32, i32) {
    %c0_i32 = arith.constant 0 : i32
    %c0_i32_0 = arith.constant 0 : i32
    %c0_i32_1 = arith.constant 0 : i32
    return %arg0, %c0_i32, %c0_i32_0 : i32, i32, i32
  }
}

module attributes {stable_mosaic.version = 11 : i64} {
  func.func @_conv3x3_stats_kernel(%arg0: i32, %arg1: memref<1x16x16x128xf32, #tpu.memory_space<vmem>>, %arg2: memref<1x128xf32, #tpu.memory_space<vmem>>, %arg3: memref<1x128xf32, #tpu.memory_space<vmem>>, %arg4: memref<1152x128xf32, #tpu.memory_space<vmem>>, %arg5: memref<1x16x16x128xf32, #tpu.memory_space<vmem>>, %arg6: memref<1x8x128xf32, #tpu.memory_space<vmem>>, %arg7: memref<18x18x128xf32, #tpu.memory_space<vmem>>) attributes {dimension_semantics = [#tpu.dimension_semantics<parallel>], iteration_bounds = array<i64: 2>, scalar_prefetch = 0 : i64, scratch_operands = 1 : i64, tpu.core_type = #tpu.core_type<tc>, window_params = [{transform_indices = @transform_0, window_bounds = array<i64: 1, 16, 16, 128>}, {pipeline_mode = #tpu.pipeline_mode<synchronous>, transform_indices = @transform_1, window_bounds = array<i64: 1, 128>}, {pipeline_mode = #tpu.pipeline_mode<synchronous>, transform_indices = @transform_2, window_bounds = array<i64: 1, 128>}, {pipeline_mode = #tpu.pipeline_mode<synchronous>, transform_indices = @transform_3, window_bounds = array<i64: 1152, 128>}, {transform_indices = @transform_4, window_bounds = array<i64: 1, 16, 16, 128>}, {transform_indices = @transform_5, window_bounds = array<i64: 1, 8, 128>}]} {
    %c0 = arith.constant 0 : index
    %c0_0 = arith.constant 0 : index
    %c0_1 = arith.constant 0 : index
    %c0_2 = arith.constant 0 : index
    %0 = vector.load %arg1[%c0, %c0_0, %c0_1, %c0_2] : memref<1x16x16x128xf32, #tpu.memory_space<vmem>>, vector<1x16x16x128xf32>
    %1 = vector.shape_cast %0 : vector<1x16x16x128xf32> to vector<16x16x128xf32>
    %c0_3 = arith.constant 0 : index
    %c0_4 = arith.constant 0 : index
    %2 = vector.load %arg2[%c0_3, %c0_4] : memref<1x128xf32, #tpu.memory_space<vmem>>, vector<1x128xf32>
    %3 = vector.shape_cast %2 : vector<1x128xf32> to vector<1x1x128xf32>
    %4 = vector.broadcast %3 : vector<1x1x128xf32> to vector<16x16x128xf32>
    %5 = arith.mulf %1, %4 : vector<16x16x128xf32>
    %c0_5 = arith.constant 0 : index
    %c0_6 = arith.constant 0 : index
    %6 = vector.load %arg3[%c0_5, %c0_6] : memref<1x128xf32, #tpu.memory_space<vmem>>, vector<1x128xf32>
    %7 = vector.shape_cast %6 : vector<1x128xf32> to vector<1x1x128xf32>
    %8 = vector.broadcast %7 : vector<1x1x128xf32> to vector<16x16x128xf32>
    %9 = arith.addf %5, %8 : vector<16x16x128xf32>
    %cst = arith.constant 0.000000e+00 : f32
    %10 = vector.broadcast %cst : f32 to vector<16x16x128xf32>
    %11 = arith.maximumf %9, %10 : vector<16x16x128xf32>
    %cst_7 = arith.constant 0.000000e+00 : f32
    %12 = vector.broadcast %cst_7 : f32 to vector<1x18x128xf32>
    %cst_8 = arith.constant 0.000000e+00 : f32
    %13 = vector.broadcast %cst_8 : f32 to vector<18x1x128xf32>
    %c0_9 = arith.constant 0 : index
    %c0_10 = arith.constant 0 : index
    %c0_11 = arith.constant 0 : index
    %14 = vector.load %arg7[%c0_9, %c0_10, %c0_11] : memref<18x18x128xf32, #tpu.memory_space<vmem>>, vector<1x18x128xf32>
    tpu.vector_store %arg7[%c0_9, %c0_10, %c0_11], %12 {strides = array<i32>} : memref<18x18x128xf32, #tpu.memory_space<vmem>>, vector<1x18x128xf32>,
    %c17 = arith.constant 17 : index
    %c0_12 = arith.constant 0 : index
    %c0_13 = arith.constant 0 : index
    %15 = vector.load %arg7[%c17, %c0_12, %c0_13] : memref<18x18x128xf32, #tpu.memory_space<vmem>>, vector<1x18x128xf32>
    tpu.vector_store %arg7[%c17, %c0_12, %c0_13], %12 {strides = array<i32>} : memref<18x18x128xf32, #tpu.memory_space<vmem>>, vector<1x18x128xf32>,
    %c0_14 = arith.constant 0 : index
    %c0_15 = arith.constant 0 : index
    %c0_16 = arith.constant 0 : index
    %16 = vector.load %arg7[%c0_14, %c0_15, %c0_16] : memref<18x18x128xf32, #tpu.memory_space<vmem>>, vector<18x1x128xf32>
    tpu.vector_store %arg7[%c0_14, %c0_15, %c0_16], %13 {strides = array<i32>} : memref<18x18x128xf32, #tpu.memory_space<vmem>>, vector<18x1x128xf32>,
    %c0_17 = arith.constant 0 : index
    %c17_18 = arith.constant 17 : index
    %c0_19 = arith.constant 0 : index
    %17 = vector.load %arg7[%c0_17, %c17_18, %c0_19] : memref<18x18x128xf32, #tpu.memory_space<vmem>>, vector<18x1x128xf32>
    tpu.vector_store %arg7[%c0_17, %c17_18, %c0_19], %13 {strides = array<i32>} : memref<18x18x128xf32, #tpu.memory_space<vmem>>, vector<18x1x128xf32>,
    %c1 = arith.constant 1 : index
    %c1_20 = arith.constant 1 : index
    %c0_21 = arith.constant 0 : index
    %18 = vector.load %arg7[%c1, %c1_20, %c0_21] : memref<18x18x128xf32, #tpu.memory_space<vmem>>, vector<16x16x128xf32>
    tpu.vector_store %arg7[%c1, %c1_20, %c0_21], %11 {strides = array<i32>} : memref<18x18x128xf32, #tpu.memory_space<vmem>>, vector<16x16x128xf32>,
    %c0_22 = arith.constant 0 : index
    %c0_23 = arith.constant 0 : index
    %c0_24 = arith.constant 0 : index
    %19 = vector.load %arg7[%c0_22, %c0_23, %c0_24] : memref<18x18x128xf32, #tpu.memory_space<vmem>>, vector<16x16x128xf32>
    %c0_25 = arith.constant 0 : index
    %c1_26 = arith.constant 1 : index
    %c0_27 = arith.constant 0 : index
    %20 = vector.load %arg7[%c0_25, %c1_26, %c0_27] : memref<18x18x128xf32, #tpu.memory_space<vmem>>, vector<16x16x128xf32>
    %c0_28 = arith.constant 0 : index
    %c2 = arith.constant 2 : index
    %c0_29 = arith.constant 0 : index
    %21 = vector.load %arg7[%c0_28, %c2, %c0_29] : memref<18x18x128xf32, #tpu.memory_space<vmem>>, vector<16x16x128xf32>
    %c1_30 = arith.constant 1 : index
    %c0_31 = arith.constant 0 : index
    %c0_32 = arith.constant 0 : index
    %22 = vector.load %arg7[%c1_30, %c0_31, %c0_32] : memref<18x18x128xf32, #tpu.memory_space<vmem>>, vector<16x16x128xf32>
    %c1_33 = arith.constant 1 : index
    %c1_34 = arith.constant 1 : index
    %c0_35 = arith.constant 0 : index
    %23 = vector.load %arg7[%c1_33, %c1_34, %c0_35] : memref<18x18x128xf32, #tpu.memory_space<vmem>>, vector<16x16x128xf32>
    %c1_36 = arith.constant 1 : index
    %c2_37 = arith.constant 2 : index
    %c0_38 = arith.constant 0 : index
    %24 = vector.load %arg7[%c1_36, %c2_37, %c0_38] : memref<18x18x128xf32, #tpu.memory_space<vmem>>, vector<16x16x128xf32>
    %c2_39 = arith.constant 2 : index
    %c0_40 = arith.constant 0 : index
    %c0_41 = arith.constant 0 : index
    %25 = vector.load %arg7[%c2_39, %c0_40, %c0_41] : memref<18x18x128xf32, #tpu.memory_space<vmem>>, vector<16x16x128xf32>
    %c2_42 = arith.constant 2 : index
    %c1_43 = arith.constant 1 : index
    %c0_44 = arith.constant 0 : index
    %26 = vector.load %arg7[%c2_42, %c1_43, %c0_44] : memref<18x18x128xf32, #tpu.memory_space<vmem>>, vector<16x16x128xf32>
    %c2_45 = arith.constant 2 : index
    %c2_46 = arith.constant 2 : index
    %c0_47 = arith.constant 0 : index
    %27 = vector.load %arg7[%c2_45, %c2_46, %c0_47] : memref<18x18x128xf32, #tpu.memory_space<vmem>>, vector<16x16x128xf32>
    %28 = tpu.concatenate %19, %20, %21, %22, %23, %24, %25, %26, %27 in 2 : vector<16x16x128xf32>, vector<16x16x128xf32>, vector<16x16x128xf32>, vector<16x16x128xf32>, vector<16x16x128xf32>, vector<16x16x128xf32>, vector<16x16x128xf32>, vector<16x16x128xf32>, vector<16x16x128xf32> -> vector<16x16x1152xf32>
    %29 = vector.shape_cast %28 : vector<16x16x1152xf32> to vector<256x1152xf32>
    %c0_48 = arith.constant 0 : index
    %c0_49 = arith.constant 0 : index
    %30 = vector.load %arg4[%c0_48, %c0_49] : memref<1152x128xf32, #tpu.memory_space<vmem>>, vector<1152x128xf32>
    %cst_50 = arith.constant dense<0.000000e+00> : vector<256x128xf32>
    %31 = tpu.matmul %29, %30, %cst_50 {dimension_numbers = #tpu.dot_dimension_numbers<[1], [0], [0], [1], [0, 0, 1, 1], [], []>} : vector<256x1152xf32>, vector<1152x128xf32>, vector<256x128xf32> -> vector<256x128xf32>
    %32 = vector.shape_cast %31 : vector<256x128xf32> to vector<1x16x16x128xf32>
    %c0_51 = arith.constant 0 : index
    %c0_52 = arith.constant 0 : index
    %c0_53 = arith.constant 0 : index
    %c0_54 = arith.constant 0 : index
    %33 = vector.load %arg5[%c0_51, %c0_52, %c0_53, %c0_54] : memref<1x16x16x128xf32, #tpu.memory_space<vmem>>, vector<1x16x16x128xf32>
    tpu.vector_store %arg5[%c0_51, %c0_52, %c0_53, %c0_54], %32 {strides = array<i32>} : memref<1x16x16x128xf32, #tpu.memory_space<vmem>>, vector<1x16x16x128xf32>,
    %cst_55 = arith.constant dense<0.000000e+00> : vector<128xf32>
    %34 = vector.multi_reduction <add>, %31, %cst_55 [0] : vector<256x128xf32> to vector<128xf32>
    %35 = vector.shape_cast %34 : vector<128xf32> to vector<1x128xf32>
    %36 = arith.mulf %31, %31 : vector<256x128xf32>
    %cst_56 = arith.constant dense<0.000000e+00> : vector<128xf32>
    %37 = vector.multi_reduction <add>, %36, %cst_56 [0] : vector<256x128xf32> to vector<128xf32>
    %38 = vector.shape_cast %37 : vector<128xf32> to vector<1x128xf32>
    %cst_57 = arith.constant 0.000000e+00 : f32
    %39 = vector.broadcast %cst_57 : f32 to vector<6x128xf32>
    %40 = tpu.concatenate %35, %38, %39 in 0 : vector<1x128xf32>, vector<1x128xf32>, vector<6x128xf32> -> vector<8x128xf32>
    %41 = vector.shape_cast %40 : vector<8x128xf32> to vector<1x8x128xf32>
    %c0_58 = arith.constant 0 : index
    %c0_59 = arith.constant 0 : index
    %c0_60 = arith.constant 0 : index
    %42 = vector.load %arg6[%c0_58, %c0_59, %c0_60] : memref<1x8x128xf32, #tpu.memory_space<vmem>>, vector<1x8x128xf32>
    tpu.vector_store %arg6[%c0_58, %c0_59, %c0_60], %41 {strides = array<i32>} : memref<1x8x128xf32, #tpu.memory_space<vmem>>, vector<1x8x128xf32>,
    return
  }
  func.func @transform_0(%arg0: i32) -> (i32, i32, i32, i32) {
    %c0_i32 = arith.constant 0 : i32
    %c0_i32_0 = arith.constant 0 : i32
    %c0_i32_1 = arith.constant 0 : i32
    %c0_i32_2 = arith.constant 0 : i32
    return %arg0, %c0_i32, %c0_i32_0, %c0_i32_1 : i32, i32, i32, i32
  }
  func.func @transform_1(%arg0: i32) -> (i32, i32) {
    %c0_i32 = arith.constant 0 : i32
    %c0_i32_0 = arith.constant 0 : i32
    %c0_i32_1 = arith.constant 0 : i32
    return %c0_i32, %c0_i32_0 : i32, i32
  }
  func.func @transform_2(%arg0: i32) -> (i32, i32) {
    %c0_i32 = arith.constant 0 : i32
    %c0_i32_0 = arith.constant 0 : i32
    %c0_i32_1 = arith.constant 0 : i32
    return %c0_i32, %c0_i32_0 : i32, i32
  }
  func.func @transform_3(%arg0: i32) -> (i32, i32) {
    %c0_i32 = arith.constant 0 : i32
    %c0_i32_0 = arith.constant 0 : i32
    %c0_i32_1 = arith.constant 0 : i32
    return %c0_i32, %c0_i32_0 : i32, i32
  }
  func.func @transform_4(%arg0: i32) -> (i32, i32, i32, i32) {
    %c0_i32 = arith.constant 0 : i32
    %c0_i32_0 = arith.constant 0 : i32
    %c0_i32_1 = arith.constant 0 : i32
    %c0_i32_2 = arith.constant 0 : i32
    return %arg0, %c0_i32, %c0_i32_0, %c0_i32_1 : i32, i32, i32, i32
  }
  func.func @transform_5(%arg0: i32) -> (i32, i32, i32) {
    %c0_i32 = arith.constant 0 : i32
    %c0_i32_0 = arith.constant 0 : i32
    %c0_i32_1 = arith.constant 0 : i32
    return %arg0, %c0_i32, %c0_i32_0 : i32, i32, i32
  }
}

module attributes {stable_mosaic.version = 11 : i64} {
  func.func @_stage3_kernel(%arg0: i32, %arg1: memref<256x128xf32, #tpu.memory_space<vmem>>, %arg2: memref<1x128xf32, #tpu.memory_space<vmem>>, %arg3: memref<1x128xf32, #tpu.memory_space<vmem>>, %arg4: memref<128x128xf32, #tpu.memory_space<vmem>>, %arg5: memref<256x128xf32, #tpu.memory_space<vmem>>, %arg6: memref<128x128xf32, #tpu.memory_space<vmem>>, %arg7: memref<256x128xf32, #tpu.memory_space<vmem>>, %arg8: memref<1x8x128xf32, #tpu.memory_space<vmem>>, %arg9: memref<256x128xf32, #tpu.memory_space<vmem>>, %arg10: memref<1x8x128xf32, #tpu.memory_space<vmem>>) attributes {dimension_semantics = [#tpu.dimension_semantics<parallel>], iteration_bounds = array<i64: 2>, scalar_prefetch = 0 : i64, scratch_operands = 0 : i64, tpu.core_type = #tpu.core_type<tc>, window_params = [{transform_indices = @transform_0, window_bounds = array<i64: 256, 128>}, {pipeline_mode = #tpu.pipeline_mode<synchronous>, transform_indices = @transform_1, window_bounds = array<i64: 1, 128>}, {pipeline_mode = #tpu.pipeline_mode<synchronous>, transform_indices = @transform_2, window_bounds = array<i64: 1, 128>}, {pipeline_mode = #tpu.pipeline_mode<synchronous>, transform_indices = @transform_3, window_bounds = array<i64: 128, 128>}, {transform_indices = @transform_4, window_bounds = array<i64: 256, 128>}, {pipeline_mode = #tpu.pipeline_mode<synchronous>, transform_indices = @transform_5, window_bounds = array<i64: 128, 128>}, {transform_indices = @transform_6, window_bounds = array<i64: 256, 128>}, {transform_indices = @transform_7, window_bounds = array<i64: 1, 8, 128>}, {transform_indices = @transform_8, window_bounds = array<i64: 256, 128>}, {transform_indices = @transform_9, window_bounds = array<i64: 1, 8, 128>}]} {
    %0 = tpu.iota {dimensions = array<i32: 0>} : vector<256x1xi32>
    %c256_i32 = arith.constant 256 : i32
    %1 = arith.muli %arg0, %c256_i32 : i32
    %2 = vector.broadcast %1 : i32 to vector<256x1xi32>
    %3 = arith.addi %0, %2 : vector<256x1xi32>
    %c512_i32 = arith.constant 512 : i32
    %4 = vector.broadcast %c512_i32 : i32 to vector<256x1xi32>
    %5 = arith.cmpi slt, %3, %4 : vector<256x1xi32>
    %c0 = arith.constant 0 : index
    %c0_0 = arith.constant 0 : index
    %6 = vector.load %arg1[%c0, %c0_0] : memref<256x128xf32, #tpu.memory_space<vmem>>, vector<256x128xf32>
    %c0_1 = arith.constant 0 : index
    %c0_2 = arith.constant 0 : index
    %7 = vector.load %arg2[%c0_1, %c0_2] : memref<1x128xf32, #tpu.memory_space<vmem>>, vector<1x128xf32>
    %8 = vector.broadcast %7 : vector<1x128xf32> to vector<256x128xf32>
    %9 = arith.mulf %6, %8 : vector<256x128xf32>
    %c0_3 = arith.constant 0 : index
    %c0_4 = arith.constant 0 : index
    %10 = vector.load %arg3[%c0_3, %c0_4] : memref<1x128xf32, #tpu.memory_space<vmem>>, vector<1x128xf32>
    %11 = vector.broadcast %10 : vector<1x128xf32> to vector<256x128xf32>
    %12 = arith.addf %9, %11 : vector<256x128xf32>
    %cst = arith.constant 0.000000e+00 : f32
    %13 = vector.broadcast %cst : f32 to vector<256x128xf32>
    %14 = arith.maximumf %12, %13 : vector<256x128xf32>
    %c0_5 = arith.constant 0 : index
    %c0_6 = arith.constant 0 : index
    %15 = vector.load %arg4[%c0_5, %c0_6] : memref<128x128xf32, #tpu.memory_space<vmem>>, vector<128x128xf32>
    %cst_7 = arith.constant dense<0.000000e+00> : vector<256x128xf32>
    %16 = tpu.matmul %14, %15, %cst_7 {dimension_numbers = #tpu.dot_dimension_numbers<[1], [0], [0], [1], [0, 0, 1, 1], [], []>} : vector<256x128xf32>, vector<128x128xf32>, vector<256x128xf32> -> vector<256x128xf32>
    %c0_8 = arith.constant 0 : index
    %c0_9 = arith.constant 0 : index
    %17 = vector.load %arg7[%c0_8, %c0_9] : memref<256x128xf32, #tpu.memory_space<vmem>>, vector<256x128xf32>
    tpu.vector_store %arg7[%c0_8, %c0_9], %16 {strides = array<i32>} : memref<256x128xf32, #tpu.memory_space<vmem>>, vector<256x128xf32>,
    %cst_10 = arith.constant 0.000000e+00 : f32
    %18 = vector.shape_cast %5 : vector<256x1xi1> to vector<256x1xi1>
    %19 = vector.broadcast %18 : vector<256x1xi1> to vector<256x128xi1>
    %20 = vector.broadcast %cst_10 : f32 to vector<256x128xf32>
    %21 = arith.select %19, %16, %20 : vector<256x128xi1>, vector<256x128xf32>
    %cst_11 = arith.constant dense<0.000000e+00> : vector<128xf32>
    %22 = vector.multi_reduction <add>, %21, %cst_11 [0] : vector<256x128xf32> to vector<128xf32>
    %23 = vector.shape_cast %22 : vector<128xf32> to vector<1x128xf32>
    %24 = arith.mulf %21, %21 : vector<256x128xf32>
    %cst_12 = arith.constant dense<0.000000e+00> : vector<128xf32>
    %25 = vector.multi_reduction <add>, %24, %cst_12 [0] : vector<256x128xf32> to vector<128xf32>
    %26 = vector.shape_cast %25 : vector<128xf32> to vector<1x128xf32>
    %cst_13 = arith.constant 0.000000e+00 : f32
    %27 = vector.broadcast %cst_13 : f32 to vector<6x128xf32>
    %28 = tpu.concatenate %23, %26, %27 in 0 : vector<1x128xf32>, vector<1x128xf32>, vector<6x128xf32> -> vector<8x128xf32>
    %29 = vector.shape_cast %28 : vector<8x128xf32> to vector<1x8x128xf32>
    %c0_14 = arith.constant 0 : index
    %c0_15 = arith.constant 0 : index
    %c0_16 = arith.constant 0 : index
    %30 = vector.load %arg8[%c0_14, %c0_15, %c0_16] : memref<1x8x128xf32, #tpu.memory_space<vmem>>, vector<1x8x128xf32>
    tpu.vector_store %arg8[%c0_14, %c0_15, %c0_16], %29 {strides = array<i32>} : memref<1x8x128xf32, #tpu.memory_space<vmem>>, vector<1x8x128xf32>,
    %c0_17 = arith.constant 0 : index
    %c0_18 = arith.constant 0 : index
    %31 = vector.load %arg5[%c0_17, %c0_18] : memref<256x128xf32, #tpu.memory_space<vmem>>, vector<256x128xf32>
    %c0_19 = arith.constant 0 : index
    %c0_20 = arith.constant 0 : index
    %32 = vector.load %arg6[%c0_19, %c0_20] : memref<128x128xf32, #tpu.memory_space<vmem>>, vector<128x128xf32>
    %cst_21 = arith.constant dense<0.000000e+00> : vector<256x128xf32>
    %33 = tpu.matmul %31, %32, %cst_21 {dimension_numbers = #tpu.dot_dimension_numbers<[1], [0], [0], [1], [0, 0, 1, 1], [], []>} : vector<256x128xf32>, vector<128x128xf32>, vector<256x128xf32> -> vector<256x128xf32>
    %c0_22 = arith.constant 0 : index
    %c0_23 = arith.constant 0 : index
    %34 = vector.load %arg9[%c0_22, %c0_23] : memref<256x128xf32, #tpu.memory_space<vmem>>, vector<256x128xf32>
    tpu.vector_store %arg9[%c0_22, %c0_23], %33 {strides = array<i32>} : memref<256x128xf32, #tpu.memory_space<vmem>>, vector<256x128xf32>,
    %cst_24 = arith.constant 0.000000e+00 : f32
    %35 = vector.shape_cast %5 : vector<256x1xi1> to vector<256x1xi1>
    %36 = vector.broadcast %35 : vector<256x1xi1> to vector<256x128xi1>
    %37 = vector.broadcast %cst_24 : f32 to vector<256x128xf32>
    %38 = arith.select %36, %33, %37 : vector<256x128xi1>, vector<256x128xf32>
    %cst_25 = arith.constant dense<0.000000e+00> : vector<128xf32>
    %39 = vector.multi_reduction <add>, %38, %cst_25 [0] : vector<256x128xf32> to vector<128xf32>
    %40 = vector.shape_cast %39 : vector<128xf32> to vector<1x128xf32>
    %41 = arith.mulf %38, %38 : vector<256x128xf32>
    %cst_26 = arith.constant dense<0.000000e+00> : vector<128xf32>
    %42 = vector.multi_reduction <add>, %41, %cst_26 [0] : vector<256x128xf32> to vector<128xf32>
    %43 = vector.shape_cast %42 : vector<128xf32> to vector<1x128xf32>
    %cst_27 = arith.constant 0.000000e+00 : f32
    %44 = vector.broadcast %cst_27 : f32 to vector<6x128xf32>
    %45 = tpu.concatenate %40, %43, %44 in 0 : vector<1x128xf32>, vector<1x128xf32>, vector<6x128xf32> -> vector<8x128xf32>
    %46 = vector.shape_cast %45 : vector<8x128xf32> to vector<1x8x128xf32>
    %c0_28 = arith.constant 0 : index
    %c0_29 = arith.constant 0 : index
    %c0_30 = arith.constant 0 : index
    %47 = vector.load %arg10[%c0_28, %c0_29, %c0_30] : memref<1x8x128xf32, #tpu.memory_space<vmem>>, vector<1x8x128xf32>
    tpu.vector_store %arg10[%c0_28, %c0_29, %c0_30], %46 {strides = array<i32>} : memref<1x8x128xf32, #tpu.memory_space<vmem>>, vector<1x8x128xf32>,
    return
  }
  func.func @transform_0(%arg0: i32) -> (i32, i32) {
    %c0_i32 = arith.constant 0 : i32
    %c0_i32_0 = arith.constant 0 : i32
    return %arg0, %c0_i32 : i32, i32
  }
  func.func @transform_1(%arg0: i32) -> (i32, i32) {
    %c0_i32 = arith.constant 0 : i32
    %c0_i32_0 = arith.constant 0 : i32
    %c0_i32_1 = arith.constant 0 : i32
    return %c0_i32, %c0_i32_0 : i32, i32
  }
  func.func @transform_2(%arg0: i32) -> (i32, i32) {
    %c0_i32 = arith.constant 0 : i32
    %c0_i32_0 = arith.constant 0 : i32
    %c0_i32_1 = arith.constant 0 : i32
    return %c0_i32, %c0_i32_0 : i32, i32
  }
  func.func @transform_3(%arg0: i32) -> (i32, i32) {
    %c0_i32 = arith.constant 0 : i32
    %c0_i32_0 = arith.constant 0 : i32
    %c0_i32_1 = arith.constant 0 : i32
    return %c0_i32, %c0_i32_0 : i32, i32
  }
  func.func @transform_4(%arg0: i32) -> (i32, i32) {
    %c0_i32 = arith.constant 0 : i32
    %c0_i32_0 = arith.constant 0 : i32
    return %arg0, %c0_i32 : i32, i32
  }
  func.func @transform_5(%arg0: i32) -> (i32, i32) {
    %c0_i32 = arith.constant 0 : i32
    %c0_i32_0 = arith.constant 0 : i32
    %c0_i32_1 = arith.constant 0 : i32
    return %c0_i32, %c0_i32_0 : i32, i32
  }
  func.func @transform_6(%arg0: i32) -> (i32, i32) {
    %c0_i32 = arith.constant 0 : i32
    %c0_i32_0 = arith.constant 0 : i32
    return %arg0, %c0_i32 : i32, i32
  }
  func.func @transform_7(%arg0: i32) -> (i32, i32, i32) {
    %c0_i32 = arith.constant 0 : i32
    %c0_i32_0 = arith.constant 0 : i32
    %c0_i32_1 = arith.constant 0 : i32
    return %arg0, %c0_i32, %c0_i32_0 : i32, i32, i32
  }
  func.func @transform_8(%arg0: i32) -> (i32, i32) {
    %c0_i32 = arith.constant 0 : i32
    %c0_i32_0 = arith.constant 0 : i32
    return %arg0, %c0_i32 : i32, i32
  }
  func.func @transform_9(%arg0: i32) -> (i32, i32, i32) {
    %c0_i32 = arith.constant 0 : i32
    %c0_i32_0 = arith.constant 0 : i32
    %c0_i32_1 = arith.constant 0 : i32
    return %arg0, %c0_i32, %c0_i32_0 : i32, i32, i32
  }
}

module attributes {stable_mosaic.version = 11 : i64} {
  func.func @_add_relu_kernel(%arg0: i32, %arg1: memref<256x128xf32, #tpu.memory_space<vmem>>, %arg2: memref<256x128xf32, #tpu.memory_space<vmem>>, %arg3: memref<1x128xf32, #tpu.memory_space<vmem>>, %arg4: memref<1x128xf32, #tpu.memory_space<vmem>>, %arg5: memref<1x128xf32, #tpu.memory_space<vmem>>, %arg6: memref<1x128xf32, #tpu.memory_space<vmem>>, %arg7: memref<256x128xf32, #tpu.memory_space<vmem>>) attributes {dimension_semantics = [#tpu.dimension_semantics<parallel>], iteration_bounds = array<i64: 2>, scalar_prefetch = 0 : i64, scratch_operands = 0 : i64, tpu.core_type = #tpu.core_type<tc>, window_params = [{transform_indices = @transform_0, window_bounds = array<i64: 256, 128>}, {transform_indices = @transform_1, window_bounds = array<i64: 256, 128>}, {pipeline_mode = #tpu.pipeline_mode<synchronous>, transform_indices = @transform_2, window_bounds = array<i64: 1, 128>}, {pipeline_mode = #tpu.pipeline_mode<synchronous>, transform_indices = @transform_3, window_bounds = array<i64: 1, 128>}, {pipeline_mode = #tpu.pipeline_mode<synchronous>, transform_indices = @transform_4, window_bounds = array<i64: 1, 128>}, {pipeline_mode = #tpu.pipeline_mode<synchronous>, transform_indices = @transform_5, window_bounds = array<i64: 1, 128>}, {transform_indices = @transform_6, window_bounds = array<i64: 256, 128>}]} {
    %c0 = arith.constant 0 : index
    %c0_0 = arith.constant 0 : index
    %0 = vector.load %arg1[%c0, %c0_0] : memref<256x128xf32, #tpu.memory_space<vmem>>, vector<256x128xf32>
    %c0_1 = arith.constant 0 : index
    %c0_2 = arith.constant 0 : index
    %1 = vector.load %arg3[%c0_1, %c0_2] : memref<1x128xf32, #tpu.memory_space<vmem>>, vector<1x128xf32>
    %2 = vector.broadcast %1 : vector<1x128xf32> to vector<256x128xf32>
    %3 = arith.mulf %0, %2 : vector<256x128xf32>
    %c0_3 = arith.constant 0 : index
    %c0_4 = arith.constant 0 : index
    %4 = vector.load %arg4[%c0_3, %c0_4] : memref<1x128xf32, #tpu.memory_space<vmem>>, vector<1x128xf32>
    %5 = vector.broadcast %4 : vector<1x128xf32> to vector<256x128xf32>
    %6 = arith.addf %3, %5 : vector<256x128xf32>
    %c0_5 = arith.constant 0 : index
    %c0_6 = arith.constant 0 : index
    %7 = vector.load %arg2[%c0_5, %c0_6] : memref<256x128xf32, #tpu.memory_space<vmem>>, vector<256x128xf32>
    %c0_7 = arith.constant 0 : index
    %c0_8 = arith.constant 0 : index
    %8 = vector.load %arg5[%c0_7, %c0_8] : memref<1x128xf32, #tpu.memory_space<vmem>>, vector<1x128xf32>
    %9 = vector.broadcast %8 : vector<1x128xf32> to vector<256x128xf32>
    %10 = arith.mulf %7, %9 : vector<256x128xf32>
    %11 = arith.addf %6, %10 : vector<256x128xf32>
    %c0_9 = arith.constant 0 : index
    %c0_10 = arith.constant 0 : index
    %12 = vector.load %arg6[%c0_9, %c0_10] : memref<1x128xf32, #tpu.memory_space<vmem>>, vector<1x128xf32>
    %13 = vector.broadcast %12 : vector<1x128xf32> to vector<256x128xf32>
    %14 = arith.addf %11, %13 : vector<256x128xf32>
    %cst = arith.constant 0.000000e+00 : f32
    %15 = vector.broadcast %cst : f32 to vector<256x128xf32>
    %16 = arith.maximumf %14, %15 : vector<256x128xf32>
    %c0_11 = arith.constant 0 : index
    %c0_12 = arith.constant 0 : index
    %17 = vector.load %arg7[%c0_11, %c0_12] : memref<256x128xf32, #tpu.memory_space<vmem>>, vector<256x128xf32>
    tpu.vector_store %arg7[%c0_11, %c0_12], %16 {strides = array<i32>} : memref<256x128xf32, #tpu.memory_space<vmem>>, vector<256x128xf32>,
    return
  }
  func.func @transform_0(%arg0: i32) -> (i32, i32) {
    %c0_i32 = arith.constant 0 : i32
    %c0_i32_0 = arith.constant 0 : i32
    return %arg0, %c0_i32 : i32, i32
  }
  func.func @transform_1(%arg0: i32) -> (i32, i32) {
    %c0_i32 = arith.constant 0 : i32
    %c0_i32_0 = arith.constant 0 : i32
    return %arg0, %c0_i32 : i32, i32
  }
  func.func @transform_2(%arg0: i32) -> (i32, i32) {
    %c0_i32 = arith.constant 0 : i32
    %c0_i32_0 = arith.constant 0 : i32
    %c0_i32_1 = arith.constant 0 : i32
    return %c0_i32, %c0_i32_0 : i32, i32
  }
  func.func @transform_3(%arg0: i32) -> (i32, i32) {
    %c0_i32 = arith.constant 0 : i32
    %c0_i32_0 = arith.constant 0 : i32
    %c0_i32_1 = arith.constant 0 : i32
    return %c0_i32, %c0_i32_0 : i32, i32
  }
  func.func @transform_4(%arg0: i32) -> (i32, i32) {
    %c0_i32 = arith.constant 0 : i32
    %c0_i32_0 = arith.constant 0 : i32
    %c0_i32_1 = arith.constant 0 : i32
    return %c0_i32, %c0_i32_0 : i32, i32
  }
  func.func @transform_5(%arg0: i32) -> (i32, i32) {
    %c0_i32 = arith.constant 0 : i32
    %c0_i32_0 = arith.constant 0 : i32
    %c0_i32_1 = arith.constant 0 : i32
    return %c0_i32, %c0_i32_0 : i32, i32
  }
  func.func @transform_6(%arg0: i32) -> (i32, i32) {
    %c0_i32 = arith.constant 0 : i32
    %c0_i32_0 = arith.constant 0 : i32
    return %arg0, %c0_i32 : i32, i32
  }
}

</mosaic_0001>

<bundles_post_ra>
// kernel: residual_block.4
= control target key start
LH: loop header
LB: loop body
LE: loop exit
PB: predicated region body
PF: predicated region fallthrough
CT: control target
= control target key end

     0   :  { %s912_s12 = smov 0   ;;  %s1138_s0 = inlined_call_operand.vmem [shape: f32[512,128], index: 0, kind: input, shape index: {}]   ;;  %s1139_s1 = inlined_call_operand.vmem [shape: f32[128,128], index: 1, kind: input, shape index: {}]   ;;  %s1140_s2 = inlined_call_operand.vmem [shape: f32[512,128], index: 2, kind: output, shape index: {0}]   ;;  %s1141_s3 = inlined_call_operand.vmem [shape: f32[2,8,128], index: 3, kind: output, shape index: {1}]  }
   0x1 LB: > { %s918_s13 = sadd.s32 4294967295, %s890_s12   ;;  %p692_p0 = scmp.ge.s32.totalorder %s890_s12, 1  ;;  %s890_s12 = sphi %s912_s12, %s14_s12  }
   0x2   : > { %p141_p1 = scmp.lt.s32.totalorder %s890_s12, 3 }
   0x4   : > { %p142_p2 = pnand %p692_p0, %p141_p1 }
   0x5   : > { %v217_v0 = vld [vmem:[%s1139_s1] sm:$0xff] (!%p142_p2)  ;;  %v218_v1 = vld [vmem:[%s1139_s1 + $0x8] sm:$0xff] (!%p142_p2)  ;;  %v219_v2 = vld [vmem:[%s1139_s1 + $0x10] sm:$0xff] (!%p142_p2)  ;;  %s693_s20 = sshll.u32 (!%p142_p2), %s918_s13, 5  ;;  %p181_p4 = scmp.lt.s32.totalorder (!%p142_p2), %s918_s13, 1  ;;  %vm596_vm0 = vcmask (!%p142_p2), 1040384  }
   0x6   : > { %145 = sbr.rel (%p142_p2) target bundleno = 334 (0x14e), region = 28  ;;  %v828_v3 = vpack.c.bf16 (!%p142_p2), %v218_v1, %v217_v0  ;;  %v220_v4 = vld [vmem:[%s1139_s1 + $0x18] sm:$0xff] (!%p142_p2)  ;;  %p170_p3 = scmp.lt.s32.totalorder (!%p142_p2), %s693_s20, 63  ;;  %v221_v6 = vld [vmem:[%s1139_s1 + $0x20] sm:$0xff] (!%p142_p2)  ;;  %v222_v7 = vld [vmem:[%s1139_s1 + $0x28] sm:$0xff] (!%p142_p2)  ;;  %vm598_vm1 = vcmask (!%p142_p2), 1041408  }
   0x7   : > { %v832_v5 = vpack.c.bf16 (!%p142_p2), %v220_v4, %v219_v2  ;;  %v836_v8 = vpack.c.bf16 (!%p142_p2), %v222_v7, %v221_v6  ;;  %v223_v9 = vld [vmem:[%s1139_s1 + $0x30] sm:$0xff] (!%p142_p2)  ;;  %v224_v10 = vld [vmem:[%s1139_s1 + $0x38] sm:$0xff] (!%p142_p2)  ;;  %v225_v13 = vld [vmem:[%s1139_s1 + $0x40] sm:$0xff] (!%p142_p2) }
   0x8   : > { %829 = vmatprep.subr.bf16.mxu0 (!%p142_p2), %v828_v3  ;;  %860 = vmatprep.subr.bf16.mxu1 (!%p142_p2), %v828_v3  ;;  %v840_v12 = vpack.c.bf16 (!%p142_p2), %v224_v10, %v223_v9  ;;  %v226_v14 = vld [vmem:[%s1139_s1 + $0x48] sm:$0xff] (!%p142_p2)  ;;  %v227_v17 = vld [vmem:[%s1139_s1 + $0x50] sm:$0xff] (!%p142_p2)  ;;  %v228_v18 = vld [vmem:[%s1139_s1 + $0x58] sm:$0xff] (!%p142_p2) }
   0x9   : > { %831 = vmatpush3.bf16.msra.mxu0 (!%p142_p2), %v828_v3  ;;  %868 = vmatpush3.bf16.msra.mxu1 (!%p142_p2), %v828_v3  ;;  %v844_v16 = vpack.c.bf16 (!%p142_p2), %v226_v14, %v225_v13  ;;  %v848_v19 = vpack.c.bf16 (!%p142_p2), %v228_v18, %v227_v17  ;;  %v229_v20 = vld [vmem:[%s1139_s1 + $0x60] sm:$0xff] (!%p142_p2)  ;;  %v230_v21 = vld [vmem:[%s1139_s1 + $0x68] sm:$0xff] (!%p142_p2)  ;;  %v231_v23 = vld [vmem:[%s1139_s1 + $0x70] sm:$0xff] (!%p142_p2) }
   0xa   : > { %833 = vmatprep.subr.bf16.mxu0 (!%p142_p2), %v832_v5  ;;  %861 = vmatprep.subr.bf16.mxu1 (!%p142_p2), %v832_v5  ;;  %v852_v22 = vpack.c.bf16 (!%p142_p2), %v230_v21, %v229_v20  ;;  %v232_v24 = vld [vmem:[%s1139_s1 + $0x78] sm:$0xff] (!%p142_p2) }
   0xb   : > { %v856_v25 = vpack.c.bf16 (!%p142_p2), %v232_v24, %v231_v23 }
   0xd   : > { %s1143_s20 = smov (!%p170_p3, %s693_s20), 63  ;;  %835 = vmatpush3.bf16.msra.mxu0 %v832_v5  ;;  %869 = vmatpush3.bf16.msra.mxu1 %v832_v5  ;;  %s1145_s13 = smov (!%p181_p4, %s918_s13), 1 }
   0xe   : > { %s694_s27 = sshll.u32 %s1143_s20, 3  ;;  %837 = vmatprep.subr.bf16.mxu0 %v836_v8  ;;  %862 = vmatprep.subr.bf16.mxu1 %v836_v8  ;;  %s697_s20 = sshll.u32 %s1145_s13, 3 }
   0xf   : > { %s955_s7 = scalar_lea.vmem %s1138_s0, %s694_s27  ;;  %s1018_s30 = scalar_lea.vmem %s1140_s2, %s694_s27 }
  0x10   : > { %v185_v11 = vld [vmem:[%s955_s7] sm:$0xff]  ;;  %v186_v26 = vld [vmem:[%s955_s7 + $0x8] sm:$0xff]  ;;  %v187_v27 = vld [vmem:[%s955_s7 + $0x10] sm:$0xff]  ;;  %s184_s5 = scalar_lea.vmem %s1141_s3, %s697_s20 }
  0x11   : > { %780 = vmatprep.mubr.f32.mxu0 %v185_v11  ;;  %839 = vmatpush3.bf16.msra.mxu0 %v836_v8  ;;  %v201_v15 = vld [vmem:[%s955_s7 + $0x80] sm:$0xff]  ;;  %v202_v28 = vld [vmem:[%s955_s7 + $0x88] sm:$0xff]  ;;  %v203_v29 = vld [vmem:[%s955_s7 + $0x90] sm:$0xff] }
  0x12   : > { %841 = vmatprep.subr.bf16.mxu0 %v840_v12  ;;  %870 = vmatpush3.bf16.msra.mxu1 %v836_v8  ;;  %v188_v30 = vld [vmem:[%s955_s7 + $0x18] sm:$0xff]  ;;  %v189_v31 = vld [vmem:[%s955_s7 + $0x20] sm:$0xff]  ;;  %v190_v34 = vld [vmem:[%s955_s7 + $0x28] sm:$0xff] }
  0x13   : > { %863 = vmatprep.subr.bf16.mxu1 %v840_v12  ;;  %804 = vmatprep.mubr.f32.mxu1 %v201_v15  ;;  %v204_v32 = vld [vmem:[%s955_s7 + $0x98] sm:$0xff]  ;;  %v205_v33 = vld [vmem:[%s955_s7 + $0xa0] sm:$0xff]  ;;  %v191_v35 = vld [vmem:[%s955_s7 + $0x30] sm:$0xff] }
  0x14   : > { %v206_v36 = vld [vmem:[%s955_s7 + $0xa8] sm:$0xff]  ;;  %v207_v37 = vld [vmem:[%s955_s7 + $0xb0] sm:$0xff]  ;;  %v192_v38 = vld [vmem:[%s955_s7 + $0x38] sm:$0xff] }
  0x15   : > { %843 = vmatpush3.bf16.msra.mxu0 %v840_v12  ;;  %v193_v39 = vld [vmem:[%s955_s7 + $0x40] sm:$0xff]  ;;  %v208_v40 = vld [vmem:[%s955_s7 + $0xb8] sm:$0xff]  ;;  %v194_v42 = vld [vmem:[%s955_s7 + $0x48] sm:$0xff] }
  0x16   : > { %845 = vmatprep.subr.bf16.mxu0 %v844_v16  ;;  %871 = vmatpush3.bf16.msra.mxu1 %v840_v12  ;;  %v209_v41 = vld [vmem:[%s955_s7 + $0xc0] sm:$0xff]  ;;  %v195_v43 = vld [vmem:[%s955_s7 + $0x50] sm:$0xff]  ;;  %v210_v44 = vld [vmem:[%s955_s7 + $0xc8] sm:$0xff] }
  0x17   : > { %864 = vmatprep.subr.bf16.mxu1 %v844_v16  ;;  %v211_v45 = vld [vmem:[%s955_s7 + $0xd0] sm:$0xff]  ;;  %v196_v46 = vld [vmem:[%s955_s7 + $0x58] sm:$0xff]  ;;  %v197_v47 = vld [vmem:[%s955_s7 + $0x60] sm:$0xff] }
  0x18   : > { %v212_v48 = vld [vmem:[%s955_s7 + $0xd8] sm:$0xff]  ;;  %v213_v49 = vld [vmem:[%s955_s7 + $0xe0] sm:$0xff]  ;;  %v198_v50 = vld [vmem:[%s955_s7 + $0x68] sm:$0xff] }
  0x19   : > { %847 = vmatpush3.bf16.msra.mxu0 %v844_v16  ;;  %v199_v51 = vld [vmem:[%s955_s7 + $0x70] sm:$0xff]  ;;  %v214_v52 = vld [vmem:[%s955_s7 + $0xe8] sm:$0xff]  ;;  %v200_v54 = vld [vmem:[%s955_s7 + $0x78] sm:$0xff] }
  0x1a   : > { %849 = vmatprep.subr.bf16.mxu0 %v848_v19  ;;  %872 = vmatpush3.bf16.msra.mxu1 %v844_v16  ;;  %v215_v53 = vld [vmem:[%s955_s7 + $0xf0] sm:$0xff]  ;;  %v216_v55 = vld [vmem:[%s955_s7 + $0xf8] sm:$0xff] }
  0x1b   : > { %865 = vmatprep.subr.bf16.mxu1 %v848_v19 }
  0x1d   : > { %851 = vmatpush3.bf16.msra.mxu0 %v848_v19 }
  0x1e   : > { %853 = vmatprep.subr.bf16.mxu0 %v852_v22  ;;  %873 = vmatpush3.bf16.msra.mxu1 %v848_v19 }
  0x1f   : > { %866 = vmatprep.subr.bf16.mxu1 %v852_v22 }
  0x21   : > { %855 = vmatpush3.bf16.msra.mxu0 %v852_v22 }
  0x22   : > { %857 = vmatprep.subr.bf16.mxu0 %v856_v25  ;;  %874 = vmatpush3.bf16.msra.mxu1 %v852_v22 }
  0x23   : > { %867 = vmatprep.subr.bf16.mxu1 %v856_v25 }
  0x25   : > { %859 = vmatpush3.bf16.msra.mxu0 %v856_v25 }
  0x26   : > { %875 = vmatpush3.bf16.msra.mxu1 %v856_v25 }
  0x28   : > { %781 = vmatmul.mubr.f32.vlgmr.msra.gmra.mrb[0].mxu0 %v186_v26 }
  0x29   : > { %783 = vmatprep.mubr.f32.mxu0 %v187_v27  ;;  %805 = vmatmul.mubr.f32.vlgmr.msra.gmra.mrb[0].mxu1 %v202_v28 }
  0x2a   : > { %807 = vmatprep.mubr.f32.mxu1 %v203_v29 }
  0x2c   : > { %784 = vmatmul.mubr.f32.gmra.mrb[2].mxu0 %v188_v30 }
  0x2d   : > { %786 = vmatprep.mubr.f32.mxu0 %v189_v31  ;;  %808 = vmatmul.mubr.f32.gmra.mrb[2].mxu1 %v204_v32 }
  0x2e   : > { %810 = vmatprep.mubr.f32.mxu1 %v205_v33 }
  0x30   : > { %787 = vmatmul.mubr.f32.gmra.mrb[4].mxu0 %v190_v34 }
  0x31   : > { %789 = vmatprep.mubr.f32.mxu0 %v191_v35  ;;  %811 = vmatmul.mubr.f32.gmra.mrb[4].mxu1 %v206_v36 }
  0x32   : > { %813 = vmatprep.mubr.f32.mxu1 %v207_v37 }
  0x34   : > { %790 = vmatmul.mubr.f32.gmra.mrb[6].mxu0 %v192_v38 }
  0x35   : > { %792 = vmatprep.mubr.f32.mxu0 %v193_v39  ;;  %814 = vmatmul.mubr.f32.gmra.mrb[6].mxu1 %v208_v40 }
  0x36   : > { %816 = vmatprep.mubr.f32.mxu1 %v209_v41 }
  0x38   : > { %793 = vmatmul.mubr.f32.gmra.mrb[8].mxu0 %v194_v42 }
  0x39   : > { %795 = vmatprep.mubr.f32.mxu0 %v195_v43  ;;  %817 = vmatmul.mubr.f32.gmra.mrb[8].mxu1 %v210_v44 }
  0x3a   : > { %819 = vmatprep.mubr.f32.mxu1 %v211_v45 }
  0x3c   : > { %796 = vmatmul.mubr.f32.gmra.mrb[10].mxu0 %v196_v46 }
  0x3d   : > { %798 = vmatprep.mubr.f32.mxu0 %v197_v47  ;;  %820 = vmatmul.mubr.f32.gmra.mrb[10].mxu1 %v212_v48 }
  0x3e   : > { %822 = vmatprep.mubr.f32.mxu1 %v213_v49 }
  0x40   : > { %799 = vmatmul.mubr.f32.gmra.mrb[12].mxu0 %v198_v50 }
  0x41   : > { %801 = vmatprep.mubr.f32.mxu0 %v199_v51  ;;  %823 = vmatmul.mubr.f32.gmra.mrb[12].mxu1 %v214_v52 }
  0x42   : > { %825 = vmatprep.mubr.f32.mxu1 %v215_v53 }
  0x44   : > { %802 = vmatmul.mubr.f32.gmra.mrb[14].mxu0 %v200_v54 }
  0x45   : > { %826 = vmatmul.mubr.f32.gmra.mrb[14].mxu1 %v216_v55 }
  0xfb   : > { %v782_v56 = vpop.f32.mrb[0].mxu0 }
  0xfc   : > { %459 = vst [vmem:[%s1018_s30 + $0x8] sm:$0xff] %v782_v56  ;;  %v528_v57 = vmul.f32 %v782_v56, %v782_v56  ;;  %v299_v58 = vpop.f32.mrb[1].mxu0  ;;  %v1021_v59 = vpop.f32.mrb[0].mxu1 }
  0xfd   : > { %458 = vst [vmem:[%s1018_s30] sm:$0xff] %v299_v58  ;;  %v490_v60 = vadd.f32 %v782_v56, %v299_v58  ;;  %v527_v61 = vmul.f32 %v299_v58, %v299_v58  ;;  %475 = vst [vmem:[%s1018_s30 + $0x88] sm:$0xff] %v1021_v59  ;;  %v1026_v62 = vpop.f32.mrb[1].mxu1 }
  0xfe   : > { %474 = vst [vmem:[%s1018_s30 + $0x80] sm:$0xff] %v1026_v62 }
  0xff   : > { %v559_v63 = vadd.f32 %v528_v57, %v527_v61  ;;  %v785_v0 = vpop.f32.mrb[2].mxu0 }
 0x100   : > { %461 = vst [vmem:[%s1018_s30 + $0x18] sm:$0xff] %v785_v0  ;;  %v309_v1 = vpop.f32.mrb[3].mxu0  ;;  %v1031_v2 = vpop.f32.mrb[2].mxu1  ;;  %v530_v6 = vmul.f32 %v785_v0, %v785_v0 }
 0x101   : > { %460 = vst [vmem:[%s1018_s30 + $0x10] sm:$0xff] %v309_v1  ;;  %v491_v3 = vadd.f32 %v490_v60, %v309_v1  ;;  %v529_v4 = vmul.f32 %v309_v1, %v309_v1  ;;  %477 = vst [vmem:[%s1018_s30 + $0x98] sm:$0xff] %v1031_v2  ;;  %v1036_v5 = vpop.f32.mrb[3].mxu1 }
 0x102   : > { %476 = vst [vmem:[%s1018_s30 + $0x90] sm:$0xff] %v1036_v5 }
 0x103   : > { %v560_v7 = vadd.f32 %v559_v63, %v529_v4  ;;  %v788_v8 = vpop.f32.mrb[4].mxu0  ;;  %v492_v9 = vadd.f32 %v785_v0, %v491_v3 }
 0x104   : > { %463 = vst [vmem:[%s1018_s30 + $0x28] sm:$0xff] %v788_v8  ;;  %v319_v10 = vpop.f32.mrb[5].mxu0  ;;  %v1041_v11 = vpop.f32.mrb[4].mxu1  ;;  %v532_v16 = vmul.f32 %v788_v8, %v788_v8 }
 0x105   : > { %462 = vst [vmem:[%s1018_s30 + $0x20] sm:$0xff] %v319_v10  ;;  %v493_v12 = vadd.f32 %v492_v9, %v319_v10  ;;  %v531_v13 = vmul.f32 %v319_v10, %v319_v10  ;;  %v561_v14 = vadd.f32 %v560_v7, %v530_v6  ;;  %479 = vst [vmem:[%s1018_s30 + $0xa8] sm:$0xff] %v1041_v11  ;;  %v1046_v15 = vpop.f32.mrb[5].mxu1 }
 0x106   : > { %478 = vst [vmem:[%s1018_s30 + $0xa0] sm:$0xff] %v1046_v15  ;;  %v543_v9 = vmul.f32 %v1026_v62, %v1026_v62 }
 0x107   : > { %v562_v17 = vadd.f32 %v561_v14, %v531_v13  ;;  %v791_v18 = vpop.f32.mrb[6].mxu0  ;;  %v494_v19 = vadd.f32 %v788_v8, %v493_v12  ;;  %v544_v13 = vmul.f32 %v1021_v59, %v1021_v59 }
 0x108   : > { %465 = vst [vmem:[%s1018_s30 + $0x38] sm:$0xff] %v791_v18  ;;  %v329_v20 = vpop.f32.mrb[7].mxu0  ;;  %v1051_v21 = vpop.f32.mrb[6].mxu1  ;;  %v534_v26 = vmul.f32 %v791_v18, %v791_v18 }
 0x109   : > { %464 = vst [vmem:[%s1018_s30 + $0x30] sm:$0xff] %v329_v20  ;;  %v495_v22 = vadd.f32 %v494_v19, %v329_v20  ;;  %v533_v23 = vmul.f32 %v329_v20, %v329_v20  ;;  %v563_v24 = vadd.f32 %v562_v17, %v532_v16  ;;  %481 = vst [vmem:[%s1018_s30 + $0xb8] sm:$0xff] %v1051_v21  ;;  %v1056_v25 = vpop.f32.mrb[7].mxu1 }
 0x10a   : > { %480 = vst [vmem:[%s1018_s30 + $0xb0] sm:$0xff] %v1056_v25  ;;  %v545_v17 = vmul.f32 %v1036_v5, %v1036_v5  ;;  %v546_v20 = vmul.f32 %v1031_v2, %v1031_v2 }
 0x10b   : > { %v564_v27 = vadd.f32 %v563_v24, %v533_v23  ;;  %v794_v28 = vpop.f32.mrb[8].mxu0  ;;  %v496_v29 = vadd.f32 %v791_v18, %v495_v22 }
 0x10c   : > { %467 = vst [vmem:[%s1018_s30 + $0x48] sm:$0xff] %v794_v28  ;;  %v339_v30 = vpop.f32.mrb[9].mxu0  ;;  %v1061_v31 = vpop.f32.mrb[8].mxu1  ;;  %v536_v36 = vmul.f32 %v794_v28, %v794_v28 }
 0x10d   : > { %466 = vst [vmem:[%s1018_s30 + $0x40] sm:$0xff] %v339_v30  ;;  %v497_v32 = vadd.f32 %v496_v29, %v339_v30  ;;  %v535_v33 = vmul.f32 %v339_v30, %v339_v30  ;;  %v565_v34 = vadd.f32 %v564_v27, %v534_v26  ;;  %483 = vst [vmem:[%s1018_s30 + $0xc8] sm:$0xff] %v1061_v31  ;;  %v1066_v35 = vpop.f32.mrb[9].mxu1 }
 0x10e   : > { %482 = vst [vmem:[%s1018_s30 + $0xc0] sm:$0xff] %v1066_v35 }
 0x10f   : > { %v566_v37 = vadd.f32 %v565_v34, %v535_v33  ;;  %v797_v38 = vpop.f32.mrb[10].mxu0  ;;  %v498_v39 = vadd.f32 %v794_v28, %v497_v32 }
 0x110   : > { %469 = vst [vmem:[%s1018_s30 + $0x58] sm:$0xff] %v797_v38  ;;  %v349_v40 = vpop.f32.mrb[11].mxu0  ;;  %v1071_v41 = vpop.f32.mrb[10].mxu1  ;;  %v538_v46 = vmul.f32 %v797_v38, %v797_v38 }
 0x111   : > { %468 = vst [vmem:[%s1018_s30 + $0x50] sm:$0xff] %v349_v40  ;;  %v499_v42 = vadd.f32 %v498_v39, %v349_v40  ;;  %v537_v43 = vmul.f32 %v349_v40, %v349_v40  ;;  %v567_v44 = vadd.f32 %v566_v37, %v536_v36  ;;  %485 = vst [vmem:[%s1018_s30 + $0xd8] sm:$0xff] %v1071_v41  ;;  %v1076_v45 = vpop.f32.mrb[11].mxu1 }
 0x112   : > { %484 = vst [vmem:[%s1018_s30 + $0xd0] sm:$0xff] %v1076_v45 }
 0x113   : > { %v568_v47 = vadd.f32 %v567_v44, %v537_v43  ;;  %v800_v48 = vpop.f32.mrb[12].mxu0  ;;  %v500_v49 = vadd.f32 %v797_v38, %v499_v42 }
 0x114   : > { %471 = vst [vmem:[%s1018_s30 + $0x68] sm:$0xff] %v800_v48  ;;  %v359_v50 = vpop.f32.mrb[13].mxu0  ;;  %v1081_v51 = vpop.f32.mrb[12].mxu1  ;;  %v540_v56 = vmul.f32 %v800_v48, %v800_v48 }
 0x115   : > { %470 = vst [vmem:[%s1018_s30 + $0x60] sm:$0xff] %v359_v50  ;;  %v501_v52 = vadd.f32 %v500_v49, %v359_v50  ;;  %v539_v53 = vmul.f32 %v359_v50, %v359_v50  ;;  %v569_v54 = vadd.f32 %v568_v47, %v538_v46  ;;  %487 = vst [vmem:[%s1018_s30 + $0xe8] sm:$0xff] %v1081_v51  ;;  %v439_v55 = vpop.f32.mrb[13].mxu1 }
 0x116   : > { %486 = vst [vmem:[%s1018_s30 + $0xe0] sm:$0xff] %v439_v55  ;;  %v555_v43 = vmul.f32 %v439_v55, %v439_v55  ;;  %v556_v47 = vmul.f32 %v1081_v51, %v1081_v51 }
 0x117   : > { %v570_v57 = vadd.f32 %v569_v54, %v539_v53  ;;  %v803_v58 = vpop.f32.mrb[14].mxu0  ;;  %v502_v60 = vadd.f32 %v800_v48, %v501_v52 }
 0x118   : > { %473 = vst [vmem:[%s1018_s30 + $0x78] sm:$0xff] %v803_v58  ;;  %v369_v61 = vpop.f32.mrb[15].mxu0  ;;  %v827_v63 = vpop.f32.mrb[14].mxu1  ;;  %v542_v6 = vmul.f32 %v803_v58, %v803_v58 }
 0x119   : > { %472 = vst [vmem:[%s1018_s30 + $0x70] sm:$0xff] %v369_v61  ;;  %v503_v0 = vadd.f32 %v502_v60, %v369_v61  ;;  %v541_v1 = vmul.f32 %v369_v61, %v369_v61  ;;  %v571_v3 = vadd.f32 %v570_v57, %v540_v56  ;;  %489 = vst [vmem:[%s1018_s30 + $0xf8] sm:$0xff] %v827_v63  ;;  %v449_v4 = vpop.f32.mrb[15].mxu1 }
 0x11a   : > { %488 = vst [vmem:[%s1018_s30 + $0xf0] sm:$0xff] %v449_v4  ;;  %v557_v49 = vmul.f32 %v449_v4, %v449_v4  ;;  %v558_v52 = vmul.f32 %v827_v63, %v827_v63 }
 0x11b   : > { %v504_v7 = vadd.f32 %v803_v58, %v503_v0  ;;  %v572_v8 = vadd.f32 %v571_v3, %v541_v1 }
 0x11d   : > { %v573_v10 = vadd.f32 %v572_v8, %v542_v6  ;;  %v505_v12 = vadd.f32 %v504_v7, %v1026_v62  ;;  %v547_v62 = vmul.f32 %v1046_v15, %v1046_v15 }
 0x11f   : > { %v574_v14 = vadd.f32 %v573_v10, %v543_v9  ;;  %v506_v16 = vadd.f32 %v1021_v59, %v505_v12  ;;  %v548_v59 = vmul.f32 %v1041_v11, %v1041_v11 }
 0x121   : > { %v507_v18 = vadd.f32 %v506_v16, %v1036_v5  ;;  %v575_v19 = vadd.f32 %v574_v14, %v544_v13  ;;  %v549_v5 = vmul.f32 %v1056_v25, %v1056_v25 }
 0x123   : > { %v576_v22 = vadd.f32 %v575_v19, %v545_v17  ;;  %v508_v23 = vadd.f32 %v1031_v2, %v507_v18  ;;  %v550_v2 = vmul.f32 %v1051_v21, %v1051_v21 }
 0x125   : > { %v509_v24 = vadd.f32 %v508_v23, %v1046_v15  ;;  %v577_v26 = vadd.f32 %v576_v22, %v546_v20  ;;  %v551_v15 = vmul.f32 %v1066_v35, %v1066_v35 }
 0x127   : > { %v578_v27 = vadd.f32 %v577_v26, %v547_v62  ;;  %v510_v28 = vadd.f32 %v1041_v11, %v509_v24  ;;  %v552_v11 = vmul.f32 %v1061_v31, %v1061_v31 }
 0x129   : > { %v511_v29 = vadd.f32 %v510_v28, %v1056_v25  ;;  %v579_v30 = vadd.f32 %v578_v27, %v548_v59  ;;  %v553_v25 = vmul.f32 %v1076_v45, %v1076_v45 }
 0x12b   : > { %v580_v32 = vadd.f32 %v579_v30, %v549_v5  ;;  %v512_v33 = vadd.f32 %v1051_v21, %v511_v29  ;;  %v554_v21 = vmul.f32 %v1071_v41, %v1071_v41 }
 0x12d   : > { %v513_v34 = vadd.f32 %v512_v33, %v1066_v35  ;;  %v581_v36 = vadd.f32 %v580_v32, %v550_v2 }
 0x12f   : > { %v582_v37 = vadd.f32 %v581_v36, %v551_v15  ;;  %v514_v38 = vadd.f32 %v1061_v31, %v513_v34 }
 0x131   : > { %v515_v39 = vadd.f32 %v514_v38, %v1076_v45  ;;  %v583_v40 = vadd.f32 %v582_v37, %v552_v11 }
 0x133   : > { %v584_v42 = vadd.f32 %v583_v40, %v553_v25  ;;  %v516_v35 = vadd.f32 %v1071_v41, %v515_v39 }
 0x135   : > { %v517_v44 = vadd.f32 %v516_v35, %v439_v55  ;;  %v585_v46 = vadd.f32 %v584_v42, %v554_v21 }
 0x137   : > { %v586_v31 = vadd.f32 %v585_v46, %v555_v43  ;;  %v518_v48 = vadd.f32 %v1081_v51, %v517_v44 }
 0x139   : > { %v519_v45 = vadd.f32 %v518_v48, %v449_v4  ;;  %v587_v50 = vadd.f32 %v586_v31, %v556_v47 }
 0x13b   : > { %v520_v53 = vadd.f32 %v827_v63, %v519_v45  ;;  %v588_v54 = vadd.f32 %v587_v50, %v557_v49 }
 0x13d   : > { %v521_v56 = vrot.slane %v520_v53, 4  ;;  %v589_v57 = vadd.f32 %v588_v54, %v558_v52 }
 0x13f   : > { %v522_v41 = vadd.f32 %v521_v56, %v520_v53  ;;  %v590_v58 = vrot.slane %v589_v57, 4 }
 0x141   : > { %v523_v55 = vrot.slane %v522_v41, 2  ;;  %v591_v60 = vadd.f32 %v590_v58, %v589_v57 }
 0x143   : > { %v524_v61 = vadd.f32 %v523_v55, %v522_v41  ;;  %v592_v0 = vrot.slane %v591_v60, 2 }
 0x145   : > { %v525_v1 = vrot.slane %v524_v61, 1  ;;  %v593_v3 = vadd.f32 %v592_v0, %v591_v60 }
 0x147   : > { %v594_v51 = vrot.slane %v593_v3, 1  ;;  %v526_v4 = vadd.f32 %v525_v1, %v524_v61 }
 0x149   : > { %v595_v6 = vadd.f32 %v594_v51, %v593_v3 }
 0x14b   : > { %v597_v63 = vsel %vm596_vm0, %v526_v4, %v595_v6 }
 0x14c   : > { %v599_v7 = vsel %vm598_vm1, %v597_v63, 0.0 }
 0x14d   : > { %600 = vst [vmem:[%s184_s5] sm:$0xff] %v599_v7 }
 0x14e PF: > { %s14_s12 = sadd.s32 1, %s890_s12  }
 0x14f   : > { %p11_p5 = scmp.ge.s32.totalorder %s14_s12, 4  }
 0x151   :  { %13 = sbr.rel (!%p11_p5) target bundleno = 1 (0x1), region = 70 }

// kernel: residual_block.7
= control target key start
LH: loop header
LB: loop body
LE: loop exit
PB: predicated region body
PF: predicated region fallthrough
CT: control target
= control target key end

     0   :  { %s729_s21 = smov 0   ;;  %s1004_s0 = inlined_call_operand.vmem [shape: f32[512,128], index: 0, kind: input, shape index: {}]   ;;  %s1005_s1 = inlined_call_operand.vmem [shape: f32[512,128], index: 1, kind: input, shape index: {}]   ;;  %s1006_s2 = inlined_call_operand.vmem [shape: f32[1,128], index: 2, kind: input, shape index: {}]   ;;  %s1007_s3 = inlined_call_operand.vmem [shape: f32[1,128], index: 3, kind: input, shape index: {}]   ;;  %s1008_s4 = inlined_call_operand.vmem [shape: f32[1,128], index: 4, kind: input, shape index: {}]   ;;  %s1009_s5 = inlined_call_operand.vmem [shape: f32[1,128], index: 5, kind: input, shape index: {}]   ;;  %s1010_s6 = inlined_call_operand.vmem [shape: f32[512,128], index: 6, kind: output, shape index: {}]  }
   0x1 LB: > { %s661_s22 = sadd.s32 4294967295, %s692_s21   ;;  %p665_p0 = scmp.ge.s32.totalorder %s692_s21, 1  ;;  %s692_s21 = sphi %s729_s21, %s16_s21  }
   0x2   : > { %p224_p1 = scmp.lt.s32.totalorder %s692_s21, 3 }
   0x4   : > { %p225_p2 = pnand %p665_p0, %p224_p1 }
   0x5   : > { %s666_s23 = sshll.u32 (!%p225_p2), %s661_s22, 5  ;;  %v742_v0 = vld [vmem:[%s1006_s2] ss:$0 sm:$0xff] (!%p225_p2) }
   0x6   : > { %228 = sbr.rel (%p225_p2) target bundleno = 72 (0x48), region = 44  ;;  %p260_p3 = scmp.lt.s32.totalorder (!%p225_p2), %s666_s23, 63  ;;  %v747_v1 = vld [vmem:[%s1008_s4] ss:$0 sm:$0xff] (!%p225_p2) }
   0x7   : > { %v764_v2 = vld [vmem:[%s1007_s3] ss:$0 sm:$0xff] (!%p225_p2) }
   0x8   : > { %v791_v25 = vld [vmem:[%s1009_s5] ss:$0 sm:$0xff] (!%p225_p2) }
   0xd   : > { %s1012_s23 = smov (!%p260_p3, %s666_s23), 63 }
   0xe   : > { %s737_s24 = sshll.u32 %s1012_s23, 3 }
   0xf   : > { %s753_s7 = scalar_lea.vmem %s1004_s0, %s737_s24  ;;  %s759_s10 = scalar_lea.vmem %s1005_s1, %s737_s24 }
  0x10   : > { %v277_v3 = vld [vmem:[%s753_s7] sm:$0xff]  ;;  %v278_v5 = vld [vmem:[%s753_s7 + $0x8] sm:$0xff]  ;;  %v279_v10 = vld [vmem:[%s753_s7 + $0x10] sm:$0xff]  ;;  %s812_s17 = scalar_lea.vmem %s1010_s6, %s737_s24 }
  0x11   : > { %v387_v4 = vld [vmem:[%s759_s10] sm:$0xff]  ;;  %v316_v6 = vmul.f32 %v742_v0, %v277_v3  ;;  %v317_v8 = vmul.f32 %v742_v0, %v278_v5  ;;  %v388_v9 = vld [vmem:[%s759_s10 + $0x8] sm:$0xff]  ;;  %v389_v11 = vld [vmem:[%s759_s10 + $0x10] sm:$0xff]  ;;  %v318_v13 = vmul.f32 %v742_v0, %v279_v10 }
  0x12   : > { %v426_v7 = vmul.f32 %v747_v1, %v387_v4  ;;  %v427_v12 = vmul.f32 %v747_v1, %v388_v9  ;;  %v428_v14 = vmul.f32 %v747_v1, %v389_v11  ;;  %v280_v15 = vld [vmem:[%s753_s7 + $0x18] sm:$0xff]  ;;  %v281_v17 = vld [vmem:[%s753_s7 + $0x20] sm:$0xff]  ;;  %v282_v23 = vld [vmem:[%s753_s7 + $0x28] sm:$0xff] }
  0x13   : > { %v390_v16 = vld [vmem:[%s759_s10 + $0x18] sm:$0xff]  ;;  %v355_v18 = vadd.f32 %v764_v2, %v316_v6  ;;  %v356_v19 = vadd.f32 %v764_v2, %v317_v8  ;;  %v319_v20 = vmul.f32 %v742_v0, %v280_v15  ;;  %v391_v22 = vld [vmem:[%s759_s10 + $0x20] sm:$0xff]  ;;  %v392_v24 = vld [vmem:[%s759_s10 + $0x28] sm:$0xff]  ;;  %v357_v26 = vadd.f32 %v764_v2, %v318_v13 }
  0x14   : > { %v429_v21 = vmul.f32 %v747_v1, %v390_v16  ;;  %v320_v27 = vmul.f32 %v742_v0, %v281_v17  ;;  %v430_v28 = vmul.f32 %v747_v1, %v391_v22  ;;  %v321_v29 = vmul.f32 %v742_v0, %v282_v23  ;;  %v283_v30 = vld [vmem:[%s753_s7 + $0x30] sm:$0xff]  ;;  %v284_v40 = vld [vmem:[%s753_s7 + $0x38] sm:$0xff]  ;;  %v285_v50 = vld [vmem:[%s753_s7 + $0x40] sm:$0xff] }
  0x15   : > { %v393_v31 = vld [vmem:[%s759_s10 + $0x30] sm:$0xff]  ;;  %v458_v32 = vadd.f32 %v426_v7, %v355_v18  ;;  %v459_v33 = vadd.f32 %v427_v12, %v356_v19  ;;  %v358_v34 = vadd.f32 %v764_v2, %v319_v20  ;;  %v431_v35 = vmul.f32 %v747_v1, %v392_v24  ;;  %v394_v49 = vld [vmem:[%s759_s10 + $0x38] sm:$0xff]  ;;  %v395_v55 = vld [vmem:[%s759_s10 + $0x40] sm:$0xff] }
  0x16   : > { %v460_v36 = vadd.f32 %v428_v14, %v357_v26  ;;  %v359_v37 = vadd.f32 %v764_v2, %v320_v27  ;;  %v360_v38 = vadd.f32 %v764_v2, %v321_v29  ;;  %v322_v39 = vmul.f32 %v742_v0, %v283_v30  ;;  %v286_v60 = vld [vmem:[%s753_s7 + $0x48] sm:$0xff]  ;;  %v287_v5 = vld [vmem:[%s753_s7 + $0x50] sm:$0xff]  ;;  %v288_v7 = vld [vmem:[%s753_s7 + $0x58] sm:$0xff] }
  0x17   : > { %v497_v41 = vadd.f32 %v791_v25, %v458_v32  ;;  %v498_v42 = vadd.f32 %v791_v25, %v459_v33  ;;  %v461_v43 = vadd.f32 %v429_v21, %v358_v34  ;;  %v432_v44 = vmul.f32 %v747_v1, %v393_v31  ;;  %v396_v61 = vld [vmem:[%s759_s10 + $0x48] sm:$0xff]  ;;  %v397_v6 = vld [vmem:[%s759_s10 + $0x50] sm:$0xff]  ;;  %v398_v12 = vld [vmem:[%s759_s10 + $0x58] sm:$0xff] }
  0x18   : > { %v499_v45 = vadd.f32 %v791_v25, %v460_v36  ;;  %v462_v46 = vadd.f32 %v430_v28, %v359_v37  ;;  %v463_v47 = vadd.f32 %v431_v35, %v360_v38  ;;  %v361_v48 = vadd.f32 %v764_v2, %v322_v39  ;;  %v289_v17 = vld [vmem:[%s753_s7 + $0x60] sm:$0xff]  ;;  %v290_v23 = vld [vmem:[%s753_s7 + $0x68] sm:$0xff]  ;;  %v291_v34 = vld [vmem:[%s753_s7 + $0x70] sm:$0xff] }
  0x19   : > { %v529_v51 = vmax.f32 %v497_v41, 0.0  ;;  %v530_v52 = vmax.f32 %v498_v42, 0.0  ;;  %v500_v53 = vadd.f32 %v791_v25, %v461_v43  ;;  %v323_v54 = vmul.f32 %v742_v0, %v284_v40  ;;  %v399_v18 = vld [vmem:[%s759_s10 + $0x60] sm:$0xff]  ;;  %v400_v29 = vld [vmem:[%s759_s10 + $0x68] sm:$0xff]  ;;  %v401_v39 = vld [vmem:[%s759_s10 + $0x70] sm:$0xff] }
  0x1a   : > { %v531_v56 = vmax.f32 %v499_v45, 0.0  ;;  %v501_v57 = vadd.f32 %v791_v25, %v462_v46  ;;  %v502_v58 = vadd.f32 %v791_v25, %v463_v47  ;;  %v464_v59 = vadd.f32 %v432_v44, %v361_v48  ;;  %v292_v44 = vld [vmem:[%s753_s7 + $0x78] sm:$0xff] }
  0x1b   : > { %561 = vst [vmem:[%s812_s17] sm:$0xff] %v529_v51  ;;  %562 = vst [vmem:[%s812_s17 + $0x8] sm:$0xff] %v530_v52  ;;  %v532_v62 = vmax.f32 %v500_v53, 0.0  ;;  %v362_v63 = vadd.f32 %v764_v2, %v323_v54  ;;  %v433_v3 = vmul.f32 %v747_v1, %v394_v49  ;;  %v324_v4 = vmul.f32 %v742_v0, %v285_v50  ;;  %v402_v49 = vld [vmem:[%s759_s10 + $0x78] sm:$0xff]  ;;  %v293_v54 = vld [vmem:[%s753_s7 + $0x80] sm:$0xff] }
  0x1c   : > { %563 = vst [vmem:[%s812_s17 + $0x10] sm:$0xff] %v531_v56  ;;  %v533_v8 = vmax.f32 %v501_v57, 0.0  ;;  %v534_v9 = vmax.f32 %v502_v58, 0.0  ;;  %v503_v10 = vadd.f32 %v791_v25, %v464_v59  ;;  %v434_v11 = vmul.f32 %v747_v1, %v395_v55  ;;  %v403_v59 = vld [vmem:[%s759_s10 + $0x80] sm:$0xff] }
  0x1d   : > { %564 = vst [vmem:[%s812_s17 + $0x18] sm:$0xff] %v532_v62  ;;  %v465_v13 = vadd.f32 %v433_v3, %v362_v63  ;;  %v363_v14 = vadd.f32 %v764_v2, %v324_v4  ;;  %v325_v15 = vmul.f32 %v742_v0, %v286_v60  ;;  %v435_v16 = vmul.f32 %v747_v1, %v396_v61  ;;  %v294_v60 = vld [vmem:[%s753_s7 + $0x88] sm:$0xff] }
  0x1e   : > { %565 = vst [vmem:[%s812_s17 + $0x20] sm:$0xff] %v533_v8  ;;  %566 = vst [vmem:[%s812_s17 + $0x28] sm:$0xff] %v534_v9  ;;  %v535_v19 = vmax.f32 %v503_v10, 0.0  ;;  %v326_v20 = vmul.f32 %v742_v0, %v287_v5  ;;  %v436_v21 = vmul.f32 %v747_v1, %v397_v6  ;;  %v327_v22 = vmul.f32 %v742_v0, %v288_v7  ;;  %v404_v61 = vld [vmem:[%s759_s10 + $0x88] sm:$0xff]  ;;  %v295_v9 = vld [vmem:[%s753_s7 + $0x90] sm:$0xff] }
  0x1f   : > { %v504_v24 = vadd.f32 %v791_v25, %v465_v13  ;;  %v466_v26 = vadd.f32 %v434_v11, %v363_v14  ;;  %v364_v27 = vadd.f32 %v764_v2, %v325_v15  ;;  %v437_v28 = vmul.f32 %v747_v1, %v398_v12  ;;  %v405_v10 = vld [vmem:[%s759_s10 + $0x90] sm:$0xff]  ;;  %v296_v11 = vld [vmem:[%s753_s7 + $0x98] sm:$0xff] }
  0x20   : > { %567 = vst [vmem:[%s812_s17 + $0x30] sm:$0xff] %v535_v19  ;;  %v365_v30 = vadd.f32 %v764_v2, %v326_v20  ;;  %v366_v31 = vadd.f32 %v764_v2, %v327_v22  ;;  %v328_v32 = vmul.f32 %v742_v0, %v289_v17  ;;  %v438_v33 = vmul.f32 %v747_v1, %v399_v18 }
  0x21   : > { %v536_v35 = vmax.f32 %v504_v24, 0.0  ;;  %v505_v36 = vadd.f32 %v791_v25, %v466_v26  ;;  %v467_v37 = vadd.f32 %v435_v16, %v364_v27  ;;  %v329_v38 = vmul.f32 %v742_v0, %v290_v23  ;;  %v406_v16 = vld [vmem:[%s759_s10 + $0x98] sm:$0xff]  ;;  %v407_v27 = vld [vmem:[%s759_s10 + $0xa0] sm:$0xff] }
  0x22   : > { %v468_v40 = vadd.f32 %v436_v21, %v365_v30  ;;  %v469_v41 = vadd.f32 %v437_v28, %v366_v31  ;;  %v367_v42 = vadd.f32 %v764_v2, %v328_v32  ;;  %v439_v43 = vmul.f32 %v747_v1, %v400_v29  ;;  %v297_v21 = vld [vmem:[%s753_s7 + $0xa0] sm:$0xff]  ;;  %v298_v28 = vld [vmem:[%s753_s7 + $0xa8] sm:$0xff] }
  0x23   : > { %568 = vst [vmem:[%s812_s17 + $0x38] sm:$0xff] %v536_v35  ;;  %v537_v45 = vmax.f32 %v505_v36, 0.0  ;;  %v506_v46 = vadd.f32 %v791_v25, %v467_v37  ;;  %v368_v47 = vadd.f32 %v764_v2, %v329_v38  ;;  %v330_v48 = vmul.f32 %v742_v0, %v291_v34  ;;  %v408_v37 = vld [vmem:[%s759_s10 + $0xa8] sm:$0xff]  ;;  %v299_v38 = vld [vmem:[%s753_s7 + $0xb0] sm:$0xff] }
  0x24   : > { %v507_v50 = vadd.f32 %v791_v25, %v468_v40  ;;  %v508_v51 = vadd.f32 %v791_v25, %v469_v41  ;;  %v470_v52 = vadd.f32 %v438_v33, %v367_v42  ;;  %v440_v53 = vmul.f32 %v747_v1, %v401_v39 }
  0x25   : > { %569 = vst [vmem:[%s812_s17 + $0x40] sm:$0xff] %v537_v45  ;;  %v538_v55 = vmax.f32 %v506_v46, 0.0  ;;  %v471_v56 = vadd.f32 %v439_v43, %v368_v47  ;;  %v369_v57 = vadd.f32 %v764_v2, %v330_v48  ;;  %v331_v58 = vmul.f32 %v742_v0, %v292_v44  ;;  %v409_v47 = vld [vmem:[%s759_s10 + $0xb0] sm:$0xff]  ;;  %v300_v48 = vld [vmem:[%s753_s7 + $0xb8] sm:$0xff] }
  0x26   : > { %v539_v62 = vmax.f32 %v507_v50, 0.0  ;;  %v540_v63 = vmax.f32 %v508_v51, 0.0  ;;  %v509_v3 = vadd.f32 %v791_v25, %v470_v52  ;;  %v441_v4 = vmul.f32 %v747_v1, %v402_v49 }
  0x27   : > { %570 = vst [vmem:[%s812_s17 + $0x48] sm:$0xff] %v538_v55  ;;  %v510_v5 = vadd.f32 %v791_v25, %v471_v56  ;;  %v472_v6 = vadd.f32 %v440_v53, %v369_v57  ;;  %v370_v7 = vadd.f32 %v764_v2, %v331_v58  ;;  %v332_v8 = vmul.f32 %v742_v0, %v293_v54  ;;  %v410_v53 = vld [vmem:[%s759_s10 + $0xb8] sm:$0xff]  ;;  %v301_v58 = vld [vmem:[%s753_s7 + $0xc0] sm:$0xff] }
  0x28   : > { %571 = vst [vmem:[%s812_s17 + $0x50] sm:$0xff] %v539_v62  ;;  %572 = vst [vmem:[%s812_s17 + $0x58] sm:$0xff] %v540_v63  ;;  %v541_v12 = vmax.f32 %v509_v3, 0.0  ;;  %v442_v13 = vmul.f32 %v747_v1, %v403_v59  ;;  %v333_v14 = vmul.f32 %v742_v0, %v294_v60  ;;  %v443_v15 = vmul.f32 %v747_v1, %v404_v61  ;;  %v411_v63 = vld [vmem:[%s759_s10 + $0xc0] sm:$0xff]  ;;  %v302_v3 = vld [vmem:[%s753_s7 + $0xc8] sm:$0xff] }
  0x29   : > { %v542_v17 = vmax.f32 %v510_v5, 0.0  ;;  %v511_v18 = vadd.f32 %v791_v25, %v472_v6  ;;  %v473_v19 = vadd.f32 %v441_v4, %v370_v7  ;;  %v371_v20 = vadd.f32 %v764_v2, %v332_v8  ;;  %v412_v4 = vld [vmem:[%s759_s10 + $0xc8] sm:$0xff] }
  0x2a   : > { %573 = vst [vmem:[%s812_s17 + $0x60] sm:$0xff] %v541_v12  ;;  %v372_v22 = vadd.f32 %v764_v2, %v333_v14  ;;  %v334_v23 = vmul.f32 %v742_v0, %v295_v9  ;;  %v444_v24 = vmul.f32 %v747_v1, %v405_v10  ;;  %v335_v26 = vmul.f32 %v742_v0, %v296_v11  ;;  %v413_v14 = vld [vmem:[%s759_s10 + $0xd0] sm:$0xff] }
  0x2b   : > { %574 = vst [vmem:[%s812_s17 + $0x68] sm:$0xff] %v542_v17  ;;  %v543_v29 = vmax.f32 %v511_v18, 0.0  ;;  %v512_v30 = vadd.f32 %v791_v25, %v473_v19  ;;  %v474_v31 = vadd.f32 %v442_v13, %v371_v20  ;;  %v445_v32 = vmul.f32 %v747_v1, %v406_v16  ;;  %v303_v13 = vld [vmem:[%s753_s7 + $0xd0] sm:$0xff]  ;;  %v414_v20 = vld [vmem:[%s759_s10 + $0xd8] sm:$0xff] }
  0x2c   : > { %v475_v33 = vadd.f32 %v443_v15, %v372_v22  ;;  %v373_v34 = vadd.f32 %v764_v2, %v334_v23  ;;  %v374_v35 = vadd.f32 %v764_v2, %v335_v26  ;;  %v336_v36 = vmul.f32 %v742_v0, %v297_v21  ;;  %v304_v15 = vld [vmem:[%s753_s7 + $0xd8] sm:$0xff]  ;;  %v305_v26 = vld [vmem:[%s753_s7 + $0xe0] sm:$0xff] }
  0x2d   : > { %575 = vst [vmem:[%s812_s17 + $0x70] sm:$0xff] %v543_v29  ;;  %v544_v39 = vmax.f32 %v512_v30, 0.0  ;;  %v513_v40 = vadd.f32 %v791_v25, %v474_v31  ;;  %v446_v41 = vmul.f32 %v747_v1, %v407_v27  ;;  %v337_v42 = vmul.f32 %v742_v0, %v298_v28  ;;  %v415_v31 = vld [vmem:[%s759_s10 + $0xe0] sm:$0xff] }
  0x2e   : > { %v514_v43 = vadd.f32 %v791_v25, %v475_v33  ;;  %v476_v44 = vadd.f32 %v444_v24, %v373_v34  ;;  %v477_v45 = vadd.f32 %v445_v32, %v374_v35  ;;  %v375_v46 = vadd.f32 %v764_v2, %v336_v36  ;;  %v306_v32 = vld [vmem:[%s753_s7 + $0xe8] sm:$0xff] }
  0x2f   : > { %576 = vst [vmem:[%s812_s17 + $0x78] sm:$0xff] %v544_v39  ;;  %v545_v49 = vmax.f32 %v513_v40, 0.0  ;;  %v376_v50 = vadd.f32 %v764_v2, %v337_v42  ;;  %v447_v51 = vmul.f32 %v747_v1, %v408_v37  ;;  %v338_v52 = vmul.f32 %v742_v0, %v299_v38  ;;  %v307_v42 = vld [vmem:[%s753_s7 + $0xf0] sm:$0xff] }
  0x30   : > { %v546_v54 = vmax.f32 %v514_v43, 0.0  ;;  %v515_v55 = vadd.f32 %v791_v25, %v476_v44  ;;  %v516_v56 = vadd.f32 %v791_v25, %v477_v45  ;;  %v478_v57 = vadd.f32 %v446_v41, %v375_v46  ;;  %v416_v41 = vld [vmem:[%s759_s10 + $0xe8] sm:$0xff] }
  0x31   : > { %577 = vst [vmem:[%s812_s17 + $0x80] sm:$0xff] %v545_v49  ;;  %v479_v59 = vadd.f32 %v447_v51, %v376_v50  ;;  %v377_v60 = vadd.f32 %v764_v2, %v338_v52  ;;  %v448_v61 = vmul.f32 %v747_v1, %v409_v47  ;;  %v339_v62 = vmul.f32 %v742_v0, %v300_v48  ;;  %v417_v51 = vld [vmem:[%s759_s10 + $0xf0] sm:$0xff]  ;;  %v308_v52 = vld [vmem:[%s753_s7 + $0xf8] sm:$0xff] }
  0x32   : > { %578 = vst [vmem:[%s812_s17 + $0x88] sm:$0xff] %v546_v54  ;;  %v547_v5 = vmax.f32 %v515_v55, 0.0  ;;  %v548_v6 = vmax.f32 %v516_v56, 0.0  ;;  %v517_v7 = vadd.f32 %v791_v25, %v478_v57  ;;  %v449_v8 = vmul.f32 %v747_v1, %v410_v53  ;;  %v418_v57 = vld [vmem:[%s759_s10 + $0xf8] sm:$0xff] }
  0x33   : > { %v518_v9 = vadd.f32 %v791_v25, %v479_v59  ;;  %v480_v10 = vadd.f32 %v448_v61, %v377_v60  ;;  %v378_v11 = vadd.f32 %v764_v2, %v339_v62  ;;  %v340_v12 = vmul.f32 %v742_v0, %v301_v58 }
  0x34   : > { %579 = vst [vmem:[%s812_s17 + $0x90] sm:$0xff] %v547_v5  ;;  %580 = vst [vmem:[%s812_s17 + $0x98] sm:$0xff] %v548_v6  ;;  %v549_v16 = vmax.f32 %v517_v7, 0.0  ;;  %v450_v17 = vmul.f32 %v747_v1, %v411_v63  ;;  %v341_v18 = vmul.f32 %v742_v0, %v302_v3  ;;  %v451_v19 = vmul.f32 %v747_v1, %v412_v4 }
  0x35   : > { %v550_v21 = vmax.f32 %v518_v9, 0.0  ;;  %v519_v22 = vadd.f32 %v791_v25, %v480_v10  ;;  %v481_v23 = vadd.f32 %v449_v8, %v378_v11  ;;  %v379_v24 = vadd.f32 %v764_v2, %v340_v12 }
  0x36   : > { %581 = vst [vmem:[%s812_s17 + $0xa0] sm:$0xff] %v549_v16  ;;  %v380_v27 = vadd.f32 %v764_v2, %v341_v18  ;;  %v342_v28 = vmul.f32 %v742_v0, %v303_v13  ;;  %v452_v29 = vmul.f32 %v747_v1, %v413_v14  ;;  %v343_v30 = vmul.f32 %v742_v0, %v304_v15 }
  0x37   : > { %582 = vst [vmem:[%s812_s17 + $0xa8] sm:$0xff] %v550_v21  ;;  %v551_v33 = vmax.f32 %v519_v22, 0.0  ;;  %v520_v34 = vadd.f32 %v791_v25, %v481_v23  ;;  %v482_v35 = vadd.f32 %v450_v17, %v379_v24  ;;  %v453_v36 = vmul.f32 %v747_v1, %v414_v20 }
  0x38   : > { %v483_v37 = vadd.f32 %v451_v19, %v380_v27  ;;  %v381_v38 = vadd.f32 %v764_v2, %v342_v28  ;;  %v382_v39 = vadd.f32 %v764_v2, %v343_v30  ;;  %v344_v40 = vmul.f32 %v742_v0, %v305_v26 }
  0x39   : > { %583 = vst [vmem:[%s812_s17 + $0xb0] sm:$0xff] %v551_v33  ;;  %v552_v43 = vmax.f32 %v520_v34, 0.0  ;;  %v521_v44 = vadd.f32 %v791_v25, %v482_v35  ;;  %v454_v45 = vmul.f32 %v747_v1, %v415_v31  ;;  %v345_v46 = vmul.f32 %v742_v0, %v306_v32 }
  0x3a   : > { %v522_v47 = vadd.f32 %v791_v25, %v483_v37  ;;  %v484_v48 = vadd.f32 %v452_v29, %v381_v38  ;;  %v485_v49 = vadd.f32 %v453_v36, %v382_v39  ;;  %v383_v50 = vadd.f32 %v764_v2, %v344_v40 }
  0x3b   : > { %584 = vst [vmem:[%s812_s17 + $0xb8] sm:$0xff] %v552_v43  ;;  %v553_v53 = vmax.f32 %v521_v44, 0.0  ;;  %v384_v54 = vadd.f32 %v764_v2, %v345_v46  ;;  %v455_v55 = vmul.f32 %v747_v1, %v416_v41  ;;  %v346_v56 = vmul.f32 %v742_v0, %v307_v42 }
  0x3c   : > { %v554_v58 = vmax.f32 %v522_v47, 0.0  ;;  %v523_v59 = vadd.f32 %v791_v25, %v484_v48  ;;  %v524_v60 = vadd.f32 %v791_v25, %v485_v49  ;;  %v486_v61 = vadd.f32 %v454_v45, %v383_v50 }
  0x3d   : > { %585 = vst [vmem:[%s812_s17 + $0xc0] sm:$0xff] %v553_v53  ;;  %v487_v62 = vadd.f32 %v455_v55, %v384_v54  ;;  %v385_v63 = vadd.f32 %v764_v2, %v346_v56  ;;  %v456_v3 = vmul.f32 %v747_v1, %v417_v51  ;;  %v347_v4 = vmul.f32 %v742_v0, %v308_v52 }
  0x3e   : > { %586 = vst [vmem:[%s812_s17 + $0xc8] sm:$0xff] %v554_v58  ;;  %v555_v5 = vmax.f32 %v523_v59, 0.0  ;;  %v556_v6 = vmax.f32 %v524_v60, 0.0  ;;  %v525_v7 = vadd.f32 %v791_v25, %v486_v61  ;;  %v457_v8 = vmul.f32 %v747_v1, %v418_v57 }
  0x3f   : > { %v526_v9 = vadd.f32 %v791_v25, %v487_v62  ;;  %v488_v10 = vadd.f32 %v456_v3, %v385_v63  ;;  %v386_v11 = vadd.f32 %v764_v2, %v347_v4 }
  0x40   : > { %587 = vst [vmem:[%s812_s17 + $0xd0] sm:$0xff] %v555_v5  ;;  %588 = vst [vmem:[%s812_s17 + $0xd8] sm:$0xff] %v556_v6  ;;  %v557_v12 = vmax.f32 %v525_v7, 0.0 }
  0x41   : > { %v558_v13 = vmax.f32 %v526_v9, 0.0  ;;  %v527_v0 = vadd.f32 %v791_v25, %v488_v10  ;;  %v489_v14 = vadd.f32 %v457_v8, %v386_v11 }
  0x42   : > { %589 = vst [vmem:[%s812_s17 + $0xe0] sm:$0xff] %v557_v12 }
  0x43   : > { %590 = vst [vmem:[%s812_s17 + $0xe8] sm:$0xff] %v558_v13  ;;  %v559_v15 = vmax.f32 %v527_v0, 0.0  ;;  %v528_v16 = vadd.f32 %v791_v25, %v489_v14 }
  0x45   : > { %591 = vst [vmem:[%s812_s17 + $0xf0] sm:$0xff] %v559_v15  ;;  %v560_v1 = vmax.f32 %v528_v16, 0.0 }
  0x47   : > { %592 = vst [vmem:[%s812_s17 + $0xf8] sm:$0xff] %v560_v1 }
  0x48 PF: > { %s16_s21 = sadd.s32 1, %s692_s21  }
  0x49   : > { %p13_p4 = scmp.ge.s32.totalorder %s16_s21, 4  }
  0x4b   :  { %15 = sbr.rel (!%p13_p4) target bundleno = 1 (0x1), region = 77 }

// kernel: residual_block.6
= control target key start
LH: loop header
LB: loop body
LE: loop exit
PB: predicated region body
PF: predicated region fallthrough
CT: control target
= control target key end

     0   :  { %s2129_s30 = smov 0   ;;  %s2789_s0 = inlined_call_operand.vmem [shape: f32[512,128], index: 0, kind: input, shape index: {}]   ;;  %s2790_s1 = inlined_call_operand.vmem [shape: f32[1,128], index: 1, kind: input, shape index: {}]   ;;  %s2791_s2 = inlined_call_operand.vmem [shape: f32[1,128], index: 2, kind: input, shape index: {}]   ;;  %s2792_s3 = inlined_call_operand.vmem [shape: f32[128,128], index: 3, kind: input, shape index: {}]   ;;  %s2793_s4 = inlined_call_operand.vmem [shape: f32[512,128], index: 4, kind: input, shape index: {}]   ;;  %s2794_s5 = inlined_call_operand.vmem [shape: f32[128,128], index: 5, kind: input, shape index: {}]   ;;  %s2795_s6 = inlined_call_operand.vmem [shape: f32[512,128], index: 6, kind: output, shape index: {0}]   ;;  %s2796_s7 = inlined_call_operand.vmem [shape: f32[2,8,128], index: 7, kind: output, shape index: {1}]   ;;  %s2797_s8 = inlined_call_operand.vmem [shape: f32[512,128], index: 8, kind: output, shape index: {2}]   ;;  %s2798_s9 = inlined_call_operand.vmem [shape: f32[2,8,128], index: 9, kind: output, shape index: {3}]  }
   0x1 LB: > { %s2135_s10 = sadd.s32 4294967295, %s2077_s30   ;;  %p1727_p0 = scmp.ge.s32.totalorder %s2077_s30, 1  ;;  %s2077_s30 = sphi %s2129_s30, %s20_s30  }
   0x2   : > { %p306_p1 = scmp.lt.s32.totalorder %s2077_s30, 3 }
   0x4   : > { %p307_p2 = pnand %p1727_p0, %p306_p1 }
   0x5   : > { %v633_v0 = vld [vmem:[%s2792_s3] sm:$0xff] (!%p307_p2)  ;;  %v634_v1 = vld [vmem:[%s2792_s3 + $0x8] sm:$0xff] (!%p307_p2)  ;;  %s1728_s17 = sshll.u32 (!%p307_p2), %s2135_s10, 5  ;;  %v635_v5 = vld [vmem:[%s2792_s3 + $0x10] sm:$0xff] (!%p307_p2)  ;;  %p378_p4 = scmp.lt.s32.totalorder (!%p307_p2), %s2135_s10, 1 }
   0x6   : > { %310 = sbr.rel (%p307_p2) target bundleno = 339 (0x153), region = 44  ;;  %v1145_v2 = vld [vmem:[%s2794_s5] sm:$0xff] (!%p307_p2)  ;;  %v1999_v3 = vpack.c.bf16 (!%p307_p2), %v634_v1, %v633_v0  ;;  %v1146_v4 = vld [vmem:[%s2794_s5 + $0x8] sm:$0xff] (!%p307_p2)  ;;  %v636_v6 = vld [vmem:[%s2792_s3 + $0x18] sm:$0xff] (!%p307_p2)  ;;  %p361_p3 = scmp.lt.s32.totalorder (!%p307_p2), %s1728_s17, 63 }
   0x7   : > { %v2031_v7 = vpack.c.bf16 (!%p307_p2), %v1146_v4, %v1145_v2  ;;  %v2003_v8 = vpack.c.bf16 (!%p307_p2), %v636_v6, %v635_v5  ;;  %v1147_v9 = vld [vmem:[%s2794_s5 + $0x10] sm:$0xff] (!%p307_p2)  ;;  %v1148_v10 = vld [vmem:[%s2794_s5 + $0x18] sm:$0xff] (!%p307_p2)  ;;  %v637_v11 = vld [vmem:[%s2792_s3 + $0x20] sm:$0xff] (!%p307_p2) }
   0x8   : > { %2000 = vmatprep.subr.bf16.mxu0 (!%p307_p2), %v1999_v3  ;;  %v2035_v12 = vpack.c.bf16 (!%p307_p2), %v1148_v10, %v1147_v9  ;;  %v638_v13 = vld [vmem:[%s2792_s3 + $0x28] sm:$0xff] (!%p307_p2)  ;;  %v1149_v14 = vld [vmem:[%s2794_s5 + $0x20] sm:$0xff] (!%p307_p2)  ;;  %v639_v18 = vld [vmem:[%s2792_s3 + $0x30] sm:$0xff] (!%p307_p2) }
   0x9   : > { %v1150_v15 = vld [vmem:[%s2794_s5 + $0x28] sm:$0xff] (!%p307_p2)  ;;  %2032 = vmatprep.subr.bf16.mxu1 (!%p307_p2), %v2031_v7  ;;  %2002 = vmatpush3.bf16.msra.mxu0 (!%p307_p2), %v1999_v3  ;;  %v2007_v16 = vpack.c.bf16 (!%p307_p2), %v638_v13, %v637_v11  ;;  %v640_v19 = vld [vmem:[%s2792_s3 + $0x38] sm:$0xff] (!%p307_p2)  ;;  %v1151_v20 = vld [vmem:[%s2794_s5 + $0x30] sm:$0xff] (!%p307_p2) }
   0xa   : > { %2034 = vmatpush3.bf16.msra.mxu1 (!%p307_p2), %v2031_v7  ;;  %2004 = vmatprep.subr.bf16.mxu0 (!%p307_p2), %v2003_v8  ;;  %v2039_v17 = vpack.c.bf16 (!%p307_p2), %v1150_v15, %v1149_v14  ;;  %v1152_v21 = vld [vmem:[%s2794_s5 + $0x38] sm:$0xff] (!%p307_p2)  ;;  %v2011_v22 = vpack.c.bf16 (!%p307_p2), %v640_v19, %v639_v18  ;;  %v641_v23 = vld [vmem:[%s2792_s3 + $0x40] sm:$0xff] (!%p307_p2)  ;;  %v642_v24 = vld [vmem:[%s2792_s3 + $0x48] sm:$0xff] (!%p307_p2) }
   0xb   : > { %2036 = vmatprep.subr.bf16.mxu1 (!%p307_p2), %v2035_v12  ;;  %v2043_v25 = vpack.c.bf16 (!%p307_p2), %v1152_v21, %v1151_v20  ;;  %v1153_v26 = vld [vmem:[%s2794_s5 + $0x40] sm:$0xff] (!%p307_p2)  ;;  %v1154_v27 = vld [vmem:[%s2794_s5 + $0x48] sm:$0xff] (!%p307_p2)  ;;  %v2015_v33 = vpack.c.bf16 (!%p307_p2), %v642_v24, %v641_v23  ;;  %v643_v35 = vld [vmem:[%s2792_s3 + $0x50] sm:$0xff] (!%p307_p2) }
   0xc   : > { %v2218_v29 = vld [vmem:[%s2790_s1] ss:$0 sm:$0xff] (!%p307_p2)  ;;  %v2047_v34 = vpack.c.bf16 (!%p307_p2), %v1154_v27, %v1153_v26  ;;  %v644_v36 = vld [vmem:[%s2792_s3 + $0x58] sm:$0xff] (!%p307_p2)  ;;  %v1155_v38 = vld [vmem:[%s2794_s5 + $0x50] sm:$0xff] (!%p307_p2) }
   0xd   : > { %s2800_s17 = smov (!%p361_p3, %s1728_s17), 63  ;;  %2006 = vmatpush3.bf16.msra.mxu0 %v2003_v8  ;;  %v2223_v30 = vld [vmem:[%s2791_s2] ss:$0 sm:$0xff]  ;;  %v1156_v39 = vld [vmem:[%s2794_s5 + $0x58] sm:$0xff]  ;;  %v2019_v41 = vpack.c.bf16 %v644_v36, %v643_v35  ;;  %v646_v44 = vld [vmem:[%s2792_s3 + $0x68] sm:$0xff] }
   0xe   : > { %s2176_s18 = sshll.u32 %s2800_s17, 3  ;;  %2038 = vmatpush3.bf16.msra.mxu1 %v2035_v12  ;;  %2008 = vmatprep.subr.bf16.mxu0 %v2007_v16  ;;  %v2051_v42 = vpack.c.bf16 %v1156_v39, %v1155_v38  ;;  %v645_v43 = vld [vmem:[%s2792_s3 + $0x60] sm:$0xff]  ;;  %v1158_v46 = vld [vmem:[%s2794_s5 + $0x68] sm:$0xff]  ;;  %v647_v51 = vld [vmem:[%s2792_s3 + $0x70] sm:$0xff] }
   0xf   : > { %s2194_s28 = scalar_lea.vmem %s2789_s0, %s2176_s18  ;;  %s2200_s12 = scalar_lea.vmem %s2793_s4, %s2176_s18  ;;  %2040 = vmatprep.subr.bf16.mxu1 %v2039_v17  ;;  %v1157_v45 = vld [vmem:[%s2794_s5 + $0x60] sm:$0xff]  ;;  %v2023_v48 = vpack.c.bf16 %v646_v44, %v645_v43  ;;  %v648_v52 = vld [vmem:[%s2792_s3 + $0x78] sm:$0xff]  ;;  %v1159_v53 = vld [vmem:[%s2794_s5 + $0x70] sm:$0xff] }
  0x10   : > { %v491_v28 = vld [vmem:[%s2194_s28] sm:$0xff]  ;;  %v492_v47 = vld [vmem:[%s2194_s28 + $0x8] sm:$0xff]  ;;  %v493_v49 = vld [vmem:[%s2194_s28 + $0x10] sm:$0xff]  ;;  %v2055_v50 = vpack.c.bf16 %v1158_v46, %v1157_v45  ;;  %v2027_v58 = vpack.c.bf16 %v648_v52, %v647_v51  ;;  %s2482_s20 = scalar_lea.vmem %s2795_s6, %s2176_s18  ;;  %s2500_s23 = scalar_lea.vmem %s2797_s8, %s2176_s18 }
  0x11   : > { %v1113_v31 = vld [vmem:[%s2200_s12] sm:$0xff]  ;;  %2010 = vmatpush3.bf16.msra.mxu0 %v2007_v16  ;;  %v530_v32 = vmul.f32 %v2218_v29, %v491_v28  ;;  %v1160_v54 = vld [vmem:[%s2794_s5 + $0x78] sm:$0xff]  ;;  %v531_v55 = vmul.f32 %v2218_v29, %v492_v47  ;;  %v532_v57 = vmul.f32 %v2218_v29, %v493_v49  ;;  %v496_v63 = vld [vmem:[%s2194_s28 + $0x28] sm:$0xff] }
  0x12   : > { %1951 = vmatprep.mubr.f32.mxu1 %v1113_v31  ;;  %2042 = vmatpush3.bf16.msra.mxu1 %v2039_v17  ;;  %v494_v56 = vld [vmem:[%s2194_s28 + $0x18] sm:$0xff]  ;;  %v495_v59 = vld [vmem:[%s2194_s28 + $0x20] sm:$0xff]  ;;  %v2059_v60 = vpack.c.bf16 %v1160_v54, %v1159_v53  ;;  %v497_v2 = vld [vmem:[%s2194_s28 + $0x30] sm:$0xff]  ;;  %v535_v7 = vmul.f32 %v2218_v29, %v496_v63 }
  0x13   : > { %2012 = vmatprep.subr.bf16.mxu0 %v2011_v22  ;;  %2044 = vmatprep.subr.bf16.mxu1 %v2043_v25  ;;  %v569_v37 = vadd.f32 %v2223_v30, %v530_v32  ;;  %v533_v61 = vmul.f32 %v2218_v29, %v494_v56  ;;  %v570_v62 = vadd.f32 %v2223_v30, %v531_v55  ;;  %v516_v3 = vld [vmem:[%s2194_s28 + $0xc8] sm:$0xff]  ;;  %v517_v4 = vld [vmem:[%s2194_s28 + $0xd0] sm:$0xff]  ;;  %v518_v5 = vld [vmem:[%s2194_s28 + $0xd8] sm:$0xff] }
  0x14   : > { %v571_v0 = vadd.f32 %v2223_v30, %v532_v57  ;;  %v534_v1 = vmul.f32 %v2218_v29, %v495_v59  ;;  %v519_v8 = vld [vmem:[%s2194_s28 + $0xe0] sm:$0xff]  ;;  %v536_v10 = vmul.f32 %v2218_v29, %v497_v2  ;;  %v555_v11 = vmul.f32 %v2218_v29, %v516_v3  ;;  %v520_v13 = vld [vmem:[%s2194_s28 + $0xe8] sm:$0xff]  ;;  %v498_v16 = vld [vmem:[%s2194_s28 + $0x38] sm:$0xff] }
  0x15   : > { %2014 = vmatpush3.bf16.msra.mxu0 %v2011_v22  ;;  %v601_v40 = vmax.f32 %v569_v37, 0.0  ;;  %v572_v6 = vadd.f32 %v2223_v30, %v533_v61  ;;  %v602_v9 = vmax.f32 %v570_v62, 0.0  ;;  %v556_v12 = vmul.f32 %v2218_v29, %v517_v4  ;;  %v521_v18 = vld [vmem:[%s2194_s28 + $0xf0] sm:$0xff]  ;;  %v1114_v19 = vld [vmem:[%s2200_s12 + $0x8] sm:$0xff]  ;;  %v499_v20 = vld [vmem:[%s2194_s28 + $0x40] sm:$0xff] }
  0x16   : > { %2046 = vmatpush3.bf16.msra.mxu1 %v2043_v25  ;;  %2016 = vmatprep.subr.bf16.mxu0 %v2015_v33  ;;  %v603_v14 = vmax.f32 %v571_v0, 0.0  ;;  %v573_v15 = vadd.f32 %v2223_v30, %v534_v1  ;;  %v557_v17 = vmul.f32 %v2218_v29, %v518_v5  ;;  %v2293_v21 = vadd.f32 %v2223_v30, %v555_v11  ;;  %v522_v24 = vld [vmem:[%s2194_s28 + $0xf8] sm:$0xff]  ;;  %v1115_v25 = vld [vmem:[%s2200_s12 + $0x10] sm:$0xff]  ;;  %v500_v38 = vld [vmem:[%s2194_s28 + $0x48] sm:$0xff] }
  0x17   : > { %2048 = vmatprep.subr.bf16.mxu1 %v2047_v34  ;;  %1871 = vmatprep.mubr.f32.mxu0 %v601_v40  ;;  %v2296_v22 = vadd.f32 %v2223_v30, %v556_v12  ;;  %v558_v23 = vmul.f32 %v2218_v29, %v519_v8  ;;  %v604_v26 = vmax.f32 %v572_v6, 0.0  ;;  %v574_v27 = vadd.f32 %v2223_v30, %v535_v7  ;;  %v1117_v44 = vld [vmem:[%s2200_s12 + $0x20] sm:$0xff]  ;;  %v502_v52 = vld [vmem:[%s2194_s28 + $0x58] sm:$0xff]  ;;  %v1118_v53 = vld [vmem:[%s2200_s12 + $0x28] sm:$0xff] }
  0x18   : > { %v2303_v28 = vadd.f32 %v2223_v30, %v557_v17  ;;  %v559_v31 = vmul.f32 %v2218_v29, %v520_v13  ;;  %v575_v32 = vadd.f32 %v2223_v30, %v536_v10  ;;  %v560_v35 = vmul.f32 %v2218_v29, %v521_v18  ;;  %v503_v54 = vld [vmem:[%s2194_s28 + $0x60] sm:$0xff]  ;;  %v1119_v55 = vld [vmem:[%s2200_s12 + $0x30] sm:$0xff]  ;;  %v504_v62 = vld [vmem:[%s2194_s28 + $0x68] sm:$0xff] }
  0x19   : > { %2018 = vmatpush3.bf16.msra.mxu0 %v2015_v33  ;;  %v537_v33 = vmul.f32 %v2218_v29, %v498_v16  ;;  %v605_v36 = vmax.f32 %v573_v15, 0.0  ;;  %v538_v37 = vmul.f32 %v2218_v29, %v499_v20  ;;  %v561_v40 = vmul.f32 %v2218_v29, %v522_v24  ;;  %v1120_v63 = vld [vmem:[%s2200_s12 + $0x38] sm:$0xff]  ;;  %v505_v0 = vld [vmem:[%s2194_s28 + $0x70] sm:$0xff]  ;;  %v1121_v1 = vld [vmem:[%s2200_s12 + $0x40] sm:$0xff] }
  0x1a   : > { %2050 = vmatpush3.bf16.msra.mxu1 %v2047_v34  ;;  %2020 = vmatprep.subr.bf16.mxu0 %v2019_v41  ;;  %v2309_v34 = vadd.f32 %v2223_v30, %v558_v23  ;;  %v2315_v39 = vadd.f32 %v2223_v30, %v559_v31  ;;  %v2321_v43 = vadd.f32 %v2223_v30, %v560_v35  ;;  %v606_v46 = vmax.f32 %v574_v27, 0.0  ;;  %v506_v8 = vld [vmem:[%s2194_s28 + $0x78] sm:$0xff]  ;;  %v507_v10 = vld [vmem:[%s2194_s28 + $0x80] sm:$0xff]  ;;  %v1123_v11 = vld [vmem:[%s2200_s12 + $0x50] sm:$0xff] }
  0x1b   : > { %2052 = vmatprep.subr.bf16.mxu1 %v2051_v42  ;;  %v2325_v45 = vadd.f32 %v2223_v30, %v561_v40  ;;  %v576_v47 = vadd.f32 %v2223_v30, %v537_v33  ;;  %v607_v49 = vmax.f32 %v575_v32, 0.0  ;;  %v542_v61 = vmul.f32 %v2218_v29, %v503_v54  ;;  %v508_v18 = vld [vmem:[%s2194_s28 + $0x88] sm:$0xff]  ;;  %v509_v20 = vld [vmem:[%s2194_s28 + $0x90] sm:$0xff]  ;;  %v1125_v23 = vld [vmem:[%s2200_s12 + $0x60] sm:$0xff] }
  0x1c   : > { %v543_v4 = vmul.f32 %v2218_v29, %v504_v62  ;;  %v544_v7 = vmul.f32 %v2218_v29, %v505_v0  ;;  %v546_v17 = vmul.f32 %v2218_v29, %v507_v10  ;;  %v548_v32 = vmul.f32 %v2218_v29, %v509_v20  ;;  %v510_v33 = vld [vmem:[%s2194_s28 + $0x98] sm:$0xff]  ;;  %v1126_v35 = vld [vmem:[%s2200_s12 + $0x68] sm:$0xff]  ;;  %v1135_v10 = vld [vmem:[%s2200_s12 + $0xb0] sm:$0xff] }
  0x1d   : > { %2022 = vmatpush3.bf16.msra.mxu0 %v2019_v41  ;;  %v1116_v41 = vld [vmem:[%s2200_s12 + $0x18] sm:$0xff]  ;;  %v608_v56 = vmax.f32 %v576_v47, 0.0  ;;  %v581_v6 = vadd.f32 %v2223_v30, %v542_v61  ;;  %v512_v47 = vld [vmem:[%s2194_s28 + $0xa8] sm:$0xff]  ;;  %v630_v20 = vmax.f32 %v2315_v39, 0.0 }
  0x1e   : > { %2054 = vmatpush3.bf16.msra.mxu1 %v2051_v42  ;;  %2024 = vmatprep.subr.bf16.mxu0 %v2023_v48  ;;  %v501_v42 = vld [vmem:[%s2194_s28 + $0x50] sm:$0xff]  ;;  %v582_v13 = vadd.f32 %v2223_v30, %v543_v4  ;;  %v583_v16 = vadd.f32 %v2223_v30, %v544_v7  ;;  %v585_v31 = vadd.f32 %v2223_v30, %v546_v17  ;;  %v1133_v4 = vld [vmem:[%s2200_s12 + $0xa0] sm:$0xff]  ;;  %v628_v17 = vmax.f32 %v2303_v28, 0.0 }
  0x1f   : > { %2056 = vmatprep.subr.bf16.mxu1 %v2055_v50  ;;  %v540_v51 = vmul.f32 %v2218_v29, %v501_v42  ;;  %v613_v15 = vmax.f32 %v581_v6, 0.0  ;;  %v632_v28 = vmax.f32 %v2325_v45, 0.0 }
  0x20   : > { %v614_v24 = vmax.f32 %v582_v13, 0.0  ;;  %v615_v27 = vmax.f32 %v583_v16, 0.0  ;;  %v617_v42 = vmax.f32 %v585_v31, 0.0  ;;  %v1137_v13 = vld [vmem:[%s2200_s12 + $0xc0] sm:$0xff]  ;;  %v1139_v16 = vld [vmem:[%s2200_s12 + $0xd0] sm:$0xff] }
  0x21   : > { %2026 = vmatpush3.bf16.msra.mxu0 %v2023_v48  ;;  %v539_v48 = vmul.f32 %v2218_v29, %v500_v38 }
  0x22   : > { %2058 = vmatpush3.bf16.msra.mxu1 %v2055_v50  ;;  %2028 = vmatprep.subr.bf16.mxu0 %v2027_v58  ;;  %v577_v50 = vadd.f32 %v2223_v30, %v538_v37  ;;  %v1127_v37 = vld [vmem:[%s2200_s12 + $0x70] sm:$0xff] }
  0x23   : > { %2060 = vmatprep.subr.bf16.mxu1 %v2059_v60  ;;  %v578_v57 = vadd.f32 %v2223_v30, %v539_v48  ;;  %v1128_v48 = vld [vmem:[%s2200_s12 + $0x78] sm:$0xff] }
  0x24   : > { %v609_v59 = vmax.f32 %v577_v50, 0.0  ;;  %v1129_v50 = vld [vmem:[%s2200_s12 + $0x80] sm:$0xff] }
  0x25   : > { %2030 = vmatpush3.bf16.msra.mxu0 %v2027_v58  ;;  %v541_v58 = vmul.f32 %v2218_v29, %v502_v52  ;;  %v610_v2 = vmax.f32 %v578_v57, 0.0  ;;  %v514_v57 = vld [vmem:[%s2194_s28 + $0xb8] sm:$0xff] }
  0x26   : > { %2062 = vmatpush3.bf16.msra.mxu1 %v2059_v60  ;;  %v579_v60 = vadd.f32 %v2223_v30, %v540_v51 }
  0x27   : > { %v580_v3 = vadd.f32 %v2223_v30, %v541_v58  ;;  %v1130_v58 = vld [vmem:[%s2200_s12 + $0x88] sm:$0xff] }
  0x28   : > { %1872 = vmatmul.mubr.f32.vlgmr.msra.gmra.mrb[0].mxu0 %v602_v9  ;;  %v611_v5 = vmax.f32 %v579_v60, 0.0  ;;  %v1122_v9 = vld [vmem:[%s2200_s12 + $0x48] sm:$0xff]  ;;  %v1131_v60 = vld [vmem:[%s2200_s12 + $0x90] sm:$0xff] }
  0x29   : > { %1952 = vmatmul.mubr.f32.vlgmr.msra.gmra.mrb[0].mxu1 %v1114_v19  ;;  %1874 = vmatprep.mubr.f32.mxu0 %v603_v14  ;;  %v612_v12 = vmax.f32 %v580_v3, 0.0  ;;  %v545_v14 = vmul.f32 %v2218_v29, %v506_v8  ;;  %v1124_v19 = vld [vmem:[%s2200_s12 + $0x58] sm:$0xff] }
  0x2a   : > { %1954 = vmatprep.mubr.f32.mxu1 %v1115_v25  ;;  %v1132_v3 = vld [vmem:[%s2200_s12 + $0x98] sm:$0xff] }
  0x2b   : > { %v584_v25 = vadd.f32 %v2223_v30, %v545_v14  ;;  %v626_v14 = vmax.f32 %v2293_v21, 0.0  ;;  %v1141_v21 = vld [vmem:[%s2200_s12 + $0xe0] sm:$0xff] }
  0x2c   : > { %1875 = vmatmul.mubr.f32.gmra.mrb[2].mxu0 %v604_v26  ;;  %v547_v26 = vmul.f32 %v2218_v29, %v508_v18  ;;  %v629_v18 = vmax.f32 %v2309_v34, 0.0  ;;  %v1144_v34 = vld [vmem:[%s2200_s12 + $0xf8] sm:$0xff] }
  0x2d   : > { %1955 = vmatmul.mubr.f32.gmra.mrb[2].mxu1 %v1116_v41  ;;  %1877 = vmatprep.mubr.f32.mxu0 %v605_v36  ;;  %v511_v36 = vld [vmem:[%s2194_s28 + $0xa0] sm:$0xff]  ;;  %v616_v38 = vmax.f32 %v584_v25, 0.0  ;;  %v549_v41 = vmul.f32 %v2218_v29, %v510_v33  ;;  %v392_v25 = vlaneseq }
  0x2e   : > { %1957 = vmatprep.mubr.f32.mxu1 %v1117_v44  ;;  %v586_v40 = vadd.f32 %v2223_v30, %v547_v26  ;;  %v587_v44 = vadd.f32 %v2223_v30, %v548_v32 }
  0x2f   : > { %v588_v52 = vadd.f32 %v2223_v30, %v549_v41  ;;  %v2409_v26 = vshrl.u32 %v392_v25, 7 }
  0x30   : > { %1878 = vmatmul.mubr.f32.gmra.mrb[4].mxu0 %v606_v46  ;;  %v550_v46 = vmul.f32 %v2218_v29, %v511_v36  ;;  %v618_v51 = vmax.f32 %v586_v40, 0.0  ;;  %v619_v54 = vmax.f32 %v587_v44, 0.0 }
  0x31   : > { %1958 = vmatmul.mubr.f32.gmra.mrb[4].mxu1 %v1118_v53  ;;  %1880 = vmatprep.mubr.f32.mxu0 %v607_v49  ;;  %v513_v49 = vld [vmem:[%s2194_s28 + $0xb0] sm:$0xff]  ;;  %v551_v53 = vmul.f32 %v2218_v29, %v512_v47  ;;  %v620_v61 = vmax.f32 %v588_v52, 0.0  ;;  %v394_v39 = vadd.s32 8, %v2409_v26  ;;  %v396_v31 = vadd.s32 24, %v2409_v26 }
  0x32   : > { %1960 = vmatprep.mubr.f32.mxu1 %v1119_v55  ;;  %v589_v55 = vadd.f32 %v2223_v30, %v550_v46  ;;  %v395_v32 = vadd.s32 16, %v2409_v26  ;;  %v398_v33 = vadd.s32 40, %v2409_v26  ;;  %v400_v36 = vadd.s32 56, %v2409_v26 }
  0x33   : > { %v590_v62 = vadd.f32 %v2223_v30, %v551_v53  ;;  %v402_v47 = vadd.s32 72, %v2409_v26  ;;  %v405_v52 = vadd.s32 96, %v2409_v26  ;;  %v408_v53 = vadd.s32 120, %v2409_v26 }
  0x34   : > { %1881 = vmatmul.mubr.f32.gmra.mrb[6].mxu0 %v608_v56  ;;  %v552_v56 = vmul.f32 %v2218_v29, %v513_v49  ;;  %v621_v0 = vmax.f32 %v589_v55, 0.0  ;;  %v404_v49 = vadd.s32 88, %v2409_v26  ;;  %v410_v55 = vadd.s32 136, %v2409_v26 }
  0x35   : > { %1961 = vmatmul.mubr.f32.gmra.mrb[6].mxu1 %v1120_v63  ;;  %1883 = vmatprep.mubr.f32.mxu0 %v609_v59  ;;  %v515_v59 = vld [vmem:[%s2194_s28 + $0xc0] sm:$0xff]  ;;  %v553_v63 = vmul.f32 %v2218_v29, %v514_v57  ;;  %s1738_s28 = sshll.u32 %s2135_s10, 8  ;;  %v412_v57 = vadd.s32 152, %v2409_v26  ;;  %s2802_s10 = smov (!%p378_p4, %s2135_s10), 1 }
  0x36   : > { %1963 = vmatprep.mubr.f32.mxu1 %v1121_v1  ;;  %v591_v1 = vadd.f32 %v2223_v30, %v552_v56  ;;  %v409_v56 = vadd.s32 128, %v2409_v26  ;;  %s1734_s18 = sshll.u32 %s2802_s10, 3 }
  0x37   : > { %v592_v6 = vadd.f32 %v2223_v30, %v553_v63  ;;  %s381_s26 = scalar_lea.vmem %s2796_s7, %s1734_s18  ;;  %s391_s29 = scalar_lea.vmem %s2798_s9, %s1734_s18 }
  0x38   : > { %1884 = vmatmul.mubr.f32.gmra.mrb[8].mxu0 %v610_v2  ;;  %v554_v2 = vmul.f32 %v2218_v29, %v515_v59  ;;  %v623_v7 = vmax.f32 %v591_v1, 0.0  ;;  %v414_v59 = vadd.s32 168, %v2409_v26 }
  0x39   : > { %1964 = vmatmul.mubr.f32.gmra.mrb[8].mxu1 %v1122_v9  ;;  %1886 = vmatprep.mubr.f32.mxu0 %v611_v5  ;;  %v622_v5 = vmax.f32 %v590_v62, 0.0  ;;  %v1134_v9 = vld [vmem:[%s2200_s12 + $0xa8] sm:$0xff]  ;;  %v624_v29 = vmax.f32 %v592_v6, 0.0  ;;  %v415_v62 = vadd.s32 176, %v2409_v26 }
  0x3a   : > { %1966 = vmatprep.mubr.f32.mxu1 %v1123_v11  ;;  %v593_v8 = vadd.f32 %v2223_v30, %v554_v2  ;;  %v627_v30 = vmax.f32 %v2296_v22, 0.0  ;;  %v631_v22 = vmax.f32 %v2321_v43, 0.0 }
  0x3c   : > { %1887 = vmatmul.mubr.f32.gmra.mrb[10].mxu0 %v612_v12  ;;  %v625_v11 = vmax.f32 %v593_v8, 0.0  ;;  %v1136_v12 = vld [vmem:[%s2200_s12 + $0xb8] sm:$0xff] }
  0x3d   : > { %1967 = vmatmul.mubr.f32.gmra.mrb[10].mxu1 %v1124_v19  ;;  %1889 = vmatprep.mubr.f32.mxu0 %v613_v15  ;;  %v1138_v15 = vld [vmem:[%s2200_s12 + $0xc8] sm:$0xff]  ;;  %v1140_v19 = vld [vmem:[%s2200_s12 + $0xd8] sm:$0xff] }
  0x3e   : > { %1969 = vmatprep.mubr.f32.mxu1 %v1125_v23  ;;  %v1142_v23 = vld [vmem:[%s2200_s12 + $0xe8] sm:$0xff] }
  0x40   : > { %1890 = vmatmul.mubr.f32.gmra.mrb[12].mxu0 %v614_v24  ;;  %v1143_v24 = vld [vmem:[%s2200_s12 + $0xf0] sm:$0xff] }
  0x41   : > { %1970 = vmatmul.mubr.f32.gmra.mrb[12].mxu1 %v1126_v35  ;;  %1892 = vmatprep.mubr.f32.mxu0 %v615_v27  ;;  %v2413_v27 = vstv %s1738_s28  ;;  %v397_v35 = vadd.s32 32, %v2409_v26 }
  0x42   : > { %1972 = vmatprep.mubr.f32.mxu1 %v1127_v37  ;;  %v2416_v43 = vadd.s32 %v2413_v27, %v394_v39  ;;  %v2420_v45 = vadd.s32 %v2413_v27, %v2409_v26  ;;  %v399_v37 = vadd.s32 48, %v2409_v26  ;;  %v2434_v40 = vadd.s32 %v2413_v27, %v395_v32 }
  0x43   : > { %v2437_v41 = vadd.s32 %v2413_v27, %v398_v33  ;;  %v2443_v44 = vadd.s32 %v2413_v27, %v400_v36  ;;  %v2467_v63 = vadd.s32 %v2413_v27, %v402_v47  ;;  %v2473_v1 = vadd.s32 %v2413_v27, %v404_v49 }
  0x44   : > { %1893 = vmatmul.mubr.f32.gmra.mrb[14].mxu0 %v616_v38  ;;  %vm460_vm0 = vcmp.lt.s32.totalorder %v2416_v43, 512  ;;  %vm459_vm1 = vcmp.lt.s32.totalorder %v2420_v45, 512  ;;  %v2431_v38 = vadd.s32 %v2413_v27, %v396_v31  ;;  %v2446_v46 = vadd.s32 %v2413_v27, %v399_v37 }
  0x45   : > { %1973 = vmatmul.mubr.f32.gmra.mrb[14].mxu1 %v1128_v48  ;;  %1895 = vmatprep.mubr.f32.mxu0 %v617_v42  ;;  %v2440_v42 = vadd.s32 %v2413_v27, %v397_v35  ;;  %v401_v48 = vadd.s32 64, %v2409_v26  ;;  %vm461_vm3 = vcmp.lt.s32.totalorder %v2434_v40, 512  ;;  %vm464_vm4 = vcmp.lt.s32.totalorder %v2437_v41, 512 }
  0x46   : > { %1975 = vmatprep.mubr.f32.mxu1 %v1129_v50  ;;  %v403_v50 = vadd.s32 80, %v2409_v26  ;;  %vm462_vm2 = vcmp.lt.s32.totalorder %v2431_v38, 512  ;;  %v2508_v8 = vadd.s32 %v2413_v27, %v409_v56  ;;  %vm466_vm6 = vcmp.lt.s32.totalorder %v2443_v44, 512 }
  0x47   : > { %vm463_vm5 = vcmp.lt.s32.totalorder %v2440_v42, 512  ;;  %vm465_vm7 = vcmp.lt.s32.totalorder %v2446_v46, 512  ;;  %v422_v33 = vadd.s32 232, %v2409_v26  ;;  %v421_v35 = vadd.s32 224, %v2409_v26 }
  0x48   : > { %1896 = vmatmul.mubr.f32.gmra.mrb[16].mxu0 %v618_v51  ;;  %v406_v51 = vadd.s32 104, %v2409_v26  ;;  %v2476_v2 = vadd.s32 %v2413_v27, %v403_v50  ;;  %vm468_vm8 = vcmp.lt.s32.totalorder %v2467_v63, 512  ;;  %vm470_vm10 = vcmp.lt.s32.totalorder %v2473_v1, 512 }
  0x49   : > { %1976 = vmatmul.mubr.f32.gmra.mrb[16].mxu1 %v1130_v58  ;;  %1898 = vmatprep.mubr.f32.mxu0 %v619_v54  ;;  %v407_v54 = vadd.s32 112, %v2409_v26  ;;  %v411_v58 = vadd.s32 144, %v2409_v26  ;;  %v2578_v38 = vadd.s32 %v2413_v27, %v421_v35  ;;  %v423_v41 = vadd.s32 240, %v2409_v26 }
  0x4a   : > { %1978 = vmatprep.mubr.f32.mxu1 %v1131_v60  ;;  %v413_v60 = vadd.s32 160, %v2409_v26  ;;  %vm469_vm11 = vcmp.lt.s32.totalorder %v2476_v2, 512 }
  0x4b   : > { %v2494_v6 = vadd.s32 %v2413_v27, %v407_v54 }
  0x4c   : > { %1899 = vmatmul.mubr.f32.gmra.mrb[18].mxu0 %v620_v61  ;;  %v416_v61 = vadd.s32 184, %v2409_v26 }
  0x4d   : > { %1979 = vmatmul.mubr.f32.gmra.mrb[18].mxu1 %v1132_v3  ;;  %1901 = vmatprep.mubr.f32.mxu0 %v621_v0  ;;  %v2470_v0 = vadd.s32 %v2413_v27, %v401_v48  ;;  %v2485_v3 = vadd.s32 %v2413_v27, %v406_v51  ;;  %vm473_vm15 = vcmp.lt.s32.totalorder %v2494_v6, 512 }
  0x4e   : > { %1981 = vmatprep.mubr.f32.mxu1 %v1133_v4  ;;  %v2488_v4 = vadd.s32 %v2413_v27, %v405_v52 }
  0x4f   : > { %vm467_vm9 = vcmp.lt.s32.totalorder %v2470_v0, 512  ;;  %vm472_vm12 = vcmp.lt.s32.totalorder %v2485_v3, 512  ;;  %v2629_v0 = vadd.s32 %v2413_v27, %v423_v41 }
  0x50   : > { %1902 = vmatmul.mubr.f32.gmra.mrb[20].mxu0 %v622_v5  ;;  %v2491_v5 = vadd.s32 %v2413_v27, %v408_v53  ;;  %vm471_vm13 = vcmp.lt.s32.totalorder %v2488_v4, 512 }
  0x51   : > { %1982 = vmatmul.mubr.f32.gmra.mrb[20].mxu1 %v1134_v9  ;;  %1904 = vmatprep.mubr.f32.mxu0 %v623_v7  ;;  %v2505_v7 = vadd.s32 %v2413_v27, %v410_v55  ;;  %v2511_v9 = vadd.s32 %v2413_v27, %v412_v57 }
  0x52   : > { %1984 = vmatprep.mubr.f32.mxu1 %v1135_v10  ;;  %v2514_v10 = vadd.s32 %v2413_v27, %v411_v58  ;;  %vm474_vm14 = vcmp.lt.s32.totalorder %v2491_v5, 512 }
  0x54   : > { %1905 = vmatmul.mubr.f32.gmra.mrb[22].mxu0 %v624_v29 }
  0x55   : > { %1985 = vmatmul.mubr.f32.gmra.mrb[22].mxu1 %v1136_v12  ;;  %1907 = vmatprep.mubr.f32.mxu0 %v625_v11  ;;  %v2517_v11 = vadd.s32 %v2413_v27, %v414_v59  ;;  %v2520_v12 = vadd.s32 %v2413_v27, %v413_v60 }
  0x56   : > { %1987 = vmatprep.mubr.f32.mxu1 %v1137_v13  ;;  %v2523_v13 = vadd.s32 %v2413_v27, %v416_v61 }
  0x58   : > { %1908 = vmatmul.mubr.f32.gmra.mrb[24].mxu0 %v626_v14  ;;  %v2526_v14 = vadd.s32 %v2413_v27, %v415_v62  ;;  %v2575_v62 = vadd.s32 %v2413_v27, %v422_v33 }
  0x59   : > { %1988 = vmatmul.mubr.f32.gmra.mrb[24].mxu1 %v1138_v15  ;;  %1910 = vmatprep.mubr.f32.mxu0 %v627_v30 }
  0x5a   : > { %1990 = vmatprep.mubr.f32.mxu1 %v1139_v16 }
  0x5c   : > { %1911 = vmatmul.mubr.f32.gmra.mrb[26].mxu0 %v628_v17  ;;  %v418_v17 = vadd.s32 200, %v2409_v26 }
  0x5d   : > { %1991 = vmatmul.mubr.f32.gmra.mrb[26].mxu1 %v1140_v19  ;;  %1913 = vmatprep.mubr.f32.mxu0 %v629_v18  ;;  %v417_v18 = vadd.s32 192, %v2409_v26  ;;  %v420_v19 = vadd.s32 216, %v2409_v26 }
  0x5e   : > { %1993 = vmatprep.mubr.f32.mxu1 %v1141_v21  ;;  %v2550_v45 = vadd.s32 %v2413_v27, %v418_v17  ;;  %v424_v17 = vadd.s32 248, %v2409_v26 }
  0x5f   : > { %v2553_v48 = vadd.s32 %v2413_v27, %v417_v18  ;;  %v2556_v49 = vadd.s32 %v2413_v27, %v420_v19 }
  0x60   : > { %1914 = vmatmul.mubr.f32.gmra.mrb[28].mxu0 %v630_v20 }
  0x61   : > { %1994 = vmatmul.mubr.f32.gmra.mrb[28].mxu1 %v1142_v23  ;;  %1916 = vmatprep.mubr.f32.mxu0 %v631_v22 }
  0x62   : > { %1996 = vmatprep.mubr.f32.mxu1 %v1143_v24  ;;  %v419_v24 = vadd.s32 208, %v2409_v26 }
  0x64   : > { %1917 = vmatmul.mubr.f32.gmra.mrb[30].mxu0 %v632_v28  ;;  %v2565_v54 = vadd.s32 %v2413_v27, %v419_v24 }
  0x65   : > { %1997 = vmatmul.mubr.f32.gmra.mrb[30].mxu1 %v1144_v34 }
  0xfb   : > { %v1873_v29 = vpop.f32.mrb[0].mxu0 }
  0xfc   : > { %875 = vst [vmem:[%s2482_s20 + $0x8] sm:$0xff] %v1873_v29  ;;  %v971_v30 = vsel %vm460_vm0, %v1873_v29, 0.0  ;;  %v1953_v15 = vpop.f32.mrb[0].mxu1  ;;  %v715_v16 = vpop.f32.mrb[1].mxu0 }
  0xfd   : > { %v1040_v21 = vmul.f32 %v971_v30, %v971_v30  ;;  %1387 = vst [vmem:[%s2500_s23 + $0x8] sm:$0xff] %v1953_v15  ;;  %v1419_v20 = vsel %vm460_vm0, %v1953_v15, 0.0  ;;  %874 = vst [vmem:[%s2482_s20] sm:$0xff] %v715_v16  ;;  %v970_v22 = vsel %vm459_vm1, %v715_v16, 0.0  ;;  %v1227_v23 = vpop.f32.mrb[1].mxu1  ;;  %vm476_vm0 = vcmp.lt.s32.totalorder %v2505_v7, 512 }
  0xfe   : > { %v1488_v28 = vmul.f32 %v1419_v20, %v1419_v20  ;;  %v1002_v34 = vadd.f32 %v971_v30, %v970_v22  ;;  %v1039_v25 = vmul.f32 %v970_v22, %v970_v22  ;;  %1386 = vst [vmem:[%s2500_s23] sm:$0xff] %v1227_v23  ;;  %v1418_v39 = vsel %vm459_vm1, %v1227_v23, 0.0 }
  0xff   : > { %v1450_v43 = vadd.f32 %v1419_v20, %v1418_v39  ;;  %v1487_v31 = vmul.f32 %v1418_v39, %v1418_v39  ;;  %v1876_v32 = vpop.f32.mrb[2].mxu0  ;;  %vm475_vm1 = vcmp.lt.s32.totalorder %v2508_v8, 512 }
 0x100   : > { %v1071_v36 = vadd.f32 %v1040_v21, %v1039_v25  ;;  %877 = vst [vmem:[%s2482_s20 + $0x18] sm:$0xff] %v1876_v32  ;;  %v1956_v37 = vpop.f32.mrb[2].mxu1  ;;  %v725_v47 = vpop.f32.mrb[3].mxu0  ;;  %v973_v51 = vsel %vm462_vm2, %v1876_v32, 0.0 }
 0x101   : > { %v1519_v50 = vadd.f32 %v1488_v28, %v1487_v31  ;;  %1389 = vst [vmem:[%s2500_s23 + $0x18] sm:$0xff] %v1956_v37  ;;  %876 = vst [vmem:[%s2482_s20 + $0x10] sm:$0xff] %v725_v47  ;;  %v972_v52 = vsel %vm461_vm3, %v725_v47, 0.0  ;;  %v1237_v53 = vpop.f32.mrb[3].mxu1  ;;  %v1421_v55 = vsel %vm462_vm2, %v1956_v37, 0.0  ;;  %v1042_v29 = vmul.f32 %v973_v51, %v973_v51 }
 0x102   : > { %v1003_v56 = vadd.f32 %v1002_v34, %v972_v52  ;;  %v1041_v57 = vmul.f32 %v972_v52, %v972_v52  ;;  %1388 = vst [vmem:[%s2500_s23 + $0x10] sm:$0xff] %v1237_v53  ;;  %v1420_v58 = vsel %vm461_vm3, %v1237_v53, 0.0  ;;  %v1490_v18 = vmul.f32 %v1421_v55, %v1421_v55 }
 0x103   : > { %v1451_v59 = vadd.f32 %v1450_v43, %v1420_v58  ;;  %v1489_v60 = vmul.f32 %v1420_v58, %v1420_v58  ;;  %v1879_v61 = vpop.f32.mrb[4].mxu0  ;;  %vm478_vm2 = vcmp.lt.s32.totalorder %v2511_v9, 512  ;;  %vm477_vm3 = vcmp.lt.s32.totalorder %v2514_v10, 512 }
 0x104   : > { %v1072_v30 = vadd.f32 %v1071_v36, %v1041_v57  ;;  %879 = vst [vmem:[%s2482_s20 + $0x28] sm:$0xff] %v1879_v61  ;;  %v1959_v40 = vpop.f32.mrb[4].mxu1  ;;  %v735_v15 = vpop.f32.mrb[5].mxu0  ;;  %v1004_v16 = vadd.f32 %v1003_v56, %v973_v51  ;;  %v975_v21 = vsel %vm464_vm4, %v1879_v61, 0.0 }
 0x105   : > { %v1520_v19 = vadd.f32 %v1519_v50, %v1489_v60  ;;  %1391 = vst [vmem:[%s2500_s23 + $0x28] sm:$0xff] %v1959_v40  ;;  %878 = vst [vmem:[%s2482_s20 + $0x20] sm:$0xff] %v735_v15  ;;  %v974_v20 = vsel %vm463_vm5, %v735_v15, 0.0  ;;  %v1247_v22 = vpop.f32.mrb[5].mxu1  ;;  %v1423_v23 = vsel %vm464_vm4, %v1959_v40, 0.0  ;;  %v1452_v39 = vadd.f32 %v1451_v59, %v1421_v55 }
 0x106   : > { %v1005_v24 = vadd.f32 %v1004_v16, %v974_v20  ;;  %v1043_v28 = vmul.f32 %v974_v20, %v974_v20  ;;  %v1073_v34 = vadd.f32 %v1072_v30, %v1042_v29  ;;  %1390 = vst [vmem:[%s2500_s23 + $0x20] sm:$0xff] %v1247_v22  ;;  %v1422_v25 = vsel %vm463_vm5, %v1247_v22, 0.0 }
 0x107   : > { %v1521_v43 = vadd.f32 %v1520_v19, %v1490_v18  ;;  %v1882_v31 = vpop.f32.mrb[6].mxu0  ;;  %v1044_v32 = vmul.f32 %v975_v21, %v975_v21  ;;  %v1491_v35 = vmul.f32 %v1422_v25, %v1422_v25  ;;  %v1492_v50 = vmul.f32 %v1423_v23, %v1423_v23 }
 0x108   : > { %v1074_v33 = vadd.f32 %v1073_v34, %v1043_v28  ;;  %881 = vst [vmem:[%s2482_s20 + $0x38] sm:$0xff] %v1882_v31  ;;  %v1962_v36 = vpop.f32.mrb[6].mxu1  ;;  %v745_v37 = vpop.f32.mrb[7].mxu0  ;;  %v1006_v47 = vadd.f32 %v1005_v24, %v975_v21  ;;  %v1453_v42 = vadd.f32 %v1452_v39, %v1422_v25  ;;  %v977_v51 = vsel %vm466_vm6, %v1882_v31, 0.0 }
 0x109   : > { %1393 = vst [vmem:[%s2500_s23 + $0x38] sm:$0xff] %v1962_v36  ;;  %880 = vst [vmem:[%s2482_s20 + $0x30] sm:$0xff] %v745_v37  ;;  %v976_v52 = vsel %vm465_vm7, %v745_v37, 0.0  ;;  %v1257_v53 = vpop.f32.mrb[7].mxu1  ;;  %v1522_v26 = vadd.f32 %v1521_v43, %v1491_v35  ;;  %v1425_v55 = vsel %vm466_vm6, %v1962_v36, 0.0  ;;  %v2611_v29 = vadd.s32 %v2413_v27, %v424_v17 }
 0x10a   : > { %v1007_v56 = vadd.f32 %v1006_v47, %v976_v52  ;;  %v1045_v57 = vmul.f32 %v976_v52, %v976_v52  ;;  %1392 = vst [vmem:[%s2500_s23 + $0x30] sm:$0xff] %v1257_v53  ;;  %v1075_v58 = vadd.f32 %v1074_v33, %v1044_v32  ;;  %v1424_v59 = vsel %vm465_vm7, %v1257_v53, 0.0 }
 0x10b   : > { %v1454_v60 = vadd.f32 %v1453_v42, %v1423_v23  ;;  %v1885_v61 = vpop.f32.mrb[8].mxu0  ;;  %v1046_v44 = vmul.f32 %v977_v51, %v977_v51  ;;  %v1493_v30 = vmul.f32 %v1424_v59, %v1424_v59  ;;  %v1523_v40 = vadd.f32 %v1522_v26, %v1492_v50 }
 0x10c   : > { %883 = vst [vmem:[%s2482_s20 + $0x48] sm:$0xff] %v1885_v61  ;;  %v1965_v15 = vpop.f32.mrb[8].mxu1  ;;  %v755_v16 = vpop.f32.mrb[9].mxu0  ;;  %v1008_v18 = vadd.f32 %v1007_v56, %v977_v51  ;;  %v1494_v19 = vmul.f32 %v1425_v55, %v1425_v55  ;;  %v1076_v46 = vadd.f32 %v1075_v58, %v1045_v57  ;;  %v979_v20 = vsel %vm468_vm8, %v1885_v61, 0.0 }
 0x10d   : > { %v1455_v21 = vadd.f32 %v1454_v60, %v1424_v59  ;;  %1395 = vst [vmem:[%s2500_s23 + $0x48] sm:$0xff] %v1965_v15  ;;  %882 = vst [vmem:[%s2482_s20 + $0x40] sm:$0xff] %v755_v16  ;;  %v1267_v22 = vpop.f32.mrb[9].mxu1  ;;  %v1524_v17 = vadd.f32 %v1523_v40, %v1493_v30  ;;  %v1427_v23 = vsel %vm468_vm8, %v1965_v15, 0.0  ;;  %v978_v24 = vsel %vm467_vm9, %v755_v16, 0.0 }
 0x10e   : > { %1394 = vst [vmem:[%s2500_s23 + $0x40] sm:$0xff] %v1267_v22  ;;  %v1426_v28 = vsel %vm467_vm9, %v1267_v22, 0.0  ;;  %v1009_v34 = vadd.f32 %v1008_v18, %v978_v24  ;;  %v1047_v25 = vmul.f32 %v978_v24, %v978_v24  ;;  %v1077_v39 = vadd.f32 %v1076_v46, %v1046_v44 }
 0x10f   : > { %v1456_v43 = vadd.f32 %v1455_v21, %v1425_v55  ;;  %v1888_v31 = vpop.f32.mrb[10].mxu0  ;;  %v1048_v63 = vmul.f32 %v979_v20, %v979_v20  ;;  %v1495_v32 = vmul.f32 %v1426_v28, %v1426_v28  ;;  %v1525_v33 = vadd.f32 %v1524_v17, %v1494_v19 }
 0x110   : > { %885 = vst [vmem:[%s2482_s20 + $0x58] sm:$0xff] %v1888_v31  ;;  %v1968_v35 = vpop.f32.mrb[10].mxu1  ;;  %v765_v36 = vpop.f32.mrb[11].mxu0  ;;  %v1496_v37 = vmul.f32 %v1427_v23, %v1427_v23  ;;  %v1078_v47 = vadd.f32 %v1077_v39, %v1047_v25  ;;  %v981_v42 = vsel %vm470_vm10, %v1888_v31, 0.0  ;;  %v1010_v55 = vadd.f32 %v1009_v34, %v979_v20 }
 0x111   : > { %v1457_v50 = vadd.f32 %v1456_v43, %v1426_v28  ;;  %1397 = vst [vmem:[%s2500_s23 + $0x58] sm:$0xff] %v1968_v35  ;;  %884 = vst [vmem:[%s2482_s20 + $0x50] sm:$0xff] %v765_v36  ;;  %v1277_v51 = vpop.f32.mrb[11].mxu1  ;;  %v1526_v52 = vadd.f32 %v1525_v33, %v1495_v32  ;;  %v1429_v53 = vsel %vm470_vm10, %v1968_v35, 0.0  ;;  %v980_v26 = vsel %vm469_vm11, %v765_v36, 0.0 }
 0x112   : > { %1396 = vst [vmem:[%s2500_s23 + $0x50] sm:$0xff] %v1277_v51  ;;  %v1049_v27 = vmul.f32 %v980_v26, %v980_v26  ;;  %v1079_v41 = vadd.f32 %v1078_v47, %v1048_v63  ;;  %v1428_v56 = vsel %vm469_vm11, %v1277_v51, 0.0  ;;  %v1050_v1 = vmul.f32 %v981_v42, %v981_v42 }
 0x113   : > { %v1458_v57 = vadd.f32 %v1457_v50, %v1427_v23  ;;  %v1891_v58 = vpop.f32.mrb[12].mxu0  ;;  %v1011_v59 = vadd.f32 %v1010_v55, %v980_v26  ;;  %v1497_v60 = vmul.f32 %v1428_v56, %v1428_v56  ;;  %v1527_v61 = vadd.f32 %v1526_v52, %v1496_v37 }
 0x114   : > { %887 = vst [vmem:[%s2482_s20 + $0x68] sm:$0xff] %v1891_v58  ;;  %v1971_v44 = vpop.f32.mrb[12].mxu1  ;;  %v775_v30 = vpop.f32.mrb[13].mxu0  ;;  %v1498_v40 = vmul.f32 %v1429_v53, %v1429_v53  ;;  %v1080_v15 = vadd.f32 %v1079_v41, %v1049_v27  ;;  %v983_v2 = vsel %vm472_vm12, %v1891_v58, 0.0  ;;  %vm480_vm4 = vcmp.lt.s32.totalorder %v2517_v11, 512 }
 0x115   : > { %v1459_v16 = vadd.f32 %v1458_v57, %v1428_v56  ;;  %1399 = vst [vmem:[%s2500_s23 + $0x68] sm:$0xff] %v1971_v44  ;;  %886 = vst [vmem:[%s2482_s20 + $0x60] sm:$0xff] %v775_v30  ;;  %v1287_v18 = vpop.f32.mrb[13].mxu1  ;;  %v1528_v19 = vadd.f32 %v1527_v61, %v1497_v60  ;;  %v1431_v46 = vsel %vm472_vm12, %v1971_v44, 0.0  ;;  %v982_v21 = vsel %vm471_vm13, %v775_v30, 0.0 }
 0x116   : > { %v1012_v20 = vadd.f32 %v1011_v59, %v981_v42  ;;  %1398 = vst [vmem:[%s2500_s23 + $0x60] sm:$0xff] %v1287_v18  ;;  %v1051_v22 = vmul.f32 %v982_v21, %v982_v21  ;;  %v1081_v17 = vadd.f32 %v1080_v15, %v1050_v1  ;;  %v1430_v23 = vsel %vm471_vm13, %v1287_v18, 0.0 }
 0x117   : > { %v1460_v24 = vadd.f32 %v1459_v16, %v1429_v53  ;;  %v1894_v28 = vpop.f32.mrb[14].mxu0  ;;  %v1052_v3 = vmul.f32 %v983_v2, %v983_v2  ;;  %v1499_v25 = vmul.f32 %v1430_v23, %v1430_v23  ;;  %v1529_v39 = vadd.f32 %v1528_v19, %v1498_v40 }
 0x118   : > { %v1013_v34 = vadd.f32 %v1012_v20, %v982_v21  ;;  %889 = vst [vmem:[%s2482_s20 + $0x78] sm:$0xff] %v1894_v28  ;;  %v1974_v43 = vpop.f32.mrb[14].mxu1  ;;  %v785_v31 = vpop.f32.mrb[15].mxu0  ;;  %v1500_v63 = vmul.f32 %v1431_v46, %v1431_v46  ;;  %v1082_v32 = vadd.f32 %v1081_v17, %v1051_v22  ;;  %v985_v4 = vsel %vm474_vm14, %v1894_v28, 0.0 }
 0x119   : > { %v1461_v33 = vadd.f32 %v1460_v24, %v1430_v23  ;;  %1401 = vst [vmem:[%s2500_s23 + $0x78] sm:$0xff] %v1974_v43  ;;  %888 = vst [vmem:[%s2482_s20 + $0x70] sm:$0xff] %v785_v31  ;;  %v1297_v35 = vpop.f32.mrb[15].mxu1  ;;  %v1530_v36 = vadd.f32 %v1529_v39, %v1499_v25  ;;  %v1433_v37 = vsel %vm474_vm14, %v1974_v43, 0.0  ;;  %v984_v47 = vsel %vm473_vm15, %v785_v31, 0.0 }
 0x11a   : > { %v1014_v50 = vadd.f32 %v1013_v34, %v983_v2  ;;  %1400 = vst [vmem:[%s2500_s23 + $0x70] sm:$0xff] %v1297_v35  ;;  %v1053_v42 = vmul.f32 %v984_v47, %v984_v47  ;;  %v1083_v51 = vadd.f32 %v1082_v32, %v1052_v3  ;;  %v1432_v52 = vsel %vm473_vm15, %v1297_v35, 0.0 }
 0x11b   : > { %v1462_v53 = vadd.f32 %v1461_v33, %v1431_v46  ;;  %v1897_v26 = vpop.f32.mrb[16].mxu0  ;;  %vm479_vm5 = vcmp.lt.s32.totalorder %v2520_v12, 512  ;;  %v1054_v5 = vmul.f32 %v985_v4, %v985_v4  ;;  %v1501_v27 = vmul.f32 %v1432_v52, %v1432_v52 }
 0x11c   : > { %v1015_v55 = vadd.f32 %v1014_v50, %v984_v47  ;;  %v1531_v41 = vadd.f32 %v1530_v36, %v1500_v63  ;;  %891 = vst [vmem:[%s2482_s20 + $0x88] sm:$0xff] %v1897_v26  ;;  %v1977_v56 = vpop.f32.mrb[16].mxu1  ;;  %v795_v57 = vpop.f32.mrb[17].mxu0  ;;  %v1502_v58 = vmul.f32 %v1433_v37, %v1433_v37  ;;  %v1084_v1 = vadd.f32 %v1083_v51, %v1053_v42 }
 0x11d   : > { %v1463_v59 = vadd.f32 %v1462_v53, %v1432_v52  ;;  %v987_v6 = vsel %vm476_vm0, %v1897_v26, 0.0  ;;  %1403 = vst [vmem:[%s2500_s23 + $0x88] sm:$0xff] %v1977_v56  ;;  %890 = vst [vmem:[%s2482_s20 + $0x80] sm:$0xff] %v795_v57  ;;  %v1307_v60 = vpop.f32.mrb[17].mxu1  ;;  %v1435_v44 = vsel %vm476_vm0, %v1977_v56, 0.0  ;;  %v986_v30 = vsel %vm475_vm1, %v795_v57, 0.0 }
 0x11e   : > { %v1532_v61 = vadd.f32 %v1531_v41, %v1501_v27  ;;  %v1016_v40 = vadd.f32 %v1015_v55, %v985_v4  ;;  %1402 = vst [vmem:[%s2500_s23 + $0x80] sm:$0xff] %v1307_v60  ;;  %vm482_vm6 = vcmp.lt.s32.totalorder %v2523_v13, 512  ;;  %v1055_v15 = vmul.f32 %v986_v30, %v986_v30 }
 0x11f   : > { %v1085_v16 = vadd.f32 %v1084_v1, %v1054_v5  ;;  %v1434_v2 = vsel %vm475_vm1, %v1307_v60, 0.0  ;;  %v1464_v18 = vadd.f32 %v1463_v59, %v1433_v37  ;;  %v1900_v19 = vpop.f32.mrb[18].mxu0  ;;  %vm481_vm7 = vcmp.lt.s32.totalorder %v2526_v14, 512 }
 0x120   : > { %v1056_v7 = vmul.f32 %v987_v6, %v987_v6  ;;  %v1017_v46 = vadd.f32 %v1016_v40, %v986_v30  ;;  %v1503_v21 = vmul.f32 %v1434_v2, %v1434_v2  ;;  %v1533_v20 = vadd.f32 %v1532_v61, %v1502_v58  ;;  %893 = vst [vmem:[%s2482_s20 + $0x98] sm:$0xff] %v1900_v19  ;;  %v1980_v22 = vpop.f32.mrb[18].mxu1  ;;  %v805_v17 = vpop.f32.mrb[19].mxu0 }
 0x121   : > { %v1504_v23 = vmul.f32 %v1435_v44, %v1435_v44  ;;  %v1086_v24 = vadd.f32 %v1085_v16, %v1055_v15  ;;  %v1465_v28 = vadd.f32 %v1464_v18, %v1434_v2  ;;  %v989_v8 = vsel %vm478_vm2, %v1900_v19, 0.0  ;;  %1405 = vst [vmem:[%s2500_s23 + $0x98] sm:$0xff] %v1980_v22  ;;  %892 = vst [vmem:[%s2482_s20 + $0x90] sm:$0xff] %v805_v17  ;;  %v1317_v3 = vpop.f32.mrb[19].mxu1 }
 0x122   : > { %v1534_v34 = vadd.f32 %v1533_v20, %v1503_v21  ;;  %v1437_v25 = vsel %vm478_vm2, %v1980_v22, 0.0  ;;  %v988_v39 = vsel %vm477_vm3, %v805_v17, 0.0  ;;  %v1018_v43 = vadd.f32 %v1017_v46, %v987_v6  ;;  %1404 = vst [vmem:[%s2500_s23 + $0x90] sm:$0xff] %v1317_v3 }
 0x123   : > { %vm484_vm8 = vcmp.lt.s32.totalorder %v2550_v45, 512  ;;  %v1057_v31 = vmul.f32 %v988_v39, %v988_v39  ;;  %v1087_v63 = vadd.f32 %v1086_v24, %v1056_v7  ;;  %v1436_v32 = vsel %vm477_vm3, %v1317_v3, 0.0  ;;  %v1903_v4 = vpop.f32.mrb[20].mxu0 }
 0x124   : > { %v1466_v33 = vadd.f32 %v1465_v28, %v1435_v44  ;;  %vm483_vm9 = vcmp.lt.s32.totalorder %v2553_v48, 512  ;;  %v1058_v9 = vmul.f32 %v989_v8, %v989_v8  ;;  %v1019_v35 = vadd.f32 %v1018_v43, %v988_v39  ;;  %895 = vst [vmem:[%s2482_s20 + $0xa8] sm:$0xff] %v1903_v4  ;;  %v1983_v47 = vpop.f32.mrb[20].mxu1  ;;  %v815_v50 = vpop.f32.mrb[21].mxu0 }
 0x125   : > { %v1505_v36 = vmul.f32 %v1436_v32, %v1436_v32  ;;  %v1535_v37 = vadd.f32 %v1534_v34, %v1504_v23  ;;  %v1506_v42 = vmul.f32 %v1437_v25, %v1437_v25  ;;  %v1088_v51 = vadd.f32 %v1087_v63, %v1057_v31  ;;  %1407 = vst [vmem:[%s2500_s23 + $0xa8] sm:$0xff] %v1983_v47  ;;  %v1327_v53 = vpop.f32.mrb[21].mxu1 }
 0x126   : > { %v1467_v52 = vadd.f32 %v1466_v33, %v1436_v32  ;;  %v991_v10 = vsel %vm480_vm4, %v1903_v4, 0.0  ;;  %894 = vst [vmem:[%s2482_s20 + $0xa0] sm:$0xff] %v815_v50  ;;  %v1439_v5 = vsel %vm480_vm4, %v1983_v47, 0.0  ;;  %v990_v55 = vsel %vm479_vm5, %v815_v50, 0.0  ;;  %1406 = vst [vmem:[%s2500_s23 + $0xa0] sm:$0xff] %v1327_v53 }
 0x127   : > { %v1536_v26 = vadd.f32 %v1535_v37, %v1505_v36  ;;  %v1020_v27 = vadd.f32 %v1019_v35, %v989_v8  ;;  %vm486_vm10 = vcmp.lt.s32.totalorder %v2556_v49, 512  ;;  %v1059_v41 = vmul.f32 %v990_v55, %v990_v55  ;;  %v1906_v1 = vpop.f32.mrb[22].mxu0 }
 0x128   : > { %v1089_v56 = vadd.f32 %v1088_v51, %v1058_v9  ;;  %v1438_v57 = vsel %vm479_vm5, %v1327_v53, 0.0  ;;  %v1468_v58 = vadd.f32 %v1467_v52, %v1437_v25  ;;  %vm485_vm11 = vcmp.lt.s32.totalorder %v2565_v54, 512  ;;  %897 = vst [vmem:[%s2482_s20 + $0xb8] sm:$0xff] %v1906_v1  ;;  %v1986_v61 = vpop.f32.mrb[22].mxu1  ;;  %v825_v44 = vpop.f32.mrb[23].mxu0 }
 0x129   : > { %v1060_v11 = vmul.f32 %v991_v10, %v991_v10  ;;  %v1021_v59 = vadd.f32 %v1020_v27, %v990_v55  ;;  %v1507_v6 = vmul.f32 %v1438_v57, %v1438_v57  ;;  %v1537_v60 = vadd.f32 %v1536_v26, %v1506_v42  ;;  %1409 = vst [vmem:[%s2500_s23 + $0xb8] sm:$0xff] %v1986_v61  ;;  %v1337_v16 = vpop.f32.mrb[23].mxu1 }
 0x12a   : > { %v1508_v30 = vmul.f32 %v1439_v5, %v1439_v5  ;;  %v1090_v40 = vadd.f32 %v1089_v56, %v1059_v41  ;;  %v1469_v15 = vadd.f32 %v1468_v58, %v1438_v57  ;;  %v993_v12 = vsel %vm482_vm6, %v1906_v1, 0.0  ;;  %896 = vst [vmem:[%s2482_s20 + $0xb0] sm:$0xff] %v825_v44  ;;  %1408 = vst [vmem:[%s2500_s23 + $0xb0] sm:$0xff] %v1337_v16 }
 0x12b   : > { %v1538_v2 = vadd.f32 %v1537_v60, %v1507_v6  ;;  %v1441_v18 = vsel %vm482_vm6, %v1986_v61, 0.0  ;;  %v992_v19 = vsel %vm481_vm7, %v825_v44, 0.0  ;;  %v1022_v7 = vadd.f32 %v1021_v59, %v991_v10  ;;  %v1909_v17 = vpop.f32.mrb[24].mxu0 }
 0x12c   : > { %vm488_vm12 = vcmp.lt.s32.totalorder %v2575_v62, 512  ;;  %v1061_v46 = vmul.f32 %v992_v19, %v992_v19  ;;  %v1091_v21 = vadd.f32 %v1090_v40, %v1060_v11  ;;  %v1440_v20 = vsel %vm481_vm7, %v1337_v16, 0.0  ;;  %899 = vst [vmem:[%s2482_s20 + $0xc8] sm:$0xff] %v1909_v17  ;;  %v1989_v8 = vpop.f32.mrb[24].mxu1  ;;  %v835_v3 = vpop.f32.mrb[25].mxu0 }
 0x12d   : > { %v1470_v22 = vadd.f32 %v1469_v15, %v1439_v5  ;;  %vm487_vm13 = vcmp.lt.s32.totalorder %v2578_v38, 512  ;;  %v1062_v13 = vmul.f32 %v993_v12, %v993_v12  ;;  %v1023_v23 = vadd.f32 %v1022_v7, %v992_v19  ;;  %1411 = vst [vmem:[%s2500_s23 + $0xc8] sm:$0xff] %v1989_v8  ;;  %898 = vst [vmem:[%s2482_s20 + $0xc0] sm:$0xff] %v835_v3  ;;  %v1347_v43 = vpop.f32.mrb[25].mxu1 }
 0x12e   : > { %v1509_v24 = vmul.f32 %v1440_v20, %v1440_v20  ;;  %v1539_v28 = vadd.f32 %v1538_v2, %v1508_v30  ;;  %v1510_v34 = vmul.f32 %v1441_v18, %v1441_v18  ;;  %v1092_v25 = vadd.f32 %v1091_v21, %v1061_v46  ;;  %1410 = vst [vmem:[%s2500_s23 + $0xc0] sm:$0xff] %v1347_v43 }
 0x12f   : > { %v1471_v39 = vadd.f32 %v1470_v22, %v1440_v20  ;;  %v995_v14 = vsel %vm484_vm8, %v1909_v17, 0.0  ;;  %v1443_v63 = vsel %vm484_vm8, %v1989_v8, 0.0  ;;  %v994_v32 = vsel %vm483_vm9, %v835_v3, 0.0  ;;  %v1912_v37 = vpop.f32.mrb[26].mxu0 }
 0x130   : > { %v1540_v31 = vadd.f32 %v1539_v28, %v1509_v24  ;;  %v1024_v33 = vadd.f32 %v1023_v23, %v993_v12  ;;  %vm490_vm14 = vcmp.lt.s32.totalorder %v2611_v29, 512  ;;  %v1063_v4 = vmul.f32 %v994_v32, %v994_v32  ;;  %901 = vst [vmem:[%s2482_s20 + $0xd8] sm:$0xff] %v1912_v37  ;;  %v1992_v51 = vpop.f32.mrb[26].mxu1  ;;  %v845_v52 = vpop.f32.mrb[27].mxu0 }
 0x131   : > { %v1093_v9 = vadd.f32 %v1092_v25, %v1062_v13  ;;  %v1442_v35 = vsel %vm483_vm9, %v1347_v43, 0.0  ;;  %v1472_v36 = vadd.f32 %v1471_v39, %v1441_v18  ;;  %vm489_vm15 = vcmp.lt.s32.totalorder %v2629_v0, 512  ;;  %1413 = vst [vmem:[%s2500_s23 + $0xd8] sm:$0xff] %v1992_v51  ;;  %900 = vst [vmem:[%s2482_s20 + $0xd0] sm:$0xff] %v845_v52  ;;  %v1357_v5 = vpop.f32.mrb[27].mxu1 }
 0x132   : > { %v1064_v45 = vmul.f32 %v995_v14, %v995_v14  ;;  %v1025_v47 = vadd.f32 %v1024_v33, %v994_v32  ;;  %v1511_v50 = vmul.f32 %v1442_v35, %v1442_v35  ;;  %v1541_v42 = vadd.f32 %v1540_v31, %v1510_v34  ;;  %1412 = vst [vmem:[%s2500_s23 + $0xd0] sm:$0xff] %v1357_v5 }
 0x133   : > { %v1512_v10 = vmul.f32 %v1443_v63, %v1443_v63  ;;  %v1094_v53 = vadd.f32 %v1093_v9, %v1063_v4  ;;  %v1473_v26 = vadd.f32 %v1472_v36, %v1442_v35  ;;  %v997_v48 = vsel %vm486_vm10, %v1912_v37, 0.0  ;;  %v1915_v59 = vpop.f32.mrb[28].mxu0 }
 0x134   : > { %v1542_v55 = vadd.f32 %v1541_v42, %v1511_v50  ;;  %v1445_v27 = vsel %vm486_vm10, %v1992_v51, 0.0  ;;  %v996_v41 = vsel %vm485_vm11, %v845_v52, 0.0  ;;  %v1026_v56 = vadd.f32 %v1025_v47, %v995_v14  ;;  %903 = vst [vmem:[%s2482_s20 + $0xe8] sm:$0xff] %v1915_v59  ;;  %v1995_v44 = vpop.f32.mrb[28].mxu1  ;;  %v855_v30 = vpop.f32.mrb[29].mxu0 }
 0x135   : > { %v1065_v57 = vmul.f32 %v996_v41, %v996_v41  ;;  %v1095_v58 = vadd.f32 %v1094_v53, %v1064_v45  ;;  %v1444_v1 = vsel %vm485_vm11, %v1357_v5, 0.0  ;;  %v1474_v11 = vadd.f32 %v1473_v26, %v1443_v63  ;;  %1415 = vst [vmem:[%s2500_s23 + $0xe8] sm:$0xff] %v1995_v44  ;;  %902 = vst [vmem:[%s2482_s20 + $0xe0] sm:$0xff] %v855_v30  ;;  %v1367_v54 = vpop.f32.mrb[29].mxu1 }
 0x136   : > { %v1066_v6 = vmul.f32 %v997_v48, %v997_v48  ;;  %v1027_v60 = vadd.f32 %v1026_v56, %v996_v41  ;;  %v1513_v61 = vmul.f32 %v1444_v1, %v1444_v1  ;;  %v1543_v49 = vadd.f32 %v1542_v55, %v1512_v10  ;;  %1414 = vst [vmem:[%s2500_s23 + $0xe0] sm:$0xff] %v1367_v54 }
 0x137   : > { %v1514_v40 = vmul.f32 %v1445_v27, %v1445_v27  ;;  %v1096_v15 = vadd.f32 %v1095_v58, %v1065_v57  ;;  %v1475_v12 = vadd.f32 %v1474_v11, %v1444_v1  ;;  %v999_v16 = vsel %vm488_vm12, %v1915_v59, 0.0  ;;  %v1918_v17 = vpop.f32.mrb[30].mxu0 }
 0x138   : > { %v1544_v2 = vadd.f32 %v1543_v49, %v1513_v61  ;;  %v1447_v18 = vsel %vm488_vm12, %v1995_v44, 0.0  ;;  %v998_v19 = vsel %vm487_vm13, %v855_v30, 0.0  ;;  %v1028_v7 = vadd.f32 %v1027_v60, %v997_v48  ;;  %905 = vst [vmem:[%s2482_s20 + $0xf8] sm:$0xff] %v1918_v17  ;;  %v1998_v28 = vpop.f32.mrb[30].mxu1  ;;  %v865_v8 = vpop.f32.mrb[31].mxu0 }
 0x139   : > { %v1067_v46 = vmul.f32 %v998_v19, %v998_v19  ;;  %v1097_v21 = vadd.f32 %v1096_v15, %v1066_v6  ;;  %v1446_v20 = vsel %vm487_vm13, %v1367_v54, 0.0  ;;  %v1476_v22 = vadd.f32 %v1475_v12, %v1445_v27  ;;  %1417 = vst [vmem:[%s2500_s23 + $0xf8] sm:$0xff] %v1998_v28  ;;  %904 = vst [vmem:[%s2482_s20 + $0xf0] sm:$0xff] %v865_v8  ;;  %v1377_v38 = vpop.f32.mrb[31].mxu1 }
 0x13a   : > { %v1068_v13 = vmul.f32 %v999_v16, %v999_v16  ;;  %v1029_v23 = vadd.f32 %v1028_v7, %v998_v19  ;;  %v1515_v24 = vmul.f32 %v1446_v20, %v1446_v20  ;;  %v1545_v62 = vadd.f32 %v1544_v2, %v1514_v40  ;;  %1416 = vst [vmem:[%s2500_s23 + $0xf0] sm:$0xff] %v1377_v38 }
 0x13b   : > { %v1516_v3 = vmul.f32 %v1447_v18, %v1447_v18  ;;  %v1098_v34 = vadd.f32 %v1097_v21, %v1067_v46  ;;  %v1477_v25 = vadd.f32 %v1476_v22, %v1446_v20  ;;  %v1001_v39 = vsel %vm490_vm14, %v1918_v17, 0.0 }
 0x13c   : > { %v1546_v14 = vadd.f32 %v1545_v62, %v1515_v24  ;;  %v1449_v43 = vsel %vm490_vm14, %v1998_v28, 0.0  ;;  %v1000_v31 = vsel %vm489_vm15, %v865_v8, 0.0  ;;  %v1030_v63 = vadd.f32 %v1029_v23, %v999_v16 }
 0x13d   : > { %v1069_v32 = vmul.f32 %v1000_v31, %v1000_v31  ;;  %v1099_v33 = vadd.f32 %v1098_v34, %v1068_v13  ;;  %v1448_v4 = vsel %vm489_vm15, %v1377_v38, 0.0  ;;  %v1478_v9 = vadd.f32 %v1477_v25, %v1447_v18 }
 0x13e   : > { %v1031_v35 = vadd.f32 %v1030_v63, %v1000_v31  ;;  %v1517_v36 = vmul.f32 %v1448_v4, %v1448_v4  ;;  %v1547_v37 = vadd.f32 %v1546_v14, %v1516_v3  ;;  %v1070_v45 = vmul.f32 %v1001_v39, %v1001_v39 }
 0x13f   : > { %v1100_v47 = vadd.f32 %v1099_v33, %v1069_v32  ;;  %v1479_v50 = vadd.f32 %v1478_v9, %v1448_v4  ;;  %v1518_v29 = vmul.f32 %v1449_v43, %v1449_v43  ;;  %vm1108_vm0 = vcmask 1040384  }
 0x140   : > { %v1032_v42 = vadd.f32 %v1031_v35, %v1001_v39  ;;  %v1548_v51 = vadd.f32 %v1547_v37, %v1517_v36  ;;  %vm1110_vm1 = vcmask 1041408  }
 0x141   : > { %v1101_v52 = vadd.f32 %v1100_v47, %v1070_v45  ;;  %v1480_v10 = vadd.f32 %v1479_v50, %v1449_v43 }
 0x142   : > { %v1033_v53 = vrot.slane %v1032_v42, 4  ;;  %v1549_v26 = vadd.f32 %v1548_v51, %v1518_v29 }
 0x143   : > { %v1102_v48 = vrot.slane %v1101_v52, 4  ;;  %v1481_v0 = vrot.slane %v1480_v10, 4 }
 0x144   : > { %v1034_v5 = vadd.f32 %v1033_v53, %v1032_v42  ;;  %v1550_v55 = vrot.slane %v1549_v26, 4 }
 0x145   : > { %v1103_v27 = vadd.f32 %v1102_v48, %v1101_v52  ;;  %v1482_v41 = vadd.f32 %v1481_v0, %v1480_v10 }
 0x146   : > { %v1035_v56 = vrot.slane %v1034_v5, 2  ;;  %v1551_v57 = vadd.f32 %v1550_v55, %v1549_v26 }
 0x147   : > { %v1104_v58 = vrot.slane %v1103_v27, 2  ;;  %v1483_v1 = vrot.slane %v1482_v41, 2 }
 0x148   : > { %v1036_v11 = vadd.f32 %v1035_v56, %v1034_v5  ;;  %v1552_v59 = vrot.slane %v1551_v57, 2 }
 0x149   : > { %v1105_v6 = vadd.f32 %v1104_v58, %v1103_v27  ;;  %v1484_v60 = vadd.f32 %v1483_v1, %v1482_v41 }
 0x14a   : > { %v1037_v61 = vrot.slane %v1036_v11, 1  ;;  %v1553_v49 = vadd.f32 %v1552_v59, %v1551_v57 }
 0x14b   : > { %v1106_v44 = vrot.slane %v1105_v6, 1  ;;  %v1485_v30 = vrot.slane %v1484_v60, 1 }
 0x14c   : > { %v1554_v40 = vrot.slane %v1553_v49, 1  ;;  %v1038_v15 = vadd.f32 %v1037_v61, %v1036_v11 }
 0x14d   : > { %v1107_v12 = vadd.f32 %v1106_v44, %v1105_v6  ;;  %v1486_v16 = vadd.f32 %v1485_v30, %v1484_v60 }
 0x14e   : > { %v1555_v54 = vadd.f32 %v1554_v40, %v1553_v49 }
 0x14f   : > { %v1109_v2 = vsel %vm1108_vm0, %v1038_v15, %v1107_v12 }
 0x150   : > { %v1111_v18 = vsel %vm1110_vm1, %v1109_v2, 0.0  ;;  %v1556_v19 = vsel %vm1108_vm0, %v1486_v16, %v1555_v54 }
 0x151   : > { %1112 = vst [vmem:[%s381_s26] sm:$0xff] %v1111_v18  ;;  %v1557_v7 = vsel %vm1110_vm1, %v1556_v19, 0.0 }
 0x152   : > { %1558 = vst [vmem:[%s391_s29] sm:$0xff] %v1557_v7 }
 0x153 PF: > { %s20_s30 = sadd.s32 1, %s2077_s30  }
 0x154   : > { %p17_p5 = scmp.ge.s32.totalorder %s20_s30, 4  }
 0x156   :  { %19 = sbr.rel (!%p17_p5) target bundleno = 1 (0x1), region = 113 }

// kernel: residual_block.5
= control target key start
LH: loop header
LB: loop body
LE: loop exit
PB: predicated region body
PF: predicated region fallthrough
CT: control target
= control target key end

     0   :  { %s2850_s18 = smov 0   ;;  %s4516_s0 = inlined_call_operand.vmem [shape: f32[2,16,16,128], index: 0, kind: input, shape index: {}]   ;;  %s4517_s1 = inlined_call_operand.vmem [shape: f32[1,128], index: 1, kind: input, shape index: {}]   ;;  %s4518_s2 = inlined_call_operand.vmem [shape: f32[1,128], index: 2, kind: input, shape index: {}]   ;;  %s4519_s3 = inlined_call_operand.vmem [shape: f32[1152,128], index: 3, kind: input, shape index: {}]   ;;  %s4520_s4 = inlined_call_operand.vmem [shape: f32[2,16,16,128], index: 4, kind: output, shape index: {0}]   ;;  %s4521_s5 = inlined_call_operand.vmem [shape: f32[2,8,128], index: 5, kind: output, shape index: {1}]  }
   0x1 LB: > { %s2241_s19 = sadd.s32 4294967295, %s2816_s18   ;;  %p2245_p0 = scmp.ge.s32.totalorder %s2816_s18, 1  ;;  %s2816_s18 = sphi %s2850_s18, %s16_s18  }
   0x2   : > { %p190_p1 = scmp.lt.s32.totalorder %s2816_s18, 3 }
   0x4   : > { %p191_p2 = pnand %p2245_p0, %p190_p1 }
   0x6   : > { %194 = sbr.rel (%p191_p2) target bundleno = 647 (0x287), region = 36 }
   0xd   : > { %v743_v0 = vld [vmem:[%s4519_s3] sm:$0xff]  ;;  %v744_v1 = vld [vmem:[%s4519_s3 + $0x8] sm:$0xff]  ;;  %v4533_v3 = vmov 0.0|0.0   ;;  %v745_v6 = vld [vmem:[%s4519_s3 + $0x10] sm:$0xff]  ;;  %v2819_v8 = vmov 0.0   ;;  %p222_p3 = scmp.lt.s32.totalorder %s2241_s19, 1 }
   0xe   : > { %v775_v2 = vld [vmem:[%s4519_s3 + $0x100] sm:$0xff]  ;;  %2385 = vmatprep.subr.bf16.mxu1 %v4533_v3  ;;  %2433 = vmatprep.subr.bf16.mxu0 %v4533_v3  ;;  %v2386_v4 = vpack.c.bf16 %v744_v1, %v743_v0  ;;  %v776_v5 = vld [vmem:[%s4519_s3 + $0x108] sm:$0xff]  ;;  %v746_v7 = vld [vmem:[%s4519_s3 + $0x18] sm:$0xff]  ;;  %378 = vst [vmem:[#allocation2] sm:$0xff] %v2819_v8  ;;  %vm2150_vm0 = vcmask 1040384   ;;  %vm2152_vm1 = vcmask 1041408  }
   0xf   : > { %379 = vst [vmem:[#allocation2 + $0x8] sm:$0xff] %v2819_v8  ;;  %380 = vst [vmem:[#allocation2 + $0x10] sm:$0x3] %v2819_v8  ;;  %v2434_v9 = vpack.c.bf16 %v776_v5, %v775_v2  ;;  %v777_v10 = vld [vmem:[%s4519_s3 + $0x110] sm:$0xff]  ;;  %v778_v11 = vld [vmem:[%s4519_s3 + $0x118] sm:$0xff]  ;;  %v2389_v12 = vpack.c.bf16 %v746_v7, %v745_v6  ;;  %s4619_s19 = smov (!%p222_p3, %s2241_s19), 1 }
  0x10   : > { %382 = vst [vmem:[#allocation2 + $0x198] sm:$0xff] %v2819_v8  ;;  %383 = vst [vmem:[#allocation2 + $0x1a0] sm:$0xff] %v2819_v8  ;;  %2387 = vmatpush1.bf16.msra.mxu1 %v2386_v4  ;;  %v2437_v13 = vpack.c.bf16 %v778_v11, %v777_v10  ;;  %v747_v14 = vld [vmem:[%s4519_s3 + $0x20] sm:$0xff]  ;;  %v748_v15 = vld [vmem:[%s4519_s3 + $0x28] sm:$0xff]  ;;  %s2255_s12 = sshll.u32 %s4619_s19, 8 }
  0x11   : > { %384 = vst [vmem:[#allocation2 + $0x1a8] sm:$0x3] %v2819_v8  ;;  %386 = vst [vmem:[#allocation2 + $0x18] sm:$0x1] %v2819_v8  ;;  %2435 = vmatpush1.bf16.msra.mxu0 %v2434_v9  ;;  %2388 = vmatprep.subr.bf16.mxu1 %v4533_v3  ;;  %v779_v16 = vld [vmem:[%s4519_s3 + $0x120] sm:$0xff]  ;;  %v780_v17 = vld [vmem:[%s4519_s3 + $0x128] sm:$0xff]  ;;  %v2392_v18 = vpack.c.bf16 %v748_v15, %v747_v14  ;;  %s2994_s25 = scalar_lea.vmem %s4516_s0, %s2255_s12  ;;  %s4274_s9 = scalar_lea.vmem %s4520_s4, %s2255_s12 }
  0x12   : > { %387 = vst [vmem:[#allocation2 + $0x30] sm:$0x1] %v2819_v8  ;;  %388 = vst [vmem:[#allocation2 + $0x48] sm:$0x1] %v2819_v8  ;;  %2436 = vmatprep.subr.bf16.mxu0 %v4533_v3  ;;  %v2440_v19 = vpack.c.bf16 %v780_v17, %v779_v16  ;;  %v749_v20 = vld [vmem:[%s4519_s3 + $0x30] sm:$0xff]  ;;  %v750_v21 = vld [vmem:[%s4519_s3 + $0x38] sm:$0xff] }
  0x13   : > { %389 = vst [vmem:[#allocation2 + $0x60] sm:$0x1] %v2819_v8  ;;  %390 = vst [vmem:[#allocation2 + $0x78] sm:$0x1] %v2819_v8  ;;  %v781_v22 = vld [vmem:[%s4519_s3 + $0x130] sm:$0xff]  ;;  %v782_v23 = vld [vmem:[%s4519_s3 + $0x138] sm:$0xff]  ;;  %v2395_v24 = vpack.c.bf16 %v750_v21, %v749_v20 }
  0x14   : > { %391 = vst [vmem:[#allocation2 + $0x90] sm:$0x1] %v2819_v8  ;;  %392 = vst [vmem:[#allocation2 + $0xa8] sm:$0x1] %v2819_v8  ;;  %2390 = vmatpush1.bf16.msra.mxu1 %v2389_v12  ;;  %v2443_v25 = vpack.c.bf16 %v782_v23, %v781_v22  ;;  %v751_v26 = vld [vmem:[%s4519_s3 + $0x40] sm:$0xff]  ;;  %v752_v27 = vld [vmem:[%s4519_s3 + $0x48] sm:$0xff] }
  0x15   : > { %393 = vst [vmem:[#allocation2 + $0xc0] sm:$0x1] %v2819_v8  ;;  %394 = vst [vmem:[#allocation2 + $0xd8] sm:$0x1] %v2819_v8  ;;  %2438 = vmatpush1.bf16.msra.mxu0 %v2437_v13  ;;  %2391 = vmatprep.subr.bf16.mxu1 %v4533_v3  ;;  %v783_v28 = vld [vmem:[%s4519_s3 + $0x140] sm:$0xff]  ;;  %v784_v29 = vld [vmem:[%s4519_s3 + $0x148] sm:$0xff]  ;;  %v2398_v30 = vpack.c.bf16 %v752_v27, %v751_v26 }
  0x16   : > { %395 = vst [vmem:[#allocation2 + $0xf0] sm:$0x1] %v2819_v8  ;;  %396 = vst [vmem:[#allocation2 + $0x108] sm:$0x1] %v2819_v8  ;;  %2439 = vmatprep.subr.bf16.mxu0 %v4533_v3  ;;  %v2446_v31 = vpack.c.bf16 %v784_v29, %v783_v28  ;;  %v753_v32 = vld [vmem:[%s4519_s3 + $0x50] sm:$0xff]  ;;  %v754_v33 = vld [vmem:[%s4519_s3 + $0x58] sm:$0xff] }
  0x17   : > { %397 = vst [vmem:[#allocation2 + $0x120] sm:$0x1] %v2819_v8  ;;  %398 = vst [vmem:[#allocation2 + $0x138] sm:$0x1] %v2819_v8  ;;  %v785_v34 = vld [vmem:[%s4519_s3 + $0x150] sm:$0xff]  ;;  %v786_v35 = vld [vmem:[%s4519_s3 + $0x158] sm:$0xff]  ;;  %v2401_v36 = vpack.c.bf16 %v754_v33, %v753_v32 }
  0x18   : > { %399 = vst [vmem:[#allocation2 + $0x150] sm:$0x1] %v2819_v8  ;;  %400 = vst [vmem:[#allocation2 + $0x168] sm:$0x1] %v2819_v8  ;;  %2393 = vmatpush1.bf16.msra.mxu1 %v2392_v18  ;;  %v2449_v37 = vpack.c.bf16 %v786_v35, %v785_v34  ;;  %v755_v38 = vld [vmem:[%s4519_s3 + $0x60] sm:$0xff]  ;;  %v756_v39 = vld [vmem:[%s4519_s3 + $0x68] sm:$0xff] }
  0x19   : > { %401 = vst [vmem:[#allocation2 + $0x180] sm:$0x1] %v2819_v8  ;;  %404 = vst [vmem:[#allocation2 + $0x29] sm:$0x1] %v2819_v8  ;;  %2441 = vmatpush1.bf16.msra.mxu0 %v2440_v19  ;;  %2394 = vmatprep.subr.bf16.mxu1 %v4533_v3  ;;  %v787_v40 = vld [vmem:[%s4519_s3 + $0x160] sm:$0xff]  ;;  %v788_v41 = vld [vmem:[%s4519_s3 + $0x168] sm:$0xff]  ;;  %v2404_v46 = vpack.c.bf16 %v756_v39, %v755_v38 }
  0x1a   : > { %405 = vst [vmem:[#allocation2 + $0x41] sm:$0x1] %v2819_v8  ;;  %406 = vst [vmem:[#allocation2 + $0x59] sm:$0x1] %v2819_v8  ;;  %2442 = vmatprep.subr.bf16.mxu0 %v4533_v3  ;;  %v486_v42 = vld [vmem:[#allocation2 + $0x1] sm:$0xff]  ;;  %v757_v47 = vld [vmem:[%s4519_s3 + $0x70] sm:$0xff]  ;;  %v2452_v50 = vpack.c.bf16 %v788_v41, %v787_v40 }
  0x1b   : > { %407 = vst [vmem:[#allocation2 + $0x71] sm:$0x1] %v2819_v8  ;;  %408 = vst [vmem:[#allocation2 + $0x89] sm:$0x1] %v2819_v8  ;;  %v236_v43 = vld [vmem:[%s2994_s25] sm:$0xff]  ;;  %951 = vmatprep.mubr.f32.mxu1 %v486_v42  ;;  %v758_v48 = vld [vmem:[%s4519_s3 + $0x78] sm:$0xff] }
  0x1c   : > { %409 = vst [vmem:[#allocation2 + $0xa1] sm:$0x1] %v2819_v8  ;;  %410 = vst [vmem:[#allocation2 + $0xb9] sm:$0x1] %v2819_v8  ;;  %2396 = vmatpush1.bf16.msra.mxu1 %v2395_v24  ;;  %v3014_v44 = vld [vmem:[%s4517_s1] ss:$0 sm:$0xff]  ;;  %v2407_v57 = vpack.c.bf16 %v758_v48, %v757_v47 }
  0x1d   : > { %411 = vst [vmem:[#allocation2 + $0xd1] sm:$0x1] %v2819_v8  ;;  %412 = vst [vmem:[#allocation2 + $0xe9] sm:$0x1] %v2819_v8  ;;  %2444 = vmatpush1.bf16.msra.mxu0 %v2443_v25  ;;  %2397 = vmatprep.subr.bf16.mxu1 %v4533_v3  ;;  %v3019_v45 = vld [vmem:[%s4518_s2] ss:$0 sm:$0xff]  ;;  %v275_v49 = vmul.f32 %v3014_v44, %v236_v43 }
  0x1e   : > { %413 = vst [vmem:[#allocation2 + $0x101] sm:$0x1] %v2819_v8  ;;  %414 = vst [vmem:[#allocation2 + $0x119] sm:$0x1] %v2819_v8  ;;  %2445 = vmatprep.subr.bf16.mxu0 %v4533_v3  ;;  %v237_v51 = vld [vmem:[%s2994_s25 + $0x8] sm:$0xff]  ;;  %v789_v52 = vld [vmem:[%s4519_s3 + $0x170] sm:$0xff] }
  0x1f   : > { %415 = vst [vmem:[#allocation2 + $0x131] sm:$0x1] %v2819_v8  ;;  %416 = vst [vmem:[#allocation2 + $0x149] sm:$0x1] %v2819_v8  ;;  %v790_v53 = vld [vmem:[%s4519_s3 + $0x178] sm:$0xff]  ;;  %v3038_v54 = vadd.f32 %v3019_v45, %v275_v49  ;;  %v276_v55 = vmul.f32 %v3014_v44, %v237_v51  ;;  %v238_v56 = vld [vmem:[%s2994_s25 + $0x10] sm:$0xff] }
  0x20   : > { %417 = vst [vmem:[#allocation2 + $0x161] sm:$0x1] %v2819_v8  ;;  %418 = vst [vmem:[#allocation2 + $0x179] sm:$0x1] %v2819_v8  ;;  %2399 = vmatpush1.bf16.msra.mxu1 %v2398_v30  ;;  %v3045_v58 = vld [vmem:[%s4519_s3 + $0x80] sm:$0xff]  ;;  %v277_v59 = vmul.f32 %v3014_v44, %v238_v56  ;;  %v239_v60 = vld [vmem:[%s2994_s25 + $0x18] sm:$0xff]  ;;  %v2455_v6 = vpack.c.bf16 %v790_v53, %v789_v52 }
  0x21   : > { %419 = vst [vmem:[#allocation2 + $0x191] sm:$0x1] %v2819_v8  ;;  %385 = vst [vmem:[#allocation2] sm:$0x1] %v2819_v8  ;;  %2447 = vmatpush1.bf16.msra.mxu0 %v2446_v31  ;;  %2400 = vmatprep.subr.bf16.mxu1 %v4533_v3  ;;  %v240_v61 = vld [vmem:[%s2994_s25 + $0x20] sm:$0xff]  ;;  %v760_v62 = vld [vmem:[%s4519_s3 + $0x88] sm:$0xff]  ;;  %v3055_v0 = vadd.f32 %v3019_v45, %v276_v55  ;;  %v278_v1 = vmul.f32 %v3014_v44, %v239_v60 }
  0x22   : > { %402 = vst [vmem:[#allocation2 + $0x198] sm:$0x1] %v2819_v8  ;;  %403 = vst [vmem:[#allocation2 + $0x11] sm:$0x1] %v2819_v8  ;;  %2448 = vmatprep.subr.bf16.mxu0 %v4533_v3  ;;  %v346_v63 = vmax.f32 %v3038_v54, 0.0  ;;  %v279_v2 = vmul.f32 %v3014_v44, %v240_v61  ;;  %v241_v4 = vld [vmem:[%s2994_s25 + $0x28] sm:$0xff]  ;;  %v3063_v7 = vadd.f32 %v3019_v45, %v277_v59 }
  0x23   : > { %420 = vst [vmem:[#allocation2 + $0x1a9] sm:$0x1] %v2819_v8  ;;  %v242_v5 = vld [vmem:[%s2994_s25 + $0x30] sm:$0xff]  ;;  %v280_v9 = vmul.f32 %v3014_v44, %v241_v4  ;;  %v243_v10 = vld [vmem:[%s2994_s25 + $0x38] sm:$0xff]  ;;  %v791_v11 = vld [vmem:[%s4519_s3 + $0x180] sm:$0xff]  ;;  %v347_v13 = vmax.f32 %v3055_v0, 0.0  ;;  %v3078_v14 = vadd.f32 %v3019_v45, %v278_v1  ;;  %v2410_v18 = vpack.c.bf16 %v760_v62, %v3045_v58 }
  0x24   : > { %2402 = vmatpush1.bf16.msra.mxu1 %v2401_v36  ;;  %v792_v12 = vld [vmem:[%s4519_s3 + $0x188] sm:$0xff]  ;;  %422 = vst [vmem:[#allocation2 + $0x19] sm:$0xff] %v346_v63  ;;  %v3081_v15 = vadd.f32 %v3019_v45, %v279_v2  ;;  %v281_v16 = vmul.f32 %v3014_v44, %v242_v5  ;;  %v244_v17 = vld [vmem:[%s2994_s25 + $0x40] sm:$0xff]  ;;  %v348_v19 = vmax.f32 %v3063_v7, 0.0  ;;  %v282_v21 = vmul.f32 %v3014_v44, %v243_v10  ;;  %v246_v23 = vld [vmem:[%s2994_s25 + $0x50] sm:$0xff]  ;;  %s2250_s12 = sshll.u32 %s4619_s19, 3 }
  0x25   : > { %2450 = vmatpush1.bf16.msra.mxu0 %v2449_v37  ;;  %2403 = vmatprep.subr.bf16.mxu1 %v4533_v3  ;;  %v3088_v20 = vadd.f32 %v3019_v45, %v280_v9  ;;  %v245_v22 = vld [vmem:[%s2994_s25 + $0x48] sm:$0xff]  ;;  %v761_v24 = vld [vmem:[%s4519_s3 + $0x90] sm:$0xff]  ;;  %423 = vst [vmem:[#allocation2 + $0x21] sm:$0xff] %v347_v13  ;;  %v349_v25 = vmax.f32 %v3078_v14, 0.0  ;;  %v283_v28 = vmul.f32 %v3014_v44, %v244_v17  ;;  %v247_v29 = vld [vmem:[%s2994_s25 + $0x58] sm:$0xff]  ;;  %s235_s13 = scalar_lea.vmem %s4521_s5, %s2250_s12 }
  0x26   : > { %2451 = vmatprep.subr.bf16.mxu0 %v4533_v3  ;;  %v350_v26 = vmax.f32 %v3081_v15, 0.0  ;;  %v3101_v27 = vadd.f32 %v3019_v45, %v281_v16  ;;  %v248_v30 = vld [vmem:[%s2994_s25 + $0x60] sm:$0xff]  ;;  %v2458_v31 = vpack.c.bf16 %v792_v12, %v791_v11  ;;  %v762_v32 = vld [vmem:[%s4519_s3 + $0x98] sm:$0xff]  ;;  %v793_v33 = vld [vmem:[%s4519_s3 + $0x190] sm:$0xff]  ;;  %424 = vst [vmem:[#allocation2 + $0x31] sm:$0xff] %v348_v19  ;;  %v3120_v36 = vadd.f32 %v3019_v45, %v282_v21 }
  0x27   : > { %v794_v34 = vld [vmem:[%s4519_s3 + $0x198] sm:$0xff]  ;;  %v351_v35 = vmax.f32 %v3088_v20, 0.0  ;;  %v284_v37 = vmul.f32 %v3014_v44, %v245_v22  ;;  %425 = vst [vmem:[#allocation2 + $0x39] sm:$0xff] %v349_v25  ;;  %v3130_v39 = vadd.f32 %v3019_v45, %v283_v28  ;;  %v285_v40 = vmul.f32 %v3014_v44, %v246_v23  ;;  %v249_v41 = vld [vmem:[%s2994_s25 + $0x68] sm:$0xff]  ;;  %v3137_v42 = vld [vmem:[%s4519_s3 + $0xa0] sm:$0xff] }
  0x28   : > { %2405 = vmatpush1.bf16.msra.mxu1 %v2404_v46  ;;  %426 = vst [vmem:[#allocation2 + $0x49] sm:$0xff] %v350_v26  ;;  %v352_v38 = vmax.f32 %v3101_v27, 0.0  ;;  %v353_v43 = vmax.f32 %v3120_v36, 0.0  ;;  %v286_v47 = vmul.f32 %v3014_v44, %v247_v29  ;;  %v287_v48 = vmul.f32 %v3014_v44, %v248_v30  ;;  %v250_v49 = vld [vmem:[%s2994_s25 + $0x70] sm:$0xff]  ;;  %v764_v52 = vld [vmem:[%s4519_s3 + $0xa8] sm:$0xff]  ;;  %v795_v53 = vld [vmem:[%s4519_s3 + $0x1a0] sm:$0xff] }
  0x29   : > { %2453 = vmatpush1.bf16.msra.mxu0 %v2452_v50  ;;  %2406 = vmatprep.subr.bf16.mxu1 %v4533_v3  ;;  %427 = vst [vmem:[#allocation2 + $0x51] sm:$0xff] %v351_v35  ;;  %v3143_v46 = vadd.f32 %v3019_v45, %v284_v37  ;;  %v2413_v50 = vpack.c.bf16 %v762_v32, %v761_v24  ;;  %v354_v55 = vmax.f32 %v3130_v39, 0.0  ;;  %v796_v58 = vld [vmem:[%s4519_s3 + $0x1a8] sm:$0xff]  ;;  %v252_v2 = vld [vmem:[%s2994_s25 + $0x80] sm:$0xff]  ;;  %v254_v22 = vld [vmem:[%s2994_s25 + $0x90] sm:$0xff] }
  0x2a   : > { %2454 = vmatprep.subr.bf16.mxu0 %v4533_v3  ;;  %v2461_v51 = vpack.c.bf16 %v794_v34, %v793_v33  ;;  %428 = vst [vmem:[#allocation2 + $0x61] sm:$0xff] %v352_v38  ;;  %v324_v56 = vadd.f32 %v3019_v45, %v285_v40  ;;  %429 = vst [vmem:[#allocation2 + $0x69] sm:$0xff] %v353_v43  ;;  %v325_v61 = vadd.f32 %v3019_v45, %v286_v47  ;;  %v765_v23 = vld [vmem:[%s4519_s3 + $0xb0] sm:$0xff]  ;;  %v766_v24 = vld [vmem:[%s4519_s3 + $0xb8] sm:$0xff] }
  0x2b   : > { %v3163_v59 = vld [vmem:[#allocation2 + $0x18] sm:$0xff]  ;;  %v355_v60 = vmax.f32 %v3143_v46, 0.0  ;;  %v3170_v62 = vadd.f32 %v3019_v45, %v287_v48  ;;  %v288_v1 = vmul.f32 %v3014_v44, %v249_v41  ;;  %430 = vst [vmem:[#allocation2 + $0x79] sm:$0xff] %v354_v55  ;;  %v289_v5 = vmul.f32 %v3014_v44, %v250_v49  ;;  %v797_v32 = vld [vmem:[%s4519_s3 + $0x1b0] sm:$0xff]  ;;  %v851_v14 = vld [vmem:[%s4519_s3 + $0x360] sm:$0xff] }
  0x2c   : > { %2408 = vmatpush1.bf16.msra.mxu1 %v2407_v57  ;;  %v251_v57 = vld [vmem:[%s2994_s25 + $0x78] sm:$0xff]  ;;  %1176 = vmatprep.mubr.f32.mxu0 %v3163_v59  ;;  %v3178_v4 = vmax.f32 %v324_v56, 0.0  ;;  %v3184_v9 = vmax.f32 %v325_v61, 0.0  ;;  %v2416_v16 = vpack.c.bf16 %v764_v52, %v3137_v42  ;;  %v2464_v17 = vpack.c.bf16 %v796_v58, %v795_v53  ;;  %v799_v56 = vld [vmem:[%s4519_s3 + $0x1c0] sm:$0xff]  ;;  %v849_v7 = vld [vmem:[%s4519_s3 + $0x350] sm:$0xff] }
  0x2d   : > { %2456 = vmatpush1.bf16.msra.mxu0 %v2455_v6  ;;  %2409 = vmatprep.subr.bf16.mxu1 %v4533_v3  ;;  %v253_v6 = vld [vmem:[%s2994_s25 + $0x88] sm:$0xff]  ;;  %431 = vst [vmem:[#allocation2 + $0x81] sm:$0xff] %v355_v60  ;;  %v358_v10 = vmax.f32 %v3170_v62, 0.0  ;;  %v3188_v11 = vadd.f32 %v3019_v45, %v288_v1  ;;  %v290_v12 = vmul.f32 %v3014_v44, %v251_v57  ;;  %v798_v33 = vld [vmem:[%s4519_s3 + $0x1b8] sm:$0xff]  ;;  %v256_v61 = vld [vmem:[%s2994_s25 + $0xa0] sm:$0xff] }
  0x2e   : > { %2457 = vmatprep.subr.bf16.mxu0 %v4533_v3  ;;  %432 = vst [vmem:[#allocation2 + $0x91] sm:$0xff] %v3178_v4  ;;  %v291_v21 = vmul.f32 %v3014_v44, %v252_v2  ;;  %433 = vst [vmem:[#allocation2 + $0x99] sm:$0xff] %v3184_v9  ;;  %v292_v30 = vmul.f32 %v3014_v44, %v253_v6  ;;  %v2419_v47 = vpack.c.bf16 %v766_v24, %v765_v23  ;;  %v800_v57 = vld [vmem:[%s4519_s3 + $0x1c8] sm:$0xff]  ;;  %v255_v58 = vld [vmem:[%s2994_s25 + $0x98] sm:$0xff] }
  0x2f   : > { %434 = vst [vmem:[#allocation2 + $0xa9] sm:$0xff] %v358_v10  ;;  %v359_v28 = vmax.f32 %v3188_v11, 0.0  ;;  %v3210_v29 = vadd.f32 %v3019_v45, %v290_v12  ;;  %v2467_v49 = vpack.c.bf16 %v798_v33, %v797_v32  ;;  %v294_v2 = vmul.f32 %v3014_v44, %v255_v58  ;;  %v769_v12 = vld [vmem:[%s4519_s3 + $0xd0] sm:$0xff]  ;;  %v771_v33 = vld [vmem:[%s4519_s3 + $0xe0] sm:$0xff]  ;;  %v814_v54 = vld [vmem:[%s4519_s3 + $0x238] sm:$0xff] }
  0x30   : > { %2411 = vmatpush1.bf16.msra.mxu1 %v2410_v18  ;;  %v3194_v18 = vadd.f32 %v3019_v45, %v289_v5  ;;  %v3223_v37 = vadd.f32 %v3019_v45, %v291_v21  ;;  %v3229_v41 = vadd.f32 %v3019_v45, %v292_v30  ;;  %v295_v5 = vmul.f32 %v3014_v44, %v256_v61  ;;  %v802_v21 = vld [vmem:[%s4519_s3 + $0x1d8] sm:$0xff] }
  0x31   : > { %2459 = vmatpush1.bf16.msra.mxu0 %v2458_v31  ;;  %2412 = vmatprep.subr.bf16.mxu1 %v4533_v3  ;;  %v293_v31 = vmul.f32 %v3014_v44, %v254_v22  ;;  %435 = vst [vmem:[#allocation2 + $0xb1] sm:$0xff] %v359_v28  ;;  %v4529_v40 = vmax.f32 %v3210_v29, 0.0  ;;  %v2470_v6 = vpack.c.bf16 %v800_v57, %v799_v56  ;;  %v258_v57 = vld [vmem:[%s2994_s25 + $0xb0] sm:$0xff]  ;;  %v838_v62 = vld [vmem:[%s4519_s3 + $0x2f8] sm:$0xff] }
  0x32   : > { %2460 = vmatprep.subr.bf16.mxu0 %v4533_v3  ;;  %v4530_v34 = vmax.f32 %v3194_v18, 0.0  ;;  %v4528_v48 = vmax.f32 %v3223_v37, 0.0  ;;  %v4527_v52 = vmax.f32 %v3229_v41, 0.0  ;;  %v3280_v22 = vadd.f32 %v3019_v45, %v294_v2 }
  0x33   : > { %v3232_v42 = vadd.f32 %v3019_v45, %v293_v31  ;;  %437 = vst [vmem:[#allocation2 + $0xc9] sm:$0xff] %v4529_v40  ;;  %v3283_v23 = vadd.f32 %v3019_v45, %v295_v5  ;;  %v773_v5 = vld [vmem:[%s4519_s3 + $0xf0] sm:$0xff] }
  0x34   : > { %2414 = vmatpush1.bf16.msra.mxu1 %v2413_v50  ;;  %436 = vst [vmem:[#allocation2 + $0xc1] sm:$0xff] %v4530_v34  ;;  %v767_v50 = vld [vmem:[%s4519_s3 + $0xc0] sm:$0xff]  ;;  %438 = vst [vmem:[#allocation2 + $0xd9] sm:$0xff] %v4528_v48  ;;  %v4525_v30 = vmax.f32 %v3280_v22, 0.0  ;;  %v553_v34 = vld [vmem:[#allocation2 + $0x38] sm:$0xff] }
  0x35   : > { %2462 = vmatpush1.bf16.msra.mxu0 %v2461_v51  ;;  %2415 = vmatprep.subr.bf16.mxu1 %v4533_v3  ;;  %v768_v51 = vld [vmem:[%s4519_s3 + $0xc8] sm:$0xff]  ;;  %v4526_v53 = vmax.f32 %v3232_v42, 0.0  ;;  %439 = vst [vmem:[#allocation2 + $0xe1] sm:$0xff] %v4527_v52  ;;  %v4524_v31 = vmax.f32 %v3283_v23, 0.0 }
  0x36   : > { %2463 = vmatprep.subr.bf16.mxu0 %v4533_v3  ;;  %v2422_v1 = vpack.c.bf16 %v768_v51, %v767_v50  ;;  %v803_v50 = vld [vmem:[%s4519_s3 + $0x1e0] sm:$0xff]  ;;  %v804_v51 = vld [vmem:[%s4519_s3 + $0x1e8] sm:$0xff]  ;;  %441 = vst [vmem:[#allocation2 + $0xf9] sm:$0xff] %v4525_v30 }
  0x37   : > { %440 = vst [vmem:[#allocation2 + $0xf1] sm:$0xff] %v4526_v53  ;;  %442 = vst [vmem:[#allocation2 + $0x109] sm:$0xff] %v4524_v31  ;;  %v2476_v2 = vpack.c.bf16 %v804_v51, %v803_v50  ;;  %v487_v31 = vld [vmem:[#allocation2 + $0x9] sm:$0xff]  ;;  %v264_v30 = vld [vmem:[%s2994_s25 + $0xe0] sm:$0xff] }
  0x38   : > { %2417 = vmatpush1.bf16.msra.mxu1 %v2416_v16  ;;  %v770_v16 = vld [vmem:[%s4519_s3 + $0xd8] sm:$0xff]  ;;  %v303_v53 = vmul.f32 %v3014_v44, %v264_v30 }
  0x39   : > { %2465 = vmatpush1.bf16.msra.mxu0 %v2464_v17  ;;  %2418 = vmatprep.subr.bf16.mxu1 %v4533_v3  ;;  %v801_v17 = vld [vmem:[%s4519_s3 + $0x1d0] sm:$0xff]  ;;  %v2425_v24 = vpack.c.bf16 %v770_v16, %v769_v12  ;;  %v259_v12 = vld [vmem:[%s2994_s25 + $0xb8] sm:$0xff] }
  0x3a   : > { %2466 = vmatprep.subr.bf16.mxu0 %v4533_v3  ;;  %v2473_v32 = vpack.c.bf16 %v802_v21, %v801_v17  ;;  %v805_v16 = vld [vmem:[%s4519_s3 + $0x1f0] sm:$0xff]  ;;  %v806_v17 = vld [vmem:[%s4519_s3 + $0x1f8] sm:$0xff]  ;;  %v342_v30 = vadd.f32 %v3019_v45, %v303_v53 }
  0x3b   : > { %v3408_v53 = vld [vmem:[#allocation2 + $0x30] sm:$0xff] }
  0x3c   : > { %2420 = vmatpush1.bf16.msra.mxu1 %v2419_v47  ;;  %v772_v47 = vld [vmem:[%s4519_s3 + $0xe8] sm:$0xff] }
  0x3d   : > { %2468 = vmatpush1.bf16.msra.mxu0 %v2467_v49  ;;  %2421 = vmatprep.subr.bf16.mxu1 %v4533_v3  ;;  %v257_v49 = vld [vmem:[%s2994_s25 + $0xa8] sm:$0xff]  ;;  %v2428_v58 = vpack.c.bf16 %v772_v47, %v771_v33  ;;  %v260_v33 = vld [vmem:[%s2994_s25 + $0xc0] sm:$0xff] }
  0x3e   : > { %2469 = vmatprep.subr.bf16.mxu0 %v4533_v3  ;;  %v296_v56 = vmul.f32 %v3014_v44, %v257_v49  ;;  %v299_v47 = vmul.f32 %v3014_v44, %v260_v33 }
  0x40   : > { %2423 = vmatpush1.bf16.msra.mxu1 %v2422_v1  ;;  %v3309_v61 = vadd.f32 %v3019_v45, %v296_v56  ;;  %v297_v1 = vmul.f32 %v3014_v44, %v258_v57  ;;  %v261_v56 = vld [vmem:[%s2994_s25 + $0xc8] sm:$0xff]  ;;  %v2479_v57 = vpack.c.bf16 %v806_v17, %v805_v16  ;;  %v839_v16 = vld [vmem:[%s4519_s3 + $0x300] sm:$0xff] }
  0x41   : > { %2471 = vmatpush1.bf16.msra.mxu0 %v2470_v6  ;;  %2424 = vmatprep.subr.bf16.mxu1 %v4533_v3  ;;  %v774_v6 = vld [vmem:[%s4519_s3 + $0xf8] sm:$0xff]  ;;  %v840_v17 = vld [vmem:[%s4519_s3 + $0x308] sm:$0xff] }
  0x42   : > { %2472 = vmatprep.subr.bf16.mxu0 %v4533_v3  ;;  %v4523_v21 = vmax.f32 %v3309_v61, 0.0  ;;  %v2431_v49 = vpack.c.bf16 %v774_v6, %v773_v5  ;;  %v808_v5 = vld [vmem:[%s4519_s3 + $0x208] sm:$0xff]  ;;  %v262_v6 = vld [vmem:[%s2994_s25 + $0xd0] sm:$0xff] }
  0x44   : > { %2426 = vmatpush1.bf16.msra.mxu1 %v2425_v24  ;;  %v3329_v24 = vadd.f32 %v3019_v45, %v297_v1  ;;  %443 = vst [vmem:[#allocation2 + $0x111] sm:$0xff] %v4523_v21  ;;  %v338_v1 = vadd.f32 %v3019_v45, %v299_v47  ;;  %v301_v47 = vmul.f32 %v3014_v44, %v262_v6 }
  0x45   : > { %2474 = vmatpush1.bf16.msra.mxu0 %v2473_v32  ;;  %2427 = vmatprep.subr.bf16.mxu1 %v4533_v3  ;;  %v298_v32 = vmul.f32 %v3014_v44, %v259_v12  ;;  %v300_v12 = vmul.f32 %v3014_v44, %v261_v56  ;;  %v454_v56 = vld [vmem:[#allocation2] sm:$0xff] }
  0x46   : > { %2475 = vmatprep.subr.bf16.mxu0 %v4533_v3  ;;  %v4522_v50 = vmax.f32 %v3329_v24, 0.0 }
  0x47   : > { %v337_v51 = vadd.f32 %v3019_v45, %v298_v32  ;;  %v3360_v32 = vmax.f32 %v338_v1, 0.0  ;;  %v339_v33 = vadd.f32 %v3019_v45, %v300_v12  ;;  %v809_v1 = vld [vmem:[%s4519_s3 + $0x210] sm:$0xff] }
  0x48   : > { %2429 = vmatpush1.bf16.msra.mxu1 %v2428_v58  ;;  %v807_v58 = vld [vmem:[%s4519_s3 + $0x200] sm:$0xff]  ;;  %444 = vst [vmem:[#allocation2 + $0x121] sm:$0xff] %v4522_v50  ;;  %v263_v50 = vld [vmem:[%s2994_s25 + $0xd8] sm:$0xff] }
  0x49   : > { %2477 = vmatpush1.bf16.msra.mxu0 %v2476_v2  ;;  %2430 = vmatprep.subr.bf16.mxu1 %v4533_v3  ;;  %v3351_v2 = vmax.f32 %v337_v51, 0.0  ;;  %v518_v51 = vld [vmem:[#allocation2 + $0x2] sm:$0xff]  ;;  %v2482_v21 = vpack.c.bf16 %v808_v5, %v807_v58  ;;  %446 = vst [vmem:[#allocation2 + $0x139] sm:$0xff] %v3360_v32  ;;  %v3371_v12 = vmax.f32 %v339_v33, 0.0  ;;  %v302_v6 = vmul.f32 %v3014_v44, %v263_v50  ;;  %v810_v58 = vld [vmem:[%s4519_s3 + $0x218] sm:$0xff]  ;;  %v841_v50 = vld [vmem:[%s4519_s3 + $0x310] sm:$0xff] }
  0x4a   : > { %2478 = vmatprep.subr.bf16.mxu0 %v4533_v3  ;;  %v3382_v5 = vpack.c.bf16 %v840_v17, %v839_v16  ;;  %v265_v33 = vld [vmem:[%s2994_s25 + $0xe8] sm:$0xff]  ;;  %v266_v17 = vld [vmem:[%s2994_s25 + $0xf0] sm:$0xff]  ;;  %v2485_v40 = vpack.c.bf16 %v810_v58, %v809_v1  ;;  %v3417_v58 = vmax.f32 %v342_v30, 0.0 }
  0x4b   : > { %445 = vst [vmem:[#allocation2 + $0x129] sm:$0xff] %v3351_v2  ;;  %447 = vst [vmem:[#allocation2 + $0x141] sm:$0xff] %v3371_v12  ;;  %v341_v48 = vadd.f32 %v3019_v45, %v302_v6  ;;  %v304_v16 = vmul.f32 %v3014_v44, %v265_v33  ;;  %v843_v33 = vld [vmem:[%s4519_s3 + $0x320] sm:$0xff] }
  0x4c   : > { %2432 = vmatpush1.bf16.msra.mxu1 %v2431_v49  ;;  %v340_v49 = vadd.f32 %v3019_v45, %v301_v47  ;;  %v842_v47 = vld [vmem:[%s4519_s3 + $0x318] sm:$0xff]  ;;  %450 = vst [vmem:[#allocation2 + $0x169] sm:$0xff] %v3417_v58 }
  0x4d   : > { %2480 = vmatpush1.bf16.msra.mxu0 %v2479_v57  ;;  %2609 = vmatprep.subr.bf16.mxu1 %v4533_v3  ;;  %v3377_v57 = vld [vmem:[#allocation2 + $0x20] sm:$0xff]  ;;  %v3404_v6 = vmax.f32 %v341_v48, 0.0  ;;  %v3415_v1 = vpack.c.bf16 %v842_v47, %v841_v50  ;;  %v267_v48 = vld [vmem:[%s2994_s25 + $0xf8] sm:$0xff] }
  0x4e   : > { %2481 = vmatprep.subr.bf16.mxu0 %v4533_v3  ;;  %v3393_v52 = vmax.f32 %v340_v49, 0.0  ;;  %v811_v49 = vld [vmem:[%s4519_s3 + $0x220] sm:$0xff]  ;;  %v306_v47 = vmul.f32 %v3014_v44, %v267_v48 }
  0x4f   : > { %952 = vmatmul.mubr.f32.vlgmr.msra.gmra.mrb[0].mxu1 %v454_v56  ;;  %v519_v56 = vld [vmem:[#allocation2 + $0xa] sm:$0xff]  ;;  %449 = vst [vmem:[#allocation2 + $0x159] sm:$0xff] %v3404_v6  ;;  %v815_v48 = vld [vmem:[%s4519_s3 + $0x240] sm:$0xff] }
  0x50   : > { %1177 = vmatmul.mubr.f32.vlgmr.msra.gmra.mrb[0].mxu0 %v518_v51  ;;  %956 = vmatprep.mubr.f32.mxu1 %v487_v31  ;;  %448 = vst [vmem:[#allocation2 + $0x151] sm:$0xff] %v3393_v52  ;;  %v343_v51 = vadd.f32 %v3019_v45, %v304_v16  ;;  %v305_v31 = vmul.f32 %v3014_v44, %v266_v17  ;;  %v844_v16 = vld [vmem:[%s4519_s3 + $0x328] sm:$0xff]  ;;  %v813_v44 = vld [vmem:[%s4519_s3 + $0x230] sm:$0xff] }
  0x51   : > { %2483 = vmatpush1.bf16.msra.mxu0 %v2482_v21  ;;  %1181 = vmatprep.mubr.f32.mxu0 %v3377_v57  ;;  %v812_v21 = vld [vmem:[%s4519_s3 + $0x228] sm:$0xff] }
  0x52   : > { %2484 = vmatprep.subr.bf16.mxu0 %v4533_v3  ;;  %2625 = vmatpush1.bf16.msra.mxu1 %v3382_v5  ;;  %v3429_v17 = vmax.f32 %v343_v51, 0.0  ;;  %v3432_v50 = vadd.f32 %v3019_v45, %v305_v31  ;;  %v2488_v30 = vpack.c.bf16 %v812_v21, %v811_v49  ;;  %v3442_v31 = vadd.f32 %v3019_v45, %v306_v47  ;;  %v845_v45 = vld [vmem:[%s4519_s3 + $0x330] sm:$0xff]  ;;  %v554_v21 = vld [vmem:[#allocation2 + $0x48] sm:$0xff] }
  0x53   : > { %957 = vmatmul.mubr.f32.gmra.mrb[2].mxu1 %v2819_v8  ;;  %2610 = vmatprep.subr.bf16.mxu1 %v4533_v3  ;;  %v520_v8 = vld [vmem:[#allocation2 + $0x1a] sm:$0xff]  ;;  %v2491_v49 = vpack.c.bf16 %v814_v54, %v813_v44  ;;  %v522_v47 = vld [vmem:[#allocation2 + $0x32] sm:$0xff] }
  0x54   : > { %4564 = vst [vmem:[#allocation3_spill] sm:$0xff] %v3429_v17  ;;  %4565 = vst [vmem:[#allocation4_spill] sm:$0xff] %v3432_v50  ;;  %1182 = vmatmul.mubr.f32.gmra.mrb[2].mxu0 %v519_v56  ;;  %961 = vmatprep.mubr.f32.mxu1 %v346_v63  ;;  %v4532_v51 = vmax.f32 %v3432_v50, 0.0  ;;  %v3452_v63 = vpack.c.bf16 %v844_v16, %v843_v33  ;;  %v4531_v56 = vmax.f32 %v3442_v31, 0.0  ;;  %v816_v33 = vld [vmem:[%s4519_s3 + $0x248] sm:$0xff]  ;;  %v818_v44 = vld [vmem:[%s4519_s3 + $0x258] sm:$0xff] }
  0x55   : > { %1186 = vmatprep.mubr.f32.mxu0 %v3408_v53  ;;  %2486 = vmatpush1.bf16.msra.mxu0 %v2485_v40  ;;  %451 = vst [vmem:[#allocation2 + $0x171] sm:$0xff] %v3429_v17  ;;  %4566 = vst [vmem:[#allocation5_spill] sm:$0xff] %v3442_v31  ;;  %v846_v40 = vld [vmem:[%s4519_s3 + $0x338] sm:$0xff]  ;;  %v848_v16 = vld [vmem:[%s4519_s3 + $0x348] sm:$0xff] }
  0x56   : > { %2487 = vmatprep.subr.bf16.mxu0 %v4533_v3  ;;  %2626 = vmatpush1.bf16.msra.mxu1 %v3415_v1  ;;  %452 = vst [vmem:[#allocation2 + $0x181] sm:$0xff] %v4532_v51  ;;  %453 = vst [vmem:[#allocation2 + $0x189] sm:$0xff] %v4531_v56  ;;  %v3477_v0 = vpack.c.bf16 %v846_v40, %v845_v45  ;;  %v523_v45 = vld [vmem:[#allocation2 + $0x3a] sm:$0xff]  ;;  %v4567_v51 = vmax.f32 %v3194_v18, 0.0  ;;  %v4568_v18 = vmax.f32 %v3210_v29, 0.0  ;;  %v4570_v29 = vmax.f32 %v3229_v41, 0.0 }
  0x57   : > { %962 = vmatmul.mubr.f32.gmra.mrb[4].mxu1 %v3163_v59  ;;  %2611 = vmatprep.subr.bf16.mxu1 %v4533_v3  ;;  %v521_v59 = vld [vmem:[#allocation2 + $0x22] sm:$0xff]  ;;  %v3753_v56 = vld [vmem:[#allocation2 + $0xd8] sm:$0xff]  ;;  %v4574_v41 = vmax.f32 %v3280_v22, 0.0  ;;  %v4578_v22 = vmax.f32 %v3309_v61, 0.0  ;;  %v3850_v61 = vld [vmem:[#allocation2 + $0x12a] sm:$0xff] }
  0x58   : > { %1187 = vmatmul.mubr.f32.gmra.mrb[4].mxu0 %v520_v8  ;;  %966 = vmatprep.mubr.f32.mxu1 %v347_v13  ;;  %v847_v13 = vld [vmem:[%s4519_s3 + $0x340] sm:$0xff]  ;;  %v2494_v8 = vpack.c.bf16 %v816_v33, %v815_v48  ;;  %v3528_v33 = vld [vmem:[#allocation2 + $0x4a] sm:$0xff]  ;;  %v3835_v50 = vld [vmem:[#allocation2 + $0x138] sm:$0xff]  ;;  %4582 = vst [vmem:[#allocation12_spill] sm:$0xff] %v3850_v61 }
  0x59   : > { %1191 = vmatprep.mubr.f32.mxu0 %v553_v34  ;;  %2489 = vmatpush1.bf16.msra.mxu0 %v2488_v30  ;;  %v555_v30 = vld [vmem:[#allocation2 + $0x50] sm:$0xff]  ;;  %v3497_v54 = vpack.c.bf16 %v848_v16, %v847_v13  ;;  %v3826_v31 = vld [vmem:[#allocation2 + $0x128] sm:$0xff] }
  0x5a   : > { %2490 = vmatprep.subr.bf16.mxu0 %v4533_v3  ;;  %2627 = vmatpush1.bf16.msra.mxu1 %v3452_v63  ;;  %v821_v16 = vld [vmem:[%s4519_s3 + $0x270] sm:$0xff] }
  0x5b   : > { %967 = vmatmul.mubr.f32.gmra.mrb[6].mxu1 %v3377_v57  ;;  %2612 = vmatprep.subr.bf16.mxu1 %v4533_v3  ;;  %v817_v57 = vld [vmem:[%s4519_s3 + $0x250] sm:$0xff] }
  0x5c   : > { %1192 = vmatmul.mubr.f32.gmra.mrb[6].mxu0 %v521_v59  ;;  %971 = vmatprep.mubr.f32.mxu1 %v348_v19  ;;  %v850_v19 = vld [vmem:[%s4519_s3 + $0x358] sm:$0xff]  ;;  %v2497_v40 = vpack.c.bf16 %v818_v44, %v817_v57  ;;  %v556_v59 = vld [vmem:[#allocation2 + $0x60] sm:$0xff] }
  0x5d   : > { %1196 = vmatprep.mubr.f32.mxu0 %v554_v21  ;;  %2492 = vmatpush1.bf16.msra.mxu0 %v2491_v49  ;;  %v820_v49 = vld [vmem:[%s4519_s3 + $0x268] sm:$0xff]  ;;  %v3517_v48 = vpack.c.bf16 %v850_v19, %v849_v7  ;;  %v3550_v57 = vld [vmem:[#allocation2 + $0x52] sm:$0xff]  ;;  %v823_v7 = vld [vmem:[%s4519_s3 + $0x280] sm:$0xff] }
  0x5e   : > { %2493 = vmatprep.subr.bf16.mxu0 %v4533_v3  ;;  %2628 = vmatpush1.bf16.msra.mxu1 %v3477_v0  ;;  %v558_v44 = vld [vmem:[#allocation2 + $0x78] sm:$0xff]  ;;  %v824_v19 = vld [vmem:[%s4519_s3 + $0x288] sm:$0xff] }
  0x5f   : > { %972 = vmatmul.mubr.f32.gmra.mrb[8].mxu1 %v3408_v53  ;;  %2613 = vmatprep.subr.bf16.mxu1 %v4533_v3  ;;  %v819_v53 = vld [vmem:[%s4519_s3 + $0x260] sm:$0xff] }
  0x60   : > { %1197 = vmatmul.mubr.f32.gmra.mrb[8].mxu0 %v522_v47  ;;  %976 = vmatprep.mubr.f32.mxu1 %v349_v25  ;;  %v852_v25 = vld [vmem:[%s4519_s3 + $0x368] sm:$0xff]  ;;  %v2500_v13 = vpack.c.bf16 %v820_v49, %v819_v53  ;;  %v822_v47 = vld [vmem:[%s4519_s3 + $0x278] sm:$0xff]  ;;  %v559_v53 = vld [vmem:[#allocation2 + $0x80] sm:$0xff] }
  0x61   : > { %1201 = vmatprep.mubr.f32.mxu0 %v555_v30  ;;  %2495 = vmatpush1.bf16.msra.mxu0 %v2494_v8  ;;  %v3538_v15 = vpack.c.bf16 %v852_v25, %v851_v14  ;;  %v854_v8 = vld [vmem:[%s4519_s3 + $0x378] sm:$0xff]  ;;  %v825_v49 = vld [vmem:[%s4519_s3 + $0x290] sm:$0xff] }
  0x62   : > { %2496 = vmatprep.subr.bf16.mxu0 %v4533_v3  ;;  %2629 = vmatpush1.bf16.msra.mxu1 %v3497_v54  ;;  %v826_v14 = vld [vmem:[%s4519_s3 + $0x298] sm:$0xff] }
  0x63   : > { %977 = vmatmul.mubr.f32.gmra.mrb[10].mxu1 %v553_v34  ;;  %2614 = vmatprep.subr.bf16.mxu1 %v4533_v3  ;;  %v557_v34 = vld [vmem:[#allocation2 + $0x68] sm:$0xff]  ;;  %v858_v25 = vld [vmem:[%s4519_s3 + $0x398] sm:$0xff] }
  0x64   : > { %1202 = vmatmul.mubr.f32.gmra.mrb[10].mxu0 %v523_v45  ;;  %981 = vmatprep.mubr.f32.mxu1 %v350_v26  ;;  %v853_v26 = vld [vmem:[%s4519_s3 + $0x370] sm:$0xff]  ;;  %v856_v45 = vld [vmem:[%s4519_s3 + $0x388] sm:$0xff] }
  0x65   : > { %1206 = vmatprep.mubr.f32.mxu0 %v556_v59  ;;  %2498 = vmatpush1.bf16.msra.mxu0 %v2497_v40  ;;  %v3560_v20 = vpack.c.bf16 %v854_v8, %v853_v26  ;;  %v3572_v40 = vld [vmem:[#allocation2 + $0x62] sm:$0xff] }
  0x66   : > { %2499 = vmatprep.subr.bf16.mxu0 %v4533_v3  ;;  %2630 = vmatpush1.bf16.msra.mxu1 %v3517_v48  ;;  %v828_v26 = vld [vmem:[%s4519_s3 + $0x2a8] sm:$0xff] }
  0x67   : > { %982 = vmatmul.mubr.f32.gmra.mrb[12].mxu1 %v554_v21  ;;  %2615 = vmatprep.subr.bf16.mxu1 %v4533_v3  ;;  %v2503_v21 = vpack.c.bf16 %v822_v47, %v821_v16  ;;  %v3596_v16 = vld [vmem:[#allocation2 + $0x90] sm:$0xff]  ;;  %v827_v47 = vld [vmem:[%s4519_s3 + $0x2a0] sm:$0xff]  ;;  %v860_v8 = vld [vmem:[%s4519_s3 + $0x3a8] sm:$0xff] }
  0x68   : > { %1207 = vmatmul.mubr.f32.gmra.mrb[12].mxu0 %v3528_v33  ;;  %986 = vmatprep.mubr.f32.mxu1 %v351_v35  ;;  %v855_v35 = vld [vmem:[%s4519_s3 + $0x380] sm:$0xff] }
  0x69   : > { %1211 = vmatprep.mubr.f32.mxu0 %v557_v34  ;;  %2501 = vmatpush1.bf16.msra.mxu0 %v2500_v13  ;;  %v3582_v27 = vpack.c.bf16 %v856_v45, %v855_v35  ;;  %v3594_v13 = vld [vmem:[#allocation2 + $0x6a] sm:$0xff]  ;;  %v830_v35 = vld [vmem:[%s4519_s3 + $0x2b8] sm:$0xff] }
  0x6a   : > { %2502 = vmatprep.subr.bf16.mxu0 %v4533_v3  ;;  %2631 = vmatpush1.bf16.msra.mxu1 %v3538_v15  ;;  %v862_v45 = vld [vmem:[%s4519_s3 + $0x3b8] sm:$0xff] }
  0x6b   : > { %987 = vmatmul.mubr.f32.gmra.mrb[14].mxu1 %v555_v30  ;;  %2616 = vmatprep.subr.bf16.mxu1 %v4533_v3  ;;  %v2506_v30 = vpack.c.bf16 %v824_v19, %v823_v7  ;;  %v3621_v7 = vld [vmem:[#allocation2 + $0x98] sm:$0xff]  ;;  %v829_v19 = vld [vmem:[%s4519_s3 + $0x2b0] sm:$0xff] }
  0x6c   : > { %1212 = vmatmul.mubr.f32.gmra.mrb[14].mxu0 %v3550_v57  ;;  %991 = vmatprep.mubr.f32.mxu1 %v352_v38  ;;  %v857_v38 = vld [vmem:[%s4519_s3 + $0x390] sm:$0xff] }
  0x6d   : > { %1216 = vmatprep.mubr.f32.mxu0 %v558_v44  ;;  %2504 = vmatpush1.bf16.msra.mxu0 %v2503_v21  ;;  %v3606_v36 = vpack.c.bf16 %v858_v25, %v857_v38  ;;  %v3619_v21 = vld [vmem:[#allocation2 + $0x7a] sm:$0xff]  ;;  %v832_v38 = vld [vmem:[%s4519_s3 + $0x2c8] sm:$0xff] }
  0x6e   : > { %2505 = vmatprep.subr.bf16.mxu0 %v4533_v3  ;;  %2632 = vmatpush1.bf16.msra.mxu1 %v3560_v20  ;;  %v864_v25 = vld [vmem:[%s4519_s3 + $0x3c8] sm:$0xff] }
  0x6f   : > { %992 = vmatmul.mubr.f32.gmra.mrb[16].mxu1 %v556_v59  ;;  %2617 = vmatprep.subr.bf16.mxu1 %v4533_v3  ;;  %v2509_v59 = vpack.c.bf16 %v826_v14, %v825_v49  ;;  %v3646_v49 = vld [vmem:[#allocation2 + $0xa8] sm:$0xff]  ;;  %v831_v14 = vld [vmem:[%s4519_s3 + $0x2c0] sm:$0xff] }
  0x70   : > { %1217 = vmatmul.mubr.f32.gmra.mrb[16].mxu0 %v3572_v40  ;;  %996 = vmatprep.mubr.f32.mxu1 %v353_v43  ;;  %v859_v43 = vld [vmem:[%s4519_s3 + $0x3a0] sm:$0xff] }
  0x71   : > { %1221 = vmatprep.mubr.f32.mxu0 %v559_v53  ;;  %2507 = vmatpush1.bf16.msra.mxu0 %v2506_v30  ;;  %v3631_v39 = vpack.c.bf16 %v860_v8, %v859_v43  ;;  %v3644_v30 = vld [vmem:[#allocation2 + $0x82] sm:$0xff]  ;;  %v834_v43 = vld [vmem:[%s4519_s3 + $0x2d8] sm:$0xff] }
  0x72   : > { %2508 = vmatprep.subr.bf16.mxu0 %v4533_v3  ;;  %2633 = vmatpush1.bf16.msra.mxu1 %v3582_v27 }
  0x73   : > { %997 = vmatmul.mubr.f32.gmra.mrb[18].mxu1 %v557_v34  ;;  %2618 = vmatprep.subr.bf16.mxu1 %v4533_v3  ;;  %v2512_v34 = vpack.c.bf16 %v828_v26, %v827_v47  ;;  %v3670_v47 = vld [vmem:[#allocation2 + $0xb0] sm:$0xff] }
  0x74   : > { %1222 = vmatmul.mubr.f32.gmra.mrb[18].mxu0 %v3594_v13  ;;  %1001 = vmatprep.mubr.f32.mxu1 %v354_v55  ;;  %v861_v55 = vld [vmem:[%s4519_s3 + $0x3b0] sm:$0xff] }
  0x75   : > { %1226 = vmatprep.mubr.f32.mxu0 %v3596_v16  ;;  %2510 = vmatpush1.bf16.msra.mxu0 %v2509_v59  ;;  %v3656_v46 = vpack.c.bf16 %v862_v45, %v861_v55  ;;  %v3668_v59 = vld [vmem:[#allocation2 + $0x92] sm:$0xff]  ;;  %v3695_v45 = vld [vmem:[#allocation2 + $0xc0] sm:$0xff] }
  0x76   : > { %2511 = vmatprep.subr.bf16.mxu0 %v4533_v3  ;;  %2634 = vmatpush1.bf16.msra.mxu1 %v3606_v36  ;;  %v833_v26 = vld [vmem:[%s4519_s3 + $0x2d0] sm:$0xff] }
  0x77   : > { %1002 = vmatmul.mubr.f32.gmra.mrb[20].mxu1 %v558_v44  ;;  %2619 = vmatprep.subr.bf16.mxu1 %v4533_v3  ;;  %v2515_v44 = vpack.c.bf16 %v830_v35, %v829_v19  ;;  %v866_v19 = vld [vmem:[%s4519_s3 + $0x3d8] sm:$0xff]  ;;  %v2521_v55 = vpack.c.bf16 %v834_v43, %v833_v26  ;;  %v3721_v43 = vld [vmem:[#allocation2 + $0xc8] sm:$0xff] }
  0x78   : > { %1227 = vmatmul.mubr.f32.gmra.mrb[20].mxu0 %v3619_v21  ;;  %1006 = vmatprep.mubr.f32.mxu1 %v355_v60  ;;  %v863_v60 = vld [vmem:[%s4519_s3 + $0x3c0] sm:$0xff] }
  0x79   : > { %1231 = vmatprep.mubr.f32.mxu0 %v3621_v7  ;;  %2513 = vmatpush1.bf16.msra.mxu0 %v2512_v34  ;;  %v3680_v8 = vpack.c.bf16 %v864_v25, %v863_v60  ;;  %v865_v34 = vld [vmem:[%s4519_s3 + $0x3d0] sm:$0xff]  ;;  %v3693_v35 = vld [vmem:[#allocation2 + $0x9a] sm:$0xff]  ;;  %v868_v25 = vld [vmem:[%s4519_s3 + $0x3e8] sm:$0xff] }
  0x7a   : > { %2514 = vmatprep.subr.bf16.mxu0 %v4533_v3  ;;  %2635 = vmatpush1.bf16.msra.mxu1 %v3631_v39  ;;  %v867_v60 = vld [vmem:[%s4519_s3 + $0x3e0] sm:$0xff] }
  0x7b   : > { %1007 = vmatmul.mubr.f32.gmra.mrb[22].mxu1 %v559_v53  ;;  %2620 = vmatprep.subr.bf16.mxu1 %v4533_v3  ;;  %v2518_v53 = vpack.c.bf16 %v832_v38, %v831_v14  ;;  %v836_v14 = vld [vmem:[%s4519_s3 + $0x2e8] sm:$0xff]  ;;  %v3705_v38 = vpack.c.bf16 %v866_v19, %v865_v34  ;;  %v837_v34 = vld [vmem:[%s4519_s3 + $0x2f0] sm:$0xff] }
  0x7c   : > { %1232 = vmatmul.mubr.f32.gmra.mrb[22].mxu0 %v3644_v30  ;;  %1011 = vmatprep.mubr.f32.mxu1 %v3178_v4  ;;  %v869_v19 = vld [vmem:[%s4519_s3 + $0x3f0] sm:$0xff] }
  0x7d   : > { %1236 = vmatprep.mubr.f32.mxu0 %v3646_v49  ;;  %2516 = vmatpush1.bf16.msra.mxu0 %v2515_v44  ;;  %v835_v44 = vld [vmem:[%s4519_s3 + $0x2e0] sm:$0xff] }
  0x7e   : > { %2517 = vmatprep.subr.bf16.mxu0 %v4533_v3  ;;  %2636 = vmatpush1.bf16.msra.mxu1 %v3656_v46  ;;  %v2524_v26 = vpack.c.bf16 %v836_v14, %v835_v44  ;;  %v871_v44 = vld [vmem:[%s4519_s3 + $0x400] sm:$0xff]  ;;  %v872_v14 = vld [vmem:[%s4519_s3 + $0x408] sm:$0xff] }
  0x7f   : > { %1012 = vmatmul.mubr.f32.gmra.mrb[24].mxu1 %v3596_v16  ;;  %2621 = vmatprep.subr.bf16.mxu1 %v4533_v3 }
  0x80   : > { %1237 = vmatmul.mubr.f32.gmra.mrb[24].mxu0 %v3668_v59  ;;  %1016 = vmatprep.mubr.f32.mxu1 %v3184_v9 }
  0x81   : > { %1241 = vmatprep.mubr.f32.mxu0 %v3670_v47  ;;  %2519 = vmatpush1.bf16.msra.mxu0 %v2518_v53  ;;  %v3719_v53 = vld [vmem:[#allocation2 + $0xaa] sm:$0xff] }
  0x82   : > { %2520 = vmatprep.subr.bf16.mxu0 %v4533_v3  ;;  %2637 = vmatpush1.bf16.msra.mxu1 %v3680_v8 }
  0x83   : > { %1017 = vmatmul.mubr.f32.gmra.mrb[26].mxu1 %v3621_v7  ;;  %2622 = vmatprep.subr.bf16.mxu1 %v4533_v3 }
  0x84   : > { %1242 = vmatmul.mubr.f32.gmra.mrb[26].mxu0 %v3693_v35  ;;  %1021 = vmatprep.mubr.f32.mxu1 %v358_v10  ;;  %v3731_v10 = vpack.c.bf16 %v868_v25, %v867_v60  ;;  %v3751_v60 = vld [vmem:[#allocation2 + $0xb2] sm:$0xff]  ;;  %v2527_v25 = vpack.c.bf16 %v838_v62, %v837_v34  ;;  %v3769_v34 = vld [vmem:[#allocation2 + $0xe0] sm:$0xff] }
  0x85   : > { %1246 = vmatprep.mubr.f32.mxu0 %v3695_v45  ;;  %2522 = vmatpush1.bf16.msra.mxu0 %v2521_v55  ;;  %v870_v55 = vld [vmem:[%s4519_s3 + $0x3f8] sm:$0xff]  ;;  %v3781_v62 = vld [vmem:[#allocation2 + $0xf0] sm:$0xff] }
  0x86   : > { %2523 = vmatprep.subr.bf16.mxu0 %v4533_v3  ;;  %2638 = vmatpush1.bf16.msra.mxu1 %v3705_v38  ;;  %v3757_v11 = vpack.c.bf16 %v870_v55, %v869_v19  ;;  %v4569_v19 = vmax.f32 %v3223_v37, 0.0  ;;  %v3788_v55 = vld [vmem:[#allocation2 + $0xda] sm:$0xff]  ;;  %v4572_v37 = vmax.f32 %v3232_v42, 0.0  ;;  %v4576_v42 = vmax.f32 %v3283_v23, 0.0 }
  0x87   : > { %1022 = vmatmul.mubr.f32.gmra.mrb[28].mxu1 %v3646_v49  ;;  %2623 = vmatprep.subr.bf16.mxu1 %v4533_v3  ;;  %v4580_v23 = vmax.f32 %v3329_v24, 0.0  ;;  %v3858_v24 = vld [vmem:[#allocation2 + $0x13a] sm:$0xff] }
  0x88   : > { %1247 = vmatmul.mubr.f32.gmra.mrb[28].mxu0 %v3719_v53  ;;  %1026 = vmatprep.mubr.f32.mxu1 %v359_v28  ;;  %v3761_v28 = vpack.c.bf16 %v872_v14, %v871_v44  ;;  %v3790_v44 = vld [vmem:[#allocation2 + $0xf8] sm:$0xff]  ;;  %v3797_v14 = vld [vmem:[#allocation2 + $0xe2] sm:$0xff]  ;;  %4583 = vst [vmem:[#allocation13_spill] sm:$0xff] %v3858_v24 }
  0x89   : > { %1251 = vmatprep.mubr.f32.mxu0 %v3721_v43  ;;  %2525 = vmatpush1.bf16.msra.mxu0 %v2524_v26  ;;  %v3767_v26 = vld [vmem:[#allocation2 + $0xc2] sm:$0xff]  ;;  %4571 = vst [vmem:[#allocation6_spill] sm:$0xff] %v3797_v14 }
  0x8a   : > { %2526 = vmatprep.subr.bf16.mxu0 %v4533_v3  ;;  %2639 = vmatpush1.bf16.msra.mxu1 %v3731_v10 }
  0x8b   : > { %1027 = vmatmul.mubr.f32.gmra.mrb[30].mxu1 %v3670_v47  ;;  %2624 = vmatprep.subr.bf16.mxu1 %v4533_v3 }
  0x8c   : > { %1252 = vmatmul.mubr.f32.gmra.mrb[30].mxu0 %v3751_v60  ;;  %1031 = vmatprep.mubr.f32.mxu1 %v4567_v51  ;;  %v3779_v51 = vld [vmem:[#allocation2 + $0xca] sm:$0xff] }
  0x8d   : > { %1256 = vmatprep.mubr.f32.mxu0 %v3753_v56  ;;  %2528 = vmatpush1.bf16.msra.mxu0 %v2527_v25  ;;  %v3799_v25 = vld [vmem:[#allocation2 + $0x108] sm:$0xff] }
  0x8e   : > { %2640 = vmatpush1.bf16.msra.mxu1 %v3757_v11  ;;  %2529 = vmatprep.subr.bf16.mxu0 %v4533_v3  ;;  %v3817_v3 = vld [vmem:[#allocation2 + $0x120] sm:$0xff] }
  0x8f   : > { %1032 = vmatmul.mubr.f32.gmra.mrb[32].mxu1 %v3695_v45  ;;  %2578 = vmatprep.subr.bf16.mxu1 %v3761_v28 }
  0x90   : > { %1257 = vmatmul.mubr.f32.gmra.mrb[32].mxu0 %v3767_v26  ;;  %1036 = vmatprep.mubr.f32.mxu1 %v4568_v18  ;;  %v3806_v18 = vld [vmem:[#allocation2 + $0xf2] sm:$0xff] }
  0x91   : > { %1261 = vmatprep.mubr.f32.mxu0 %v3769_v34  ;;  %4573 = vst [vmem:[#allocation7_spill] sm:$0xff] %v3806_v18 }
  0x93   : > { %1037 = vmatmul.mubr.f32.gmra.mrb[34].mxu1 %v3721_v43 }
  0x94   : > { %1262 = vmatmul.mubr.f32.gmra.mrb[34].mxu0 %v3779_v51  ;;  %1041 = vmatprep.mubr.f32.mxu1 %v4569_v19  ;;  %v3808_v19 = vld [vmem:[#allocation2 + $0x110] sm:$0xff] }
  0x95   : > { %1266 = vmatprep.mubr.f32.mxu0 %v3781_v62 }
  0x97   : > { %1042 = vmatmul.mubr.f32.gmra.mrb[36].mxu1 %v3753_v56 }
  0x98   : > { %1267 = vmatmul.mubr.f32.gmra.mrb[36].mxu0 %v3788_v55  ;;  %1046 = vmatprep.mubr.f32.mxu1 %v4570_v29  ;;  %v3815_v29 = vld [vmem:[#allocation2 + $0xfa] sm:$0xff] }
  0x99   : > { %1271 = vmatprep.mubr.f32.mxu0 %v3790_v44  ;;  %4575 = vst [vmem:[#allocation8_spill] sm:$0xff] %v3815_v29 }
  0x9b   : > { %1047 = vmatmul.mubr.f32.gmra.mrb[38].mxu1 %v3769_v34 }
  0x9c   : > { %1272 = vmatmul.mubr.f32.gmra.mrb[38].mxu0 %v3797_v14  ;;  %1051 = vmatprep.mubr.f32.mxu1 %v4572_v37  ;;  %v3824_v37 = vld [vmem:[#allocation2 + $0x10a] sm:$0xff] }
  0x9d   : > { %1276 = vmatprep.mubr.f32.mxu0 %v3799_v25  ;;  %4577 = vst [vmem:[#allocation9_spill] sm:$0xff] %v3824_v37  ;;  %v3892_v14 = vld [vmem:[#allocation2 + $0x188] sm:$0xff] }
  0x9e   : > { %4592 = vst [vmem:[#allocation22_spill] sm:$0xff] %v3892_v14 }
  0x9f   : > { %1052 = vmatmul.mubr.f32.gmra.mrb[40].mxu1 %v3781_v62 }
  0xa0   : > { %1277 = vmatmul.mubr.f32.gmra.mrb[40].mxu0 %v3806_v18  ;;  %1056 = vmatprep.mubr.f32.mxu1 %v4574_v41  ;;  %v3833_v41 = vld [vmem:[#allocation2 + $0x112] sm:$0xff]  ;;  %v3884_v18 = vld [vmem:[#allocation2 + $0x180] sm:$0xff] }
  0xa1   : > { %1281 = vmatprep.mubr.f32.mxu0 %v3808_v19  ;;  %4579 = vst [vmem:[#allocation10_spill] sm:$0xff] %v3833_v41  ;;  %4590 = vst [vmem:[#allocation20_spill] sm:$0xff] %v3884_v18 }
  0xa3   : > { %1057 = vmatmul.mubr.f32.gmra.mrb[42].mxu1 %v3790_v44 }
  0xa4   : > { %1282 = vmatmul.mubr.f32.gmra.mrb[42].mxu0 %v3815_v29  ;;  %1061 = vmatprep.mubr.f32.mxu1 %v4576_v42  ;;  %v3842_v42 = vld [vmem:[#allocation2 + $0x122] sm:$0xff]  ;;  %v3876_v29 = vld [vmem:[#allocation2 + $0x170] sm:$0xff] }
  0xa5   : > { %1286 = vmatprep.mubr.f32.mxu0 %v3817_v3  ;;  %4581 = vst [vmem:[#allocation11_spill] sm:$0xff] %v3842_v42  ;;  %4588 = vst [vmem:[#allocation18_spill] sm:$0xff] %v3876_v29 }
  0xa7   : > { %1062 = vmatmul.mubr.f32.gmra.mrb[44].mxu1 %v3799_v25 }
  0xa8   : > { %1287 = vmatmul.mubr.f32.gmra.mrb[44].mxu0 %v3824_v37  ;;  %1066 = vmatprep.mubr.f32.mxu1 %v4578_v22  ;;  %v3844_v37 = vld [vmem:[#allocation2 + $0x140] sm:$0xff]  ;;  %v3852_v22 = vld [vmem:[#allocation2 + $0x150] sm:$0xff] }
  0xa9   : > { %1291 = vmatprep.mubr.f32.mxu0 %v3826_v31 }
  0xab   : > { %1067 = vmatmul.mubr.f32.gmra.mrb[46].mxu1 %v3808_v19 }
  0xac   : > { %1292 = vmatmul.mubr.f32.gmra.mrb[46].mxu0 %v3833_v41  ;;  %1071 = vmatprep.mubr.f32.mxu1 %v4580_v23  ;;  %v3860_v23 = vld [vmem:[#allocation2 + $0x158] sm:$0xff]  ;;  %v3868_v41 = vld [vmem:[#allocation2 + $0x168] sm:$0xff] }
  0xad   : > { %1296 = vmatprep.mubr.f32.mxu0 %v3835_v50  ;;  %4584 = vst [vmem:[#allocation14_spill] sm:$0xff] %v3860_v23  ;;  %4586 = vst [vmem:[#allocation16_spill] sm:$0xff] %v3868_v41 }
  0xaf   : > { %1072 = vmatmul.mubr.f32.gmra.mrb[48].mxu1 %v3817_v3 }
  0xb0   : > { %1297 = vmatmul.mubr.f32.gmra.mrb[48].mxu0 %v3842_v42  ;;  %1076 = vmatprep.mubr.f32.mxu1 %v3351_v2  ;;  %v3866_v42 = vld [vmem:[#allocation2 + $0x142] sm:$0xff] }
  0xb1   : > { %1301 = vmatprep.mubr.f32.mxu0 %v3844_v37  ;;  %4585 = vst [vmem:[#allocation15_spill] sm:$0xff] %v3866_v42 }
  0xb3   : > { %1077 = vmatmul.mubr.f32.gmra.mrb[50].mxu1 %v3826_v31 }
  0xb4   : > { %1302 = vmatmul.mubr.f32.gmra.mrb[50].mxu0 %v3850_v61  ;;  %1081 = vmatprep.mubr.f32.mxu1 %v3360_v32  ;;  %v3874_v61 = vld [vmem:[#allocation2 + $0x152] sm:$0xff] }
  0xb5   : > { %1306 = vmatprep.mubr.f32.mxu0 %v3852_v22  ;;  %4587 = vst [vmem:[#allocation17_spill] sm:$0xff] %v3874_v61 }
  0xb7   : > { %1082 = vmatmul.mubr.f32.gmra.mrb[52].mxu1 %v3835_v50 }
  0xb8   : > { %1307 = vmatmul.mubr.f32.gmra.mrb[52].mxu0 %v3858_v24  ;;  %1086 = vmatprep.mubr.f32.mxu1 %v3371_v12  ;;  %v3882_v24 = vld [vmem:[#allocation2 + $0x15a] sm:$0xff] }
  0xb9   : > { %1311 = vmatprep.mubr.f32.mxu0 %v3860_v23  ;;  %4589 = vst [vmem:[#allocation19_spill] sm:$0xff] %v3882_v24 }
  0xbb   : > { %1087 = vmatmul.mubr.f32.gmra.mrb[54].mxu1 %v3844_v37 }
  0xbc   : > { %1312 = vmatmul.mubr.f32.gmra.mrb[54].mxu0 %v3866_v42  ;;  %1091 = vmatprep.mubr.f32.mxu1 %v3393_v52  ;;  %v3890_v42 = vld [vmem:[#allocation2 + $0x16a] sm:$0xff] }
  0xbd   : > { %1316 = vmatprep.mubr.f32.mxu0 %v3868_v41  ;;  %4591 = vst [vmem:[#allocation21_spill] sm:$0xff] %v3890_v42 }
  0xbf   : > { %1092 = vmatmul.mubr.f32.gmra.mrb[56].mxu1 %v3852_v22 }
  0xc0   : > { %1317 = vmatmul.mubr.f32.gmra.mrb[56].mxu0 %v3874_v61  ;;  %1096 = vmatprep.mubr.f32.mxu1 %v3404_v6  ;;  %v3898_v61 = vld [vmem:[#allocation2 + $0x172] sm:$0xff] }
  0xc1   : > { %1321 = vmatprep.mubr.f32.mxu0 %v3876_v29  ;;  %4593 = vst [vmem:[#allocation23_spill] sm:$0xff] %v3898_v61 }
  0xc3   : > { %1097 = vmatmul.mubr.f32.gmra.mrb[58].mxu1 %v3860_v23  ;;  %v614_v23 = vld [vmem:[#allocation2 + $0x1a] sm:$0xff] }
  0xc4   : > { %1322 = vmatmul.mubr.f32.gmra.mrb[58].mxu0 %v3882_v24  ;;  %1101 = vmatprep.mubr.f32.mxu1 %v3417_v58  ;;  %v873_v24 = vld [vmem:[%s4519_s3 + $0x410] sm:$0xff] }
  0xc5   : > { %1326 = vmatprep.mubr.f32.mxu0 %v3884_v18  ;;  %v582_v18 = vld [vmem:[#allocation2 + $0x19] sm:$0xff] }
  0xc7   : > { %1102 = vmatmul.mubr.f32.gmra.mrb[60].mxu1 %v3868_v41  ;;  %v4594_v41 = vmov 0.0|0.0  }
  0xc8   : > { %1327 = vmatmul.mubr.f32.gmra.mrb[60].mxu0 %v3890_v42  ;;  %1106 = vmatprep.mubr.f32.mxu1 %v3429_v17  ;;  %v874_v42 = vld [vmem:[%s4519_s3 + $0x418] sm:$0xff] }
  0xc9   : > { %1331 = vmatprep.mubr.f32.mxu0 %v3892_v14  ;;  %v615_v14 = vld [vmem:[#allocation2 + $0x22] sm:$0xff]  ;;  %v2581_v17 = vpack.c.bf16 %v874_v42, %v873_v24  ;;  %v3941_v42 = vld [vmem:[#allocation2 + $0xb1] sm:$0xff] }
  0xca   : > { %v3957_v24 = vld [vmem:[#allocation2 + $0xc1] sm:$0xff] }
  0xcb   : > { %1107 = vmatmul.mubr.f32.gmra.mrb[62].mxu1 %v3876_v29  ;;  %v3918_v29 = vld [vmem:[#allocation2 + $0x32] sm:$0xff] }
  0xcc   : > { %1332 = vmatmul.mubr.f32.gmra.mrb[62].mxu0 %v3898_v61  ;;  %1666 = vmatprep.mubr.f32.mxu1 %v3178_v4  ;;  %v875_v4 = vld [vmem:[%s4519_s3 + $0x420] sm:$0xff]  ;;  %v876_v61 = vld [vmem:[%s4519_s3 + $0x428] sm:$0xff] }
  0xcd   : > { %1401 = vmatprep.mubr.f32.mxu0 %v614_v23  ;;  %v583_v23 = vld [vmem:[#allocation2 + $0x21] sm:$0xff] }
  0xcf   : > { %1667 = vmatmul.mubr.f32.vlgmr.msra.gmra.mrb[64].mxu1 %v3596_v16  ;;  %v3923_v16 = vld [vmem:[#allocation2 + $0xa9] sm:$0xff] }
  0xd0   : > { %1402 = vmatmul.mubr.f32.vlgmr.msra.gmra.mrb[0].mxu0 %v582_v18  ;;  %1671 = vmatprep.mubr.f32.mxu1 %v3184_v9  ;;  %v2585_v9 = vpack.c.bf16 %v876_v61, %v875_v4  ;;  %v879_v61 = vld [vmem:[%s4519_s3 + $0x440] sm:$0xff]  ;;  %v881_v4 = vld [vmem:[%s4519_s3 + $0x450] sm:$0xff] }
  0xd1   : > { %2531 = vmatpush1.bf16.msra.mxu0 %v3382_v5  ;;  %1406 = vmatprep.mubr.f32.mxu0 %v615_v14  ;;  %v877_v5 = vld [vmem:[%s4519_s3 + $0x430] sm:$0xff]  ;;  %v878_v14 = vld [vmem:[%s4519_s3 + $0x438] sm:$0xff] }
  0xd2   : > { %2532 = vmatprep.subr.bf16.mxu0 %v4594_v41  ;;  %2580 = vmatpush3.bf16.msra.mxu1 %v3761_v28  ;;  %v3933_v28 = vld [vmem:[#allocation2 + $0x31] sm:$0xff]  ;;  %v2589_v18 = vpack.c.bf16 %v878_v14, %v877_v5  ;;  %v3989_v14 = vld [vmem:[#allocation2 + $0xd9] sm:$0xff] }
  0xd3   : > { %1672 = vmatmul.mubr.f32.gmra.mrb[66].mxu1 %v3621_v7  ;;  %2582 = vmatprep.subr.bf16.mxu1 %v2581_v17  ;;  %v3936_v7 = vld [vmem:[#allocation2 + $0x3a] sm:$0xff]  ;;  %v3983_v5 = vld [vmem:[#allocation2 + $0x51] sm:$0xff] }
  0xd4   : > { %1407 = vmatmul.mubr.f32.gmra.mrb[2].mxu0 %v583_v23  ;;  %1676 = vmatprep.mubr.f32.mxu1 %v3923_v16  ;;  %v3967_v23 = vld [vmem:[#allocation2 + $0x49] sm:$0xff] }
  0xd5   : > { %1411 = vmatprep.mubr.f32.mxu0 %v3918_v29  ;;  %2534 = vmatpush1.bf16.msra.mxu0 %v3415_v1  ;;  %v880_v1 = vld [vmem:[%s4519_s3 + $0x448] sm:$0xff] }
  0xd6   : > { %2535 = vmatprep.subr.bf16.mxu0 %v4594_v41  ;;  %2584 = vmatpush3.bf16.msra.mxu1 %v2581_v17  ;;  %v3951_v17 = vld [vmem:[#allocation2 + $0x39] sm:$0xff] }
  0xd7   : > { %1677 = vmatmul.mubr.f32.gmra.mrb[68].mxu1 %v3646_v49  ;;  %2586 = vmatprep.subr.bf16.mxu1 %v2585_v9  ;;  %v2593_v49 = vpack.c.bf16 %v880_v1, %v879_v61  ;;  %v4005_v61 = vld [vmem:[#allocation2 + $0xe1] sm:$0xff]  ;;  %v2802_v1 = vld [vmem:[#allocation2 + $0x139] sm:$0xff] }
  0xd8   : > { %1412 = vmatmul.mubr.f32.gmra.mrb[4].mxu0 %v3933_v28  ;;  %1681 = vmatprep.mubr.f32.mxu1 %v3941_v42 }
  0xd9   : > { %1416 = vmatprep.mubr.f32.mxu0 %v3936_v7  ;;  %2537 = vmatpush1.bf16.msra.mxu0 %v3452_v63  ;;  %v882_v63 = vld [vmem:[%s4519_s3 + $0x458] sm:$0xff] }
  0xda   : > { %2538 = vmatprep.subr.bf16.mxu0 %v4594_v41  ;;  %2588 = vmatpush3.bf16.msra.mxu1 %v2585_v9  ;;  %v3973_v9 = vld [vmem:[#allocation2 + $0xc9] sm:$0xff] }
  0xdb   : > { %1682 = vmatmul.mubr.f32.gmra.mrb[70].mxu1 %v3670_v47  ;;  %2590 = vmatprep.subr.bf16.mxu1 %v2589_v18  ;;  %v2597_v47 = vpack.c.bf16 %v882_v63, %v881_v4  ;;  %v715_v4 = vld [vmem:[#allocation2 + $0x62] sm:$0xff] }
  0xdc   : > { %1417 = vmatmul.mubr.f32.gmra.mrb[6].mxu0 %v3951_v17  ;;  %1686 = vmatprep.mubr.f32.mxu1 %v3957_v24 }
  0xdd   : > { %1421 = vmatprep.mubr.f32.mxu0 %v3528_v33  ;;  %2540 = vmatpush1.bf16.msra.mxu0 %v3477_v0  ;;  %v883_v33 = vld [vmem:[%s4519_s3 + $0x460] sm:$0xff]  ;;  %v884_v0 = vld [vmem:[%s4519_s3 + $0x468] sm:$0xff] }
  0xde   : > { %2541 = vmatprep.subr.bf16.mxu0 %v4594_v41  ;;  %2592 = vmatpush3.bf16.msra.mxu1 %v2589_v18  ;;  %v3999_v18 = vld [vmem:[#allocation2 + $0x61] sm:$0xff] }
  0xdf   : > { %1687 = vmatmul.mubr.f32.gmra.mrb[72].mxu1 %v3695_v45  ;;  %2594 = vmatprep.subr.bf16.mxu1 %v2593_v49  ;;  %v2601_v45 = vpack.c.bf16 %v884_v0, %v883_v33  ;;  %v4614_v33 = vld [vmem:[#allocation17_spill] sm:$0xff] }
  0xe0   : > { %1422 = vmatmul.mubr.f32.gmra.mrb[8].mxu0 %v3967_v23  ;;  %1691 = vmatprep.mubr.f32.mxu1 %v3973_v9  ;;  %v717_v0 = vld [vmem:[#allocation2 + $0x7a] sm:$0xff] }
  0xe1   : > { %1426 = vmatprep.mubr.f32.mxu0 %v3550_v57  ;;  %2543 = vmatpush1.bf16.msra.mxu0 %v3497_v54  ;;  %v885_v57 = vld [vmem:[%s4519_s3 + $0x470] sm:$0xff]  ;;  %v886_v54 = vld [vmem:[%s4519_s3 + $0x478] sm:$0xff] }
  0xe2   : > { %2544 = vmatprep.subr.bf16.mxu0 %v4594_v41  ;;  %2596 = vmatpush3.bf16.msra.mxu1 %v2593_v49  ;;  %v714_v49 = vld [vmem:[#allocation2 + $0x52] sm:$0xff] }
  0xe3   : > { %1692 = vmatmul.mubr.f32.gmra.mrb[74].mxu1 %v3721_v43  ;;  %2598 = vmatprep.subr.bf16.mxu1 %v2597_v47  ;;  %v2605_v43 = vpack.c.bf16 %v886_v54, %v885_v57  ;;  %v718_v57 = vld [vmem:[#allocation2 + $0x82] sm:$0xff]  ;;  %v4615_v54 = vld [vmem:[#allocation19_spill] sm:$0xff] }
  0xe4   : > { %1427 = vmatmul.mubr.f32.gmra.mrb[10].mxu0 %v3983_v5  ;;  %1696 = vmatprep.mubr.f32.mxu1 %v3989_v14 }
  0xe5   : > { %1431 = vmatprep.mubr.f32.mxu0 %v3572_v40  ;;  %2546 = vmatpush1.bf16.msra.mxu0 %v3517_v48  ;;  %v4009_v40 = vld [vmem:[#allocation2 + $0x69] sm:$0xff]  ;;  %v4019_v48 = vld [vmem:[#allocation2 + $0x79] sm:$0xff] }
  0xe6   : > { %2547 = vmatprep.subr.bf16.mxu0 %v4594_v41  ;;  %2600 = vmatpush3.bf16.msra.mxu1 %v2597_v47 }
  0xe7   : > { %1697 = vmatmul.mubr.f32.gmra.mrb[76].mxu1 %v3753_v56  ;;  %2602 = vmatprep.subr.bf16.mxu1 %v2601_v45  ;;  %v4015_v56 = vld [vmem:[#allocation2 + $0xf1] sm:$0xff] }
  0xe8   : > { %1432 = vmatmul.mubr.f32.gmra.mrb[12].mxu0 %v3999_v18  ;;  %1701 = vmatprep.mubr.f32.mxu1 %v4005_v61 }
  0xe9   : > { %1436 = vmatprep.mubr.f32.mxu0 %v3594_v13  ;;  %2549 = vmatpush1.bf16.msra.mxu0 %v3538_v15  ;;  %v4025_v15 = vld [vmem:[#allocation2 + $0xf9] sm:$0xff]  ;;  %v4029_v13 = vld [vmem:[#allocation2 + $0x81] sm:$0xff] }
  0xea   : > { %2550 = vmatprep.subr.bf16.mxu0 %v4594_v41  ;;  %2604 = vmatpush3.bf16.msra.mxu1 %v2601_v45 }
  0xeb   : > { %1702 = vmatmul.mubr.f32.gmra.mrb[78].mxu1 %v3769_v34  ;;  %2606 = vmatprep.subr.bf16.mxu1 %v2605_v43  ;;  %v710_v34 = vld [vmem:[#allocation2 + $0x1a1] sm:$0xff] }
  0xec   : > { %1437 = vmatmul.mubr.f32.gmra.mrb[14].mxu0 %v4009_v40  ;;  %1706 = vmatprep.mubr.f32.mxu1 %v4015_v56 }
  0xed   : > { %1441 = vmatprep.mubr.f32.mxu0 %v3619_v21  ;;  %2552 = vmatpush1.bf16.msra.mxu0 %v3560_v20  ;;  %v2795_v20 = vld [vmem:[#allocation2 + $0x109] sm:$0xff]  ;;  %v2796_v21 = vld [vmem:[#allocation2 + $0x91] sm:$0xff] }
  0xee   : > { %2553 = vmatprep.subr.bf16.mxu0 %v4594_v41  ;;  %2608 = vmatpush3.bf16.msra.mxu1 %v2605_v43  ;;  %v719_v43 = vld [vmem:[#allocation2 + $0x92] sm:$0xff] }
  0xef   : > { %1707 = vmatmul.mubr.f32.gmra.mrb[80].mxu1 %v3781_v62 }
  0xf0   : > { %1442 = vmatmul.mubr.f32.gmra.mrb[16].mxu0 %v4019_v48  ;;  %1711 = vmatprep.mubr.f32.mxu1 %v4025_v15 }
  0xf1   : > { %1446 = vmatprep.mubr.f32.mxu0 %v3644_v30  ;;  %2555 = vmatpush1.bf16.msra.mxu0 %v3582_v27  ;;  %v2797_v30 = vld [vmem:[#allocation2 + $0x111] sm:$0xff]  ;;  %v2798_v27 = vld [vmem:[#allocation2 + $0x99] sm:$0xff] }
  0xf2   : > { %2556 = vmatprep.subr.bf16.mxu0 %v4594_v41 }
  0xf3   : > { %1712 = vmatmul.mubr.f32.gmra.mrb[82].mxu1 %v3790_v44 }
  0xf4   : > { %1447 = vmatmul.mubr.f32.gmra.mrb[18].mxu0 %v4029_v13  ;;  %1716 = vmatprep.mubr.f32.mxu1 %v2795_v20 }
  0xf5   : > { %1451 = vmatprep.mubr.f32.mxu0 %v3668_v59  ;;  %2558 = vmatpush1.bf16.msra.mxu0 %v3606_v36  ;;  %v2799_v59 = vld [vmem:[#allocation2 + $0x121] sm:$0xff] }
  0xf6   : > { %2559 = vmatprep.subr.bf16.mxu0 %v4594_v41 }
  0xf7   : > { %1717 = vmatmul.mubr.f32.gmra.mrb[84].mxu1 %v3799_v25  ;;  %v2800_v25 = vld [vmem:[#allocation2 + $0x8] sm:$0xff] }
  0xf8   : > { %1452 = vmatmul.mubr.f32.gmra.mrb[20].mxu0 %v2796_v21  ;;  %1721 = vmatprep.mubr.f32.mxu1 %v2797_v30  ;;  %v4616_v21 = vld [vmem:[#allocation21_spill] sm:$0xff] }
  0xf9   : > { %1456 = vmatprep.mubr.f32.mxu0 %v3693_v35  ;;  %2561 = vmatpush1.bf16.msra.mxu0 %v3631_v39  ;;  %v4604_v39 = vld [vmem:[#allocation9_spill] sm:$0xff]  ;;  %v4608_v35 = vld [vmem:[#allocation10_spill] sm:$0xff] }
  0xfa   : > { %2562 = vmatprep.subr.bf16.mxu0 %v4594_v41 }
  0xfb   : > { %1722 = vmatmul.mubr.f32.gmra.mrb[86].mxu1 %v3808_v19 }
  0xfc   : > { %1457 = vmatmul.mubr.f32.gmra.mrb[22].mxu0 %v2798_v27  ;;  %1726 = vmatprep.mubr.f32.mxu1 %v2799_v59 }
  0xfd   : > { %1461 = vmatprep.mubr.f32.mxu0 %v3719_v53  ;;  %2564 = vmatpush1.bf16.msra.mxu0 %v3656_v46  ;;  %v4606_v46 = vld [vmem:[#allocation5_spill] sm:$0xff] }
  0xfe   : > { %2565 = vmatprep.subr.bf16.mxu0 %v4594_v41 }
  0xff   : > { %1727 = vmatmul.mubr.f32.gmra.mrb[88].mxu1 %v3817_v3  ;;  %v4595_v3 = vld [vmem:[#allocation6_spill] sm:$0xff] }
 0x100   : > { %1462 = vmatmul.mubr.f32.gmra.mrb[24].mxu0 %v3923_v16  ;;  %1731 = vmatprep.mubr.f32.mxu1 %v3351_v2  ;;  %v4596_v2 = vld [vmem:[#allocation14_spill] sm:$0xff] }
 0x101   : > { %1466 = vmatprep.mubr.f32.mxu0 %v3751_v60  ;;  %2567 = vmatpush1.bf16.msra.mxu0 %v3680_v8  ;;  %v4607_v8 = vmax.f32 %v4606_v46, 0.0 }
 0x102   : > { %2568 = vmatprep.subr.bf16.mxu0 %v4594_v41 }
 0x103   : > { %1732 = vmatmul.mubr.f32.gmra.mrb[90].mxu1 %v3826_v31  ;;  %v4601_v31 = vld [vmem:[#allocation18_spill] sm:$0xff] }
 0x104   : > { %1467 = vmatmul.mubr.f32.gmra.mrb[26].mxu0 %v3941_v42  ;;  %1736 = vmatprep.mubr.f32.mxu1 %v3360_v32  ;;  %v4597_v32 = vld [vmem:[#allocation7_spill] sm:$0xff] }
 0x105   : > { %1471 = vmatprep.mubr.f32.mxu0 %v3767_v26  ;;  %2570 = vmatpush1.bf16.msra.mxu0 %v3705_v38  ;;  %v709_v38 = vld [vmem:[#allocation2 + $0x199] sm:$0xff]  ;;  %v4610_v26 = vld [vmem:[#allocation11_spill] sm:$0xff] }
 0x106   : > { %2571 = vmatprep.subr.bf16.mxu0 %v4594_v41 }
 0x107   : > { %1737 = vmatmul.mubr.f32.gmra.mrb[92].mxu1 %v3835_v50  ;;  %v4600_v50 = vld [vmem:[#allocation8_spill] sm:$0xff] }
 0x108   : > { %1472 = vmatmul.mubr.f32.gmra.mrb[28].mxu0 %v3957_v24  ;;  %1741 = vmatprep.mubr.f32.mxu1 %v3371_v12  ;;  %v4599_v12 = vld [vmem:[#allocation3_spill] sm:$0xff] }
 0x109   : > { %1476 = vmatprep.mubr.f32.mxu0 %v3779_v51  ;;  %2573 = vmatpush1.bf16.msra.mxu0 %v3731_v10  ;;  %v4609_v10 = vld [vmem:[#allocation22_spill] sm:$0xff]  ;;  %v4613_v24 = vld [vmem:[#allocation15_spill] sm:$0xff] }
 0x10a   : > { %2574 = vmatprep.subr.bf16.mxu0 %v4594_v41  ;;  %v4612_v41 = vld [vmem:[#allocation13_spill] sm:$0xff] }
 0x10b   : > { %1742 = vmatmul.mubr.f32.gmra.mrb[94].mxu1 %v3844_v37  ;;  %v2801_v37 = vld [vmem:[#allocation2 + $0x129] sm:$0xff] }
 0x10c   : > { %1477 = vmatmul.mubr.f32.gmra.mrb[30].mxu0 %v3973_v9  ;;  %1746 = vmatprep.mubr.f32.mxu1 %v3393_v52  ;;  %v4598_v52 = vld [vmem:[#allocation16_spill] sm:$0xff]  ;;  %v716_v9 = vld [vmem:[#allocation2 + $0x6a] sm:$0xff] }
 0x10d   : > { %1481 = vmatprep.mubr.f32.mxu0 %v3788_v55  ;;  %2576 = vmatpush1.bf16.msra.mxu0 %v3757_v11  ;;  %v677_v11 = vld [vmem:[#allocation2 + $0x198] sm:$0xff] }
 0x10e   : > { %v4611_v55 = vld [vmem:[#allocation12_spill] sm:$0xff] }
 0x10f   : > { %1747 = vmatmul.mubr.f32.gmra.mrb[96].mxu1 %v3852_v22  ;;  %v713_v22 = vld [vmem:[#allocation2 + $0x4a] sm:$0xff] }
 0x110   : > { %1482 = vmatmul.mubr.f32.gmra.mrb[32].mxu0 %v3989_v14  ;;  %1751 = vmatprep.mubr.f32.mxu1 %v3404_v6  ;;  %v4602_v6 = vld [vmem:[#allocation4_spill] sm:$0xff] }
 0x111   : > { %1486 = vmatprep.mubr.f32.mxu0 %v4595_v3  ;;  %v4603_v36 = vmax.f32 %v4602_v6, 0.0  ;;  %v2804_v14 = vld [vmem:[#allocation2 + $0x151] sm:$0xff]  ;;  %v2806_v3 = vld [vmem:[#allocation2 + $0x169] sm:$0xff] }
 0x112   : > { %v2807_v6 = vld [vmem:[#allocation2 + $0x171] sm:$0xff] }
 0x113   : > { %1752 = vmatmul.mubr.f32.gmra.mrb[98].mxu1 %v4596_v2  ;;  %v722_v2 = vld [vmem:[#allocation2 + $0xb2] sm:$0xff] }
 0x114   : > { %1487 = vmatmul.mubr.f32.gmra.mrb[34].mxu0 %v4005_v61  ;;  %1756 = vmatprep.mubr.f32.mxu1 %v3417_v58  ;;  %v4605_v58 = vld [vmem:[#allocation20_spill] sm:$0xff] }
 0x115   : > { %1491 = vmatprep.mubr.f32.mxu0 %v4597_v32  ;;  %v4617_v32 = vld [vmem:[#allocation23_spill] sm:$0xff] }
 0x117   : > { %1757 = vmatmul.mubr.f32.gmra.mrb[100].mxu1 %v4598_v52  ;;  %v723_v52 = vld [vmem:[#allocation2 + $0xc2] sm:$0xff] }
 0x118   : > { %1492 = vmatmul.mubr.f32.gmra.mrb[36].mxu0 %v4015_v56  ;;  %1761 = vmatprep.mubr.f32.mxu1 %v4599_v12  ;;  %v4117_v12 = vld [vmem:[#allocation2 + $0x182] sm:$0xff] }
 0x119   : > { %1496 = vmatprep.mubr.f32.mxu0 %v4600_v50 }
 0x11b   : > { %1762 = vmatmul.mubr.f32.gmra.mrb[102].mxu1 %v4601_v31 }
 0x11c   : > { %1497 = vmatmul.mubr.f32.gmra.mrb[38].mxu0 %v4025_v15  ;;  %1766 = vmatprep.mubr.f32.mxu1 %v4603_v36  ;;  %v2805_v15 = vld [vmem:[#allocation2 + $0x159] sm:$0xff]  ;;  %v724_v36 = vld [vmem:[#allocation2 + $0xca] sm:$0xff] }
 0x11d   : > { %1501 = vmatprep.mubr.f32.mxu0 %v4604_v39  ;;  %v725_v39 = vld [vmem:[#allocation2 + $0xda] sm:$0xff] }
 0x11f   : > { %1767 = vmatmul.mubr.f32.gmra.mrb[104].mxu1 %v4605_v58  ;;  %v4122_v58 = vld [vmem:[#allocation2 + $0x18a] sm:$0xff] }
 0x120   : > { %1502 = vmatmul.mubr.f32.gmra.mrb[40].mxu0 %v2795_v20  ;;  %1771 = vmatprep.mubr.f32.mxu1 %v4607_v8  ;;  %v720_v20 = vld [vmem:[#allocation2 + $0x9a] sm:$0xff] }
 0x121   : > { %1506 = vmatprep.mubr.f32.mxu0 %v4608_v35  ;;  %v2808_v35 = vld [vmem:[#allocation2 + $0x181] sm:$0xff] }
 0x122   : > { %v4090_v53 = vpop.f32.mrb[0].mxu1 }
 0x123   : > { %1772 = vmatmul.mubr.f32.gmra.mrb[106].mxu1 %v4609_v10  ;;  %v955_v60 = vpop.f32.mrb[1].mxu1  ;;  %v727_v10 = vld [vmem:[#allocation2 + $0xf2] sm:$0xff] }
 0x124   : > { %1507 = vmatmul.mubr.f32.gmra.mrb[42].mxu0 %v2797_v30  ;;  %1776 = vmatprep.mubr.f32.mxu1 %v709_v38  ;;  %v721_v30 = vld [vmem:[#allocation2 + $0xaa] sm:$0xff]  ;;  %v726_v38 = vld [vmem:[#allocation2 + $0xe2] sm:$0xff] }
 0x125   : > { %1511 = vmatprep.mubr.f32.mxu0 %v4610_v26 }
 0x126   : > { %v4094_v51 = vpop.f32.mrb[2].mxu1 }
 0x127   : > { %1777 = vmatmul.mubr.f32.gmra.mrb[108].mxu1 %v677_v11  ;;  %v960_v62 = vpop.f32.mrb[3].mxu1 }
 0x128   : > { %1512 = vmatmul.mubr.f32.gmra.mrb[44].mxu0 %v2799_v59  ;;  %1781 = vmatprep.mubr.f32.mxu1 %v710_v34  ;;  %v2809_v34 = vld [vmem:[#allocation2 + $0x189] sm:$0xff]  ;;  %v728_v62 = vld [vmem:[#allocation2 + $0xfa] sm:$0xff] }
 0x129   : > { %1516 = vmatprep.mubr.f32.mxu0 %v4611_v55 }
 0x12a   : > { %v4097_v44 = vpop.f32.mrb[4].mxu1 }
 0x12b   : > { %1782 = vmatmul.mubr.f32.gmra.mrb[110].mxu1 %v2800_v25  ;;  %v965_v19 = vpop.f32.mrb[5].mxu1  ;;  %v647_v25 = vld [vmem:[#allocation2 + $0x30] sm:$0xff] }
 0x12c   : > { %1517 = vmatmul.mubr.f32.gmra.mrb[46].mxu0 %v2801_v37  ;;  %2337 = vmatprep.mubr.f32.mxu1 %v3918_v29  ;;  %v2803_v29 = vld [vmem:[#allocation2 + $0x141] sm:$0xff]  ;;  %v729_v19 = vld [vmem:[#allocation2 + $0x10a] sm:$0xff] }
 0x12d   : > { %1521 = vmatprep.mubr.f32.mxu0 %v4612_v41 }
 0x12e   : > { %v4101_v16 = vpop.f32.mrb[6].mxu1 }
 0x12f   : > { %2338 = vmatmul.mubr.f32.vlgmr.msra.gmra.mrb[112].mxu1 %v3936_v7  ;;  %v970_v42 = vpop.f32.mrb[7].mxu1 }
 0x130   : > { %1522 = vmatmul.mubr.f32.gmra.mrb[48].mxu0 %v2802_v1  ;;  %2340 = vmatprep.mubr.f32.mxu1 %v713_v22  ;;  %v730_v42 = vld [vmem:[#allocation2 + $0x112] sm:$0xff] }
 0x131   : > { %1526 = vmatprep.mubr.f32.mxu0 %v4613_v24  ;;  %v648_v1 = vld [vmem:[#allocation2 + $0x38] sm:$0xff] }
 0x132   : > { %v4105_v63 = vpop.f32.mrb[8].mxu1 }
 0x133   : > { %2341 = vmatmul.mubr.f32.gmra.mrb[114].mxu1 %v714_v49  ;;  %v975_v47 = vpop.f32.mrb[9].mxu1 }
 0x134   : > { %1527 = vmatmul.mubr.f32.gmra.mrb[50].mxu0 %v2803_v29  ;;  %2343 = vmatprep.mubr.f32.mxu1 %v715_v4 }
 0x135   : > { %1531 = vmatprep.mubr.f32.mxu0 %v4614_v33 }
 0x136   : > { %v4108_v7 = vpop.f32.mrb[10].mxu1 }
 0x137   : > { %2344 = vmatmul.mubr.f32.gmra.mrb[116].mxu1 %v716_v9  ;;  %v980_v45 = vpop.f32.mrb[11].mxu1 }
 0x138   : > { %1532 = vmatmul.mubr.f32.gmra.mrb[52].mxu0 %v2804_v14  ;;  %2346 = vmatprep.mubr.f32.mxu1 %v717_v0 }
 0x139   : > { %1536 = vmatprep.mubr.f32.mxu0 %v4615_v54 }
 0x13a   : > { %v4111_v61 = vpop.f32.mrb[12].mxu1 }
 0x13b   : > { %2347 = vmatmul.mubr.f32.gmra.mrb[118].mxu1 %v718_v57  ;;  %v985_v56 = vpop.f32.mrb[13].mxu1  ;;  %v654_v57 = vld [vmem:[#allocation2 + $0x80] sm:$0xff] }
 0x13c   : > { %1537 = vmatmul.mubr.f32.gmra.mrb[54].mxu0 %v2805_v15  ;;  %2349 = vmatprep.mubr.f32.mxu1 %v719_v43 }
 0x13d   : > { %1541 = vmatprep.mubr.f32.mxu0 %v4616_v21 }
 0x13e   : > { %v4114_v27 = vpop.f32.mrb[14].mxu1 }
 0x13f   : > { %2350 = vmatmul.mubr.f32.gmra.mrb[120].mxu1 %v720_v20  ;;  %v990_v59 = vpop.f32.mrb[15].mxu1 }
 0x140   : > { %1542 = vmatmul.mubr.f32.gmra.mrb[56].mxu0 %v2806_v3  ;;  %2352 = vmatprep.mubr.f32.mxu1 %v721_v30 }
 0x141   : > { %1546 = vmatprep.mubr.f32.mxu0 %v4617_v32 }
 0x142   : > { %v4119_v50 = vpop.f32.mrb[16].mxu1 }
 0x143   : > { %2353 = vmatmul.mubr.f32.gmra.mrb[122].mxu1 %v722_v2  ;;  %v995_v31 = vpop.f32.mrb[17].mxu1 }
 0x144   : > { %1547 = vmatmul.mubr.f32.gmra.mrb[58].mxu0 %v2807_v6  ;;  %2355 = vmatprep.mubr.f32.mxu1 %v723_v52 }
 0x145   : > { %1551 = vmatprep.mubr.f32.mxu0 %v4117_v12 }
 0x146   : > { %v4124_v46 = vpop.f32.mrb[18].mxu1 }
 0x147   : > { %2356 = vmatmul.mubr.f32.gmra.mrb[124].mxu1 %v724_v36  ;;  %v1000_v8 = vpop.f32.mrb[19].mxu1 }
 0x148   : > { %1552 = vmatmul.mubr.f32.gmra.mrb[60].mxu0 %v2808_v35  ;;  %2358 = vmatprep.mubr.f32.mxu1 %v725_v39 }
 0x149   : > { %1556 = vmatprep.mubr.f32.mxu0 %v4122_v58 }
 0x14a   : > { %v4127_v60 = vpop.f32.mrb[20].mxu1 }
 0x14b   : > { %2359 = vmatmul.mubr.f32.gmra.mrb[126].mxu1 %v726_v38  ;;  %v1005_v11 = vpop.f32.mrb[21].mxu1 }
 0x14c   : > { %1557 = vmatmul.mubr.f32.gmra.mrb[62].mxu0 %v2809_v34  ;;  %2361 = vmatprep.mubr.f32.mxu1 %v727_v10 }
 0x14d   : > { %1626 = vmatprep.mubr.f32.mxu0 %v3933_v28  ;;  %v649_v28 = vld [vmem:[#allocation2 + $0x48] sm:$0xff] }
 0x14e   : > { %v4130_v37 = vpop.f32.mrb[22].mxu1 }
 0x14f   : > { %2362 = vmatmul.mubr.f32.gmra.mrb[128].mxu1 %v728_v62  ;;  %v1010_v22 = vpop.f32.mrb[23].mxu1 }
 0x150   : > { %1627 = vmatmul.mubr.f32.vlgmr.msra.gmra.mrb[0].mxu0 %v647_v25  ;;  %2364 = vmatprep.mubr.f32.mxu1 %v729_v19 }
 0x151   : > { %1631 = vmatprep.mubr.f32.mxu0 %v3951_v17  ;;  %v650_v17 = vld [vmem:[#allocation2 + $0x50] sm:$0xff] }
 0x152   : > { %v4133_v49 = vpop.f32.mrb[24].mxu1 }
 0x153   : > { %2365 = vmatmul.mubr.f32.gmra.mrb[130].mxu1 %v730_v42  ;;  %v1015_v4 = vpop.f32.mrb[25].mxu1 }
 0x154   : > { %1632 = vmatmul.mubr.f32.gmra.mrb[2].mxu0 %v648_v1  ;;  %2367 = vmatprep.mubr.f32.mxu1 %v4610_v26 }
 0x155   : > { %1636 = vmatprep.mubr.f32.mxu0 %v3967_v23  ;;  %v651_v23 = vld [vmem:[#allocation2 + $0x60] sm:$0xff] }
 0x156   : > { %v4137_v47 = vpop.f32.mrb[26].mxu1 }
 0x157   : > { %2368 = vmatmul.mubr.f32.gmra.mrb[132].mxu1 %v4611_v55  ;;  %v1020_v29 = vpop.f32.mrb[27].mxu1 }
 0x158   : > { %1637 = vmatmul.mubr.f32.gmra.mrb[4].mxu0 %v649_v28  ;;  %2370 = vmatprep.mubr.f32.mxu1 %v4612_v41 }
 0x159   : > { %1641 = vmatprep.mubr.f32.mxu0 %v3983_v5  ;;  %v652_v5 = vld [vmem:[#allocation2 + $0x68] sm:$0xff] }
 0x15a   : > { %v4142_v9 = vpop.f32.mrb[28].mxu1 }
 0x15b   : > { %2371 = vmatmul.mubr.f32.gmra.mrb[134].mxu1 %v4613_v24  ;;  %v1025_v0 = vpop.f32.mrb[29].mxu1 }
 0x15c   : > { %1642 = vmatmul.mubr.f32.gmra.mrb[6].mxu0 %v650_v17  ;;  %2373 = vmatprep.mubr.f32.mxu1 %v4614_v33  ;;  %v741_v33 = vld [vmem:[#allocation2 + $0x19a] sm:$0xff] }
 0x15d   : > { %1646 = vmatprep.mubr.f32.mxu0 %v3999_v18  ;;  %v653_v18 = vld [vmem:[#allocation2 + $0x78] sm:$0xff] }
 0x15e   : > { %v4147_v26 = vpop.f32.mrb[30].mxu1 }
 0x15f   : > { %2374 = vmatmul.mubr.f32.gmra.mrb[136].mxu1 %v4615_v54  ;;  %v1030_v55 = vpop.f32.mrb[31].mxu1 }
 0x160   : > { %1647 = vmatmul.mubr.f32.gmra.mrb[8].mxu0 %v651_v23  ;;  %2376 = vmatprep.mubr.f32.mxu1 %v4616_v21 }
 0x161   : > { %1651 = vmatprep.mubr.f32.mxu0 %v4009_v40  ;;  %v742_v40 = vld [vmem:[#allocation2 + $0x1a2] sm:$0xff] }
 0x162   : > { %v4152_v41 = vpop.f32.mrb[32].mxu1 }
 0x163   : > { %2377 = vmatmul.mubr.f32.gmra.mrb[138].mxu1 %v4617_v32  ;;  %v1035_v24 = vpop.f32.mrb[33].mxu1 }
 0x164   : > { %1652 = vmatmul.mubr.f32.gmra.mrb[10].mxu0 %v652_v5  ;;  %2379 = vmatprep.mubr.f32.mxu1 %v4117_v12 }
 0x165   : > { %1656 = vmatprep.mubr.f32.mxu0 %v4019_v48 }
 0x166   : > { %v4157_v45 = vpop.f32.mrb[34].mxu1 }
 0x167   : > { %2380 = vmatmul.mubr.f32.gmra.mrb[140].mxu1 %v4122_v58  ;;  %v1040_v14 = vpop.f32.mrb[35].mxu1 }
 0x168   : > { %1657 = vmatmul.mubr.f32.gmra.mrb[12].mxu0 %v653_v18  ;;  %2382 = vmatprep.mubr.f32.mxu1 %v741_v33 }
 0x169   : > { %1661 = vmatprep.mubr.f32.mxu0 %v4029_v13 }
 0x16a   : > { %v4161_v54 = vpop.f32.mrb[36].mxu1 }
 0x16b   : > { %2383 = vmatmul.mubr.f32.gmra.mrb[142].mxu1 %v742_v40  ;;  %v1045_v43 = vpop.f32.mrb[37].mxu1 }
 0x16c   : > { %1662 = vmatmul.mubr.f32.gmra.mrb[14].mxu0 %v654_v57 }
 0x16e   : > { %v4163_v56 = vpop.f32.mrb[38].mxu1 }
 0x16f   : > { %v1050_v48 = vpop.f32.mrb[39].mxu1 }
 0x172   : > { %v4165_v15 = vpop.f32.mrb[40].mxu1 }
 0x173   : > { %v1055_v20 = vpop.f32.mrb[41].mxu1 }
 0x176   : > { %v4167_v21 = vpop.f32.mrb[42].mxu1 }
 0x177   : > { %v1060_v30 = vpop.f32.mrb[43].mxu1 }
 0x17a   : > { %v4169_v59 = vpop.f32.mrb[44].mxu1 }
 0x17b   : > { %v1065_v3 = vpop.f32.mrb[45].mxu1 }
 0x17e   : > { %v4171_v2 = vpop.f32.mrb[46].mxu1 }
 0x17f   : > { %v1070_v13 = vpop.f32.mrb[47].mxu1 }
 0x182   : > { %v4173_v32 = vpop.f32.mrb[48].mxu1 }
 0x183   : > { %v1075_v52 = vpop.f32.mrb[49].mxu1 }
 0x186   : > { %v4175_v12 = vpop.f32.mrb[50].mxu1 }
 0x187   : > { %v1080_v31 = vpop.f32.mrb[51].mxu1 }
 0x18a   : > { %v4177_v6 = vpop.f32.mrb[52].mxu1 }
 0x18b   : > { %v1085_v36 = vpop.f32.mrb[53].mxu1 }
 0x18e   : > { %v4179_v39 = vpop.f32.mrb[54].mxu1 }
 0x18f   : > { %v1090_v58 = vpop.f32.mrb[55].mxu1 }
 0x192   : > { %v4181_v8 = vpop.f32.mrb[56].mxu1 }
 0x193   : > { %v1095_v35 = vpop.f32.mrb[57].mxu1 }
 0x196   : > { %v4183_v38 = vpop.f32.mrb[58].mxu1 }
 0x197   : > { %v1100_v10 = vpop.f32.mrb[59].mxu1 }
 0x19a   : > { %v4185_v11 = vpop.f32.mrb[60].mxu1 }
 0x19b   : > { %v1105_v34 = vpop.f32.mrb[61].mxu1 }
 0x19e   : > { %v4187_v62 = vpop.f32.mrb[62].mxu1 }
 0x19f   : > { %v1110_v25 = vpop.f32.mrb[63].mxu1 }
 0x1a2   : > { %v1668_v19 = vpop.f32.mrb[64].mxu1 }
 0x1a3   : > { %v1670_v22 = vpop.f32.mrb[65].mxu1 }
 0x1a6   : > { %v1673_v42 = vpop.f32.mrb[66].mxu1 }
 0x1a7   : > { %v1675_v1 = vpop.f32.mrb[67].mxu1 }
 0x1aa   : > { %v1678_v4 = vpop.f32.mrb[68].mxu1 }
 0x1ab   : > { %v1680_v28 = vpop.f32.mrb[69].mxu1 }
 0x1ae   : > { %v1683_v29 = vpop.f32.mrb[70].mxu1 }
 0x1af   : > { %v1685_v17 = vpop.f32.mrb[71].mxu1 }
 0x1b2   : > { %v1688_v0 = vpop.f32.mrb[72].mxu1 }
 0x1b3   : > { %v1690_v23 = vpop.f32.mrb[73].mxu1 }
 0x1b6   : > { %v1693_v55 = vpop.f32.mrb[74].mxu1 }
 0x1b7   : > { %v1695_v5 = vpop.f32.mrb[75].mxu1 }
 0x1ba   : > { %v1698_v24 = vpop.f32.mrb[76].mxu1 }
 0x1bb   : > { %v1700_v18 = vpop.f32.mrb[77].mxu1 }
 0x1be   : > { %v1703_v33 = vpop.f32.mrb[78].mxu1 }
 0x1bf   : > { %v1705_v14 = vpop.f32.mrb[79].mxu1 }
 0x1c2   : > { %v1708_v40 = vpop.f32.mrb[80].mxu1 }
 0x1c3   : > { %v1443_v57 = vpop.f32.mrb[16].mxu0  ;;  %v1710_v43 = vpop.f32.mrb[81].mxu1 }
 0x1c4   : > { %v2649_v48 = vadd.f32 %v1443_v57, %v4119_v50  ;;  %v1445_v20 = vpop.f32.mrb[17].mxu0 }
 0x1c6   : > { %v4190_v30 = vadd.f32 %v2649_v48, %v1668_v19  ;;  %v1713_v3 = vpop.f32.mrb[82].mxu1 }
 0x1c7   : > { %v1448_v13 = vpop.f32.mrb[18].mxu0  ;;  %v1715_v52 = vpop.f32.mrb[83].mxu1 }
 0x1c8   : > { %v2651_v31 = vadd.f32 %v1448_v13, %v4124_v46  ;;  %v1450_v36 = vpop.f32.mrb[19].mxu0 }
 0x1ca   : > { %v4193_v58 = vadd.f32 %v2651_v31, %v1673_v42  ;;  %v1718_v35 = vpop.f32.mrb[84].mxu1 }
 0x1cb   : > { %v1453_v10 = vpop.f32.mrb[20].mxu0  ;;  %v1720_v34 = vpop.f32.mrb[85].mxu1 }
 0x1cc   : > { %v2653_v25 = vadd.f32 %v1453_v10, %v4127_v60  ;;  %v1455_v22 = vpop.f32.mrb[21].mxu0 }
 0x1ce   : > { %v4196_v1 = vadd.f32 %v2653_v25, %v1678_v4  ;;  %v1723_v50 = vpop.f32.mrb[86].mxu1 }
 0x1cf   : > { %v1458_v28 = vpop.f32.mrb[22].mxu0  ;;  %v1725_v19 = vpop.f32.mrb[87].mxu1 }
 0x1d0   : > { %v2655_v17 = vadd.f32 %v1458_v28, %v4130_v37  ;;  %v1460_v23 = vpop.f32.mrb[23].mxu0 }
 0x1d2   : > { %v4199_v5 = vadd.f32 %v2655_v17, %v1683_v29  ;;  %v1728_v46 = vpop.f32.mrb[88].mxu1 }
 0x1d3   : > { %v1463_v18 = vpop.f32.mrb[24].mxu0  ;;  %v1730_v42 = vpop.f32.mrb[89].mxu1 }
 0x1d4   : > { %v2657_v14 = vadd.f32 %v1463_v18, %v4133_v49  ;;  %v1465_v57 = vpop.f32.mrb[25].mxu0 }
 0x1d6   : > { %v4202_v43 = vadd.f32 %v2657_v14, %v1688_v0  ;;  %v1733_v60 = vpop.f32.mrb[90].mxu1 }
 0x1d7   : > { %v1468_v48 = vpop.f32.mrb[26].mxu0  ;;  %v1735_v4 = vpop.f32.mrb[91].mxu1 }
 0x1d8   : > { %v2659_v20 = vadd.f32 %v1468_v48, %v4137_v47  ;;  %v1470_v13 = vpop.f32.mrb[27].mxu0 }
 0x1da   : > { %v4205_v52 = vadd.f32 %v2659_v20, %v1693_v55  ;;  %v1738_v37 = vpop.f32.mrb[92].mxu1 }
 0x1db   : > { %v1473_v31 = vpop.f32.mrb[28].mxu0  ;;  %v1740_v29 = vpop.f32.mrb[93].mxu1 }
 0x1dc   : > { %v2661_v36 = vadd.f32 %v1473_v31, %v4142_v9  ;;  %v1475_v10 = vpop.f32.mrb[29].mxu0 }
 0x1de   : > { %v4208_v34 = vadd.f32 %v2661_v36, %v1698_v24  ;;  %v1743_v49 = vpop.f32.mrb[94].mxu1 }
 0x1df   : > { %v1478_v25 = vpop.f32.mrb[30].mxu0  ;;  %v1745_v0 = vpop.f32.mrb[95].mxu1 }
 0x1e0   : > { %v2663_v22 = vadd.f32 %v1478_v25, %v4147_v26  ;;  %v1480_v28 = vpop.f32.mrb[31].mxu0 }
 0x1e2   : > { %v4211_v19 = vadd.f32 %v2663_v22, %v1703_v33  ;;  %v1748_v47 = vpop.f32.mrb[96].mxu1 }
 0x1e3   : > { %v1483_v17 = vpop.f32.mrb[32].mxu0  ;;  %v1750_v55 = vpop.f32.mrb[97].mxu1 }
 0x1e4   : > { %v2665_v23 = vadd.f32 %v1483_v17, %v4152_v41  ;;  %v1485_v18 = vpop.f32.mrb[33].mxu0 }
 0x1e6   : > { %v4214_v42 = vadd.f32 %v2665_v23, %v1708_v40  ;;  %v1753_v9 = vpop.f32.mrb[98].mxu1 }
 0x1e7   : > { %v1488_v14 = vpop.f32.mrb[34].mxu0  ;;  %v1755_v24 = vpop.f32.mrb[99].mxu1 }
 0x1e8   : > { %v2667_v57 = vadd.f32 %v1488_v14, %v4157_v45  ;;  %v1490_v48 = vpop.f32.mrb[35].mxu0 }
 0x1ea   : > { %v4217_v4 = vadd.f32 %v2667_v57, %v1713_v3  ;;  %v1758_v26 = vpop.f32.mrb[100].mxu1 }
 0x1eb   : > { %v1493_v20 = vpop.f32.mrb[36].mxu0  ;;  %v1760_v33 = vpop.f32.mrb[101].mxu1 }
 0x1ec   : > { %v2669_v13 = vadd.f32 %v1493_v20, %v4161_v54  ;;  %v1495_v31 = vpop.f32.mrb[37].mxu0 }
 0x1ee   : > { %v4220_v29 = vadd.f32 %v2669_v13, %v1718_v35  ;;  %v1763_v41 = vpop.f32.mrb[102].mxu1 }
 0x1ef   : > { %v1498_v36 = vpop.f32.mrb[38].mxu0  ;;  %v1765_v40 = vpop.f32.mrb[103].mxu1 }
 0x1f0   : > { %v2671_v10 = vadd.f32 %v1498_v36, %v4163_v56  ;;  %v1500_v25 = vpop.f32.mrb[39].mxu0 }
 0x1f2   : > { %v4223_v0 = vadd.f32 %v2671_v10, %v1723_v50  ;;  %v1768_v45 = vpop.f32.mrb[104].mxu1 }
 0x1f3   : > { %v1503_v22 = vpop.f32.mrb[40].mxu0  ;;  %v1770_v3 = vpop.f32.mrb[105].mxu1 }
 0x1f4   : > { %v2673_v28 = vadd.f32 %v1503_v22, %v4165_v15  ;;  %v1505_v17 = vpop.f32.mrb[41].mxu0 }
 0x1f6   : > { %v4226_v55 = vadd.f32 %v2673_v28, %v1728_v46  ;;  %v4228_v54 = vpop.f32.mrb[106].mxu1 }
 0x1f7   : > { %v1508_v35 = vpop.f32.mrb[42].mxu0  ;;  %v1775_v23 = vpop.f32.mrb[107].mxu1 }
 0x1f8   : > { %v2675_v18 = vadd.f32 %v1508_v35, %v4167_v21  ;;  %v1510_v14 = vpop.f32.mrb[43].mxu0 }
 0x1fa   : > { %v4231_v24 = vpop.f32.mrb[108].mxu1  ;;  %v4233_v56 = vadd.f32 %v2675_v18, %v1733_v60 }
 0x1fb   : > { %v1513_v50 = vpop.f32.mrb[44].mxu0  ;;  %v1780_v57 = vpop.f32.mrb[109].mxu1 }
 0x1fc   : > { %v2677_v48 = vadd.f32 %v1513_v50, %v4169_v59  ;;  %v1515_v20 = vpop.f32.mrb[45].mxu0 }
 0x1fe   : > { %v4236_v15 = vpop.f32.mrb[110].mxu1  ;;  %v4238_v46 = vadd.f32 %v2677_v48, %v1738_v37 }
 0x1ff   : > { %v1518_v33 = vpop.f32.mrb[46].mxu0  ;;  %v1785_v13 = vpop.f32.mrb[111].mxu1 }
 0x200   : > { %v2679_v31 = vadd.f32 %v1518_v33, %v4171_v2  ;;  %v1520_v36 = vpop.f32.mrb[47].mxu0 }
 0x202   : > { %v4241_v21 = vpop.f32.mrb[112].mxu1  ;;  %v4243_v40 = vadd.f32 %v2679_v31, %v1743_v49 }
 0x203   : > { %v1523_v60 = vpop.f32.mrb[48].mxu0  ;;  %v4245_v10 = vpop.f32.mrb[113].mxu1 }
 0x204   : > { %v2681_v25 = vadd.f32 %v1523_v60, %v4173_v32  ;;  %v1525_v59 = vpop.f32.mrb[49].mxu0 }
 0x206   : > { %v4248_v22 = vpop.f32.mrb[114].mxu1  ;;  %v4250_v3 = vadd.f32 %v2681_v25, %v1748_v47 }
 0x207   : > { %v1528_v37 = vpop.f32.mrb[50].mxu0  ;;  %v4252_v28 = vpop.f32.mrb[115].mxu1 }
 0x208   : > { %v2683_v2 = vadd.f32 %v1528_v37, %v4175_v12  ;;  %v1530_v17 = vpop.f32.mrb[51].mxu0 }
 0x20a   : > { %v4255_v35 = vpop.f32.mrb[116].mxu1  ;;  %v4257_v49 = vadd.f32 %v2683_v2, %v1753_v9 }
 0x20b   : > { %v1533_v23 = vpop.f32.mrb[52].mxu0  ;;  %v4259_v18 = vpop.f32.mrb[117].mxu1 }
 0x20c   : > { %v2685_v32 = vadd.f32 %v1533_v23, %v4177_v6  ;;  %v1535_v14 = vpop.f32.mrb[53].mxu0 }
 0x20e   : > { %v4262_v50 = vpop.f32.mrb[118].mxu1  ;;  %v4264_v47 = vadd.f32 %v2685_v32, %v1758_v26 }
 0x20f   : > { %v1538_v57 = vpop.f32.mrb[54].mxu0  ;;  %v4266_v48 = vpop.f32.mrb[119].mxu1 }
 0x210   : > { %v2687_v12 = vadd.f32 %v1538_v57, %v4179_v39  ;;  %v1540_v20 = vpop.f32.mrb[55].mxu0 }
 0x212   : > { %v2351_v6 = vpop.f32.mrb[120].mxu1  ;;  %v4276_v9 = vadd.f32 %v2687_v12, %v1763_v41 }
 0x213   : > { %v1543_v33 = vpop.f32.mrb[56].mxu0  ;;  %v4279_v26 = vadd.f32 %v4193_v58, %v2351_v6  ;;  %v1893_v13 = vpop.f32.mrb[121].mxu1 }
 0x214   : > { %v2689_v39 = vadd.f32 %v1543_v33, %v4181_v8  ;;  %v1545_v31 = vpop.f32.mrb[57].mxu0  ;;  %v4283_v36 = vadd.f32 %v4190_v30, %v1893_v13 }
 0x215   : > { %2021 = vst [vmem:[%s4274_s9 + $0x48] sm:$0xff] %v4279_v26 }
 0x216   : > { %2020 = vst [vmem:[%s4274_s9 + $0x40] sm:$0xff] %v4283_v36  ;;  %v2354_v60 = vpop.f32.mrb[122].mxu1  ;;  %v4289_v41 = vadd.f32 %v2689_v39, %v1768_v45 }
 0x217   : > { %v1548_v25 = vpop.f32.mrb[58].mxu0  ;;  %v4292_v58 = vadd.f32 %v4199_v5, %v2354_v60  ;;  %v1903_v59 = vpop.f32.mrb[123].mxu1 }
 0x218   : > { %v2691_v8 = vadd.f32 %v1548_v25, %v4183_v38  ;;  %v1550_v37 = vpop.f32.mrb[59].mxu0  ;;  %v4296_v30 = vadd.f32 %v4196_v1, %v1903_v59 }
 0x219   : > { %2023 = vst [vmem:[%s4274_s9 + $0x58] sm:$0xff] %v4292_v58 }
 0x21a   : > { %2022 = vst [vmem:[%s4274_s9 + $0x50] sm:$0xff] %v4296_v30  ;;  %v2357_v2 = vpop.f32.mrb[124].mxu1  ;;  %v4303_v45 = vadd.f32 %v2691_v8, %v4228_v54 }
 0x21b   : > { %v1553_v17 = vpop.f32.mrb[60].mxu0  ;;  %v4306_v5 = vadd.f32 %v4205_v52, %v2357_v2  ;;  %v1913_v23 = vpop.f32.mrb[125].mxu1 }
 0x21c   : > { %v2693_v38 = vadd.f32 %v1553_v17, %v4185_v11  ;;  %v1555_v32 = vpop.f32.mrb[61].mxu0  ;;  %v4310_v1 = vadd.f32 %v4202_v43, %v1913_v23 }
 0x21d   : > { %2025 = vst [vmem:[%s4274_s9 + $0x68] sm:$0xff] %v4306_v5 }
 0x21e   : > { %2024 = vst [vmem:[%s4274_s9 + $0x60] sm:$0xff] %v4310_v1  ;;  %v2360_v14 = vpop.f32.mrb[126].mxu1  ;;  %v4317_v54 = vadd.f32 %v2693_v38, %v4231_v24 }
 0x21f   : > { %v1558_v57 = vpop.f32.mrb[62].mxu0  ;;  %v4320_v52 = vadd.f32 %v4211_v19, %v2360_v14  ;;  %v1923_v12 = vpop.f32.mrb[127].mxu1 }
 0x220   : > { %v2695_v11 = vadd.f32 %v1558_v57, %v4187_v62  ;;  %v1560_v20 = vpop.f32.mrb[63].mxu0  ;;  %v4324_v43 = vadd.f32 %v4208_v34, %v1923_v12 }
 0x221   : > { %2027 = vst [vmem:[%s4274_s9 + $0x78] sm:$0xff] %v4320_v52 }
 0x222   : > { %2026 = vst [vmem:[%s4274_s9 + $0x70] sm:$0xff] %v4324_v43  ;;  %v2363_v24 = vpop.f32.mrb[128].mxu1  ;;  %v4331_v6 = vadd.f32 %v2695_v11, %v4236_v15 }
 0x223   : > { %v1628_v33 = vpop.f32.mrb[0].mxu0  ;;  %v4334_v19 = vadd.f32 %v4217_v4, %v2363_v24  ;;  %v1933_v13 = vpop.f32.mrb[129].mxu1 }
 0x224   : > { %v2641_v62 = vadd.f32 %v1628_v33, %v4090_v53  ;;  %v1630_v34 = vpop.f32.mrb[1].mxu0  ;;  %v4338_v39 = vadd.f32 %v4214_v42, %v1933_v13 }
 0x225   : > { %2029 = vst [vmem:[%s4274_s9 + $0x88] sm:$0xff] %v4334_v19 }
 0x226   : > { %v1854_v31 = vadd.f32 %v2641_v62, %v4245_v10  ;;  %2028 = vst [vmem:[%s4274_s9 + $0x80] sm:$0xff] %v4338_v39  ;;  %v2366_v15 = vpop.f32.mrb[130].mxu1 }
 0x227   : > { %v1633_v60 = vpop.f32.mrb[2].mxu0  ;;  %v4346_v4 = vadd.f32 %v4223_v0, %v2366_v15  ;;  %v1943_v25 = vpop.f32.mrb[131].mxu1 }
 0x228   : > { %2012 = vst [vmem:[%s4274_s9] sm:$0xff] %v1854_v31  ;;  %v2642_v53 = vadd.f32 %v1633_v60, %v4094_v51  ;;  %v1635_v59 = vpop.f32.mrb[3].mxu0  ;;  %v4351_v42 = vadd.f32 %v4220_v29, %v1943_v25  ;;  %v2081_v37 = vmul.f32 %v1854_v31, %v1854_v31 }
 0x229   : > { %2031 = vst [vmem:[%s4274_s9 + $0x98] sm:$0xff] %v4346_v4 }
 0x22a   : > { %v1859_v10 = vadd.f32 %v2642_v53, %v4241_v21  ;;  %2030 = vst [vmem:[%s4274_s9 + $0x90] sm:$0xff] %v4351_v42  ;;  %v2369_v8 = vpop.f32.mrb[132].mxu1 }
 0x22b   : > { %v1638_v0 = vpop.f32.mrb[4].mxu0  ;;  %v4359_v2 = vadd.f32 %v4233_v56, %v2369_v8  ;;  %v1953_v51 = vpop.f32.mrb[133].mxu1 }
 0x22c   : > { %2013 = vst [vmem:[%s4274_s9 + $0x8] sm:$0xff] %v1859_v10  ;;  %v2044_v17 = vadd.f32 %v1859_v10, %v1854_v31  ;;  %v2082_v23 = vmul.f32 %v1859_v10, %v1859_v10  ;;  %v2643_v29 = vadd.f32 %v1638_v0, %v4097_v44  ;;  %v1640_v38 = vpop.f32.mrb[5].mxu0  ;;  %v4364_v21 = vadd.f32 %v4226_v55, %v1953_v51 }
 0x22d   : > { %2033 = vst [vmem:[%s4274_s9 + $0xa8] sm:$0xff] %v4359_v2 }
 0x22e   : > { %v2113_v32 = vadd.f32 %v2082_v23, %v2081_v37  ;;  %v1864_v14 = vadd.f32 %v2643_v29, %v4252_v28  ;;  %2032 = vst [vmem:[%s4274_s9 + $0xa0] sm:$0xff] %v4364_v21  ;;  %v2372_v56 = vpop.f32.mrb[134].mxu1 }
 0x22f   : > { %v1643_v57 = vpop.f32.mrb[6].mxu0  ;;  %v4372_v12 = vadd.f32 %v4243_v40, %v2372_v56  ;;  %v1963_v44 = vpop.f32.mrb[135].mxu1 }
 0x230   : > { %2014 = vst [vmem:[%s4274_s9 + $0x10] sm:$0xff] %v1864_v14  ;;  %v2045_v11 = vadd.f32 %v2044_v17, %v1864_v14  ;;  %v2083_v20 = vmul.f32 %v1864_v14, %v1864_v14  ;;  %v2644_v55 = vadd.f32 %v1643_v57, %v4101_v16  ;;  %v1645_v24 = vpop.f32.mrb[7].mxu0  ;;  %v4377_v33 = vadd.f32 %v4238_v46, %v1963_v44 }
 0x231   : > { %2035 = vst [vmem:[%s4274_s9 + $0xb8] sm:$0xff] %v4372_v12 }
 0x232   : > { %v2114_v28 = vadd.f32 %v2113_v32, %v2083_v20  ;;  %v1869_v13 = vadd.f32 %v2644_v55, %v4248_v22  ;;  %2034 = vst [vmem:[%s4274_s9 + $0xb0] sm:$0xff] %v4377_v33  ;;  %v2375_v40 = vpop.f32.mrb[136].mxu1 }
 0x233   : > { %v1648_v62 = vpop.f32.mrb[8].mxu0  ;;  %v4385_v34 = vadd.f32 %v4257_v49, %v2375_v40  ;;  %v1973_v16 = vpop.f32.mrb[137].mxu1 }
 0x234   : > { %2015 = vst [vmem:[%s4274_s9 + $0x18] sm:$0xff] %v1869_v13  ;;  %v2046_v31 = vadd.f32 %v2045_v11, %v1869_v13  ;;  %v2084_v15 = vmul.f32 %v1869_v13, %v1869_v13  ;;  %v2645_v46 = vadd.f32 %v1648_v62, %v4105_v63  ;;  %v1650_v60 = vpop.f32.mrb[9].mxu0  ;;  %v4390_v25 = vadd.f32 %v4250_v3, %v1973_v16 }
 0x235   : > { %2037 = vst [vmem:[%s4274_s9 + $0xc8] sm:$0xff] %v4385_v34  ;;  %v2089_v62 = vmul.f32 %v4283_v36, %v4283_v36 }
 0x236   : > { %v2115_v22 = vadd.f32 %v2114_v28, %v2084_v15  ;;  %v1874_v53 = vadd.f32 %v2645_v46, %v4259_v18  ;;  %2036 = vst [vmem:[%s4274_s9 + $0xc0] sm:$0xff] %v4390_v25  ;;  %v2378_v49 = vpop.f32.mrb[138].mxu1 }
 0x237   : > { %v1653_v59 = vpop.f32.mrb[10].mxu0  ;;  %v4398_v10 = vadd.f32 %v4276_v9, %v2378_v49  ;;  %v1983_v63 = vpop.f32.mrb[139].mxu1 }
 0x238   : > { %2016 = vst [vmem:[%s4274_s9 + $0x20] sm:$0xff] %v1874_v53  ;;  %v2047_v8 = vadd.f32 %v2046_v31, %v1874_v53  ;;  %v2085_v37 = vmul.f32 %v1874_v53, %v1874_v53  ;;  %v2646_v3 = vadd.f32 %v1653_v59, %v4108_v7  ;;  %v1655_v0 = vpop.f32.mrb[11].mxu0  ;;  %v4403_v51 = vadd.f32 %v4264_v47, %v1983_v63 }
 0x239   : > { %2039 = vst [vmem:[%s4274_s9 + $0xd8] sm:$0xff] %v4398_v10 }
 0x23a   : > { %v2116_v18 = vadd.f32 %v2115_v22, %v2085_v37  ;;  %v1879_v17 = vadd.f32 %v2646_v3, %v4255_v35  ;;  %2038 = vst [vmem:[%s4274_s9 + $0xd0] sm:$0xff] %v4403_v51  ;;  %v2381_v9 = vpop.f32.mrb[140].mxu1  ;;  %v2092_v22 = vmul.f32 %v4292_v58, %v4292_v58 }
 0x23b   : > { %v1658_v23 = vpop.f32.mrb[12].mxu0  ;;  %v4411_v29 = vadd.f32 %v4303_v45, %v2381_v9  ;;  %v1993_v7 = vpop.f32.mrb[141].mxu1 }
 0x23c   : > { %2017 = vst [vmem:[%s4274_s9 + $0x28] sm:$0xff] %v1879_v17  ;;  %v2048_v38 = vadd.f32 %v2047_v8, %v1879_v17  ;;  %v2086_v32 = vmul.f32 %v1879_v17, %v1879_v17  ;;  %v2647_v47 = vadd.f32 %v1658_v23, %v4111_v61  ;;  %v1660_v14 = vpop.f32.mrb[13].mxu0  ;;  %v4416_v56 = vadd.f32 %v4289_v41, %v1993_v7 }
 0x23d   : > { %2041 = vst [vmem:[%s4274_s9 + $0xe8] sm:$0xff] %v4411_v29 }
 0x23e   : > { %v2117_v35 = vadd.f32 %v2116_v18, %v2086_v32  ;;  %v1884_v57 = vadd.f32 %v2647_v47, %v4266_v48  ;;  %2040 = vst [vmem:[%s4274_s9 + $0xe0] sm:$0xff] %v4416_v56  ;;  %v2384_v45 = vpop.f32.mrb[142].mxu1 }
 0x23f   : > { %v1663_v44 = vpop.f32.mrb[14].mxu0  ;;  %v4424_v11 = vadd.f32 %v4331_v6, %v2384_v45  ;;  %v2003_v61 = vpop.f32.mrb[143].mxu1 }
 0x240   : > { %2018 = vst [vmem:[%s4274_s9 + $0x30] sm:$0xff] %v1884_v57  ;;  %v2049_v20 = vadd.f32 %v2048_v38, %v1884_v57  ;;  %v2087_v55 = vmul.f32 %v1884_v57, %v1884_v57  ;;  %v2648_v41 = vadd.f32 %v1663_v44, %v4114_v27  ;;  %v1665_v24 = vpop.f32.mrb[15].mxu0  ;;  %v4429_v28 = vadd.f32 %v4317_v54, %v2003_v61 }
 0x241   : > { %2043 = vst [vmem:[%s4274_s9 + $0xf8] sm:$0xff] %v4424_v11  ;;  %v2090_v54 = vmul.f32 %v4279_v26, %v4279_v26 }
 0x242   : > { %v2118_v48 = vadd.f32 %v2117_v35, %v2087_v55  ;;  %v1889_v13 = vadd.f32 %v2648_v41, %v4262_v50  ;;  %2042 = vst [vmem:[%s4274_s9 + $0xf0] sm:$0xff] %v4429_v28  ;;  %v2091_v50 = vmul.f32 %v4296_v30, %v4296_v30 }
 0x244   : > { %2019 = vst [vmem:[%s4274_s9 + $0x38] sm:$0xff] %v1889_v13  ;;  %v2050_v6 = vadd.f32 %v2049_v20, %v1889_v13  ;;  %v2088_v40 = vmul.f32 %v1889_v13, %v1889_v13 }
 0x246   : > { %v2051_v16 = vadd.f32 %v2050_v6, %v4283_v36  ;;  %v2119_v27 = vadd.f32 %v2118_v48, %v2088_v40  ;;  %v2093_v36 = vmul.f32 %v4310_v1, %v4310_v1 }
 0x248   : > { %v2052_v31 = vadd.f32 %v2051_v16, %v4279_v26  ;;  %v2120_v15 = vadd.f32 %v2119_v27, %v2089_v62  ;;  %v2094_v26 = vmul.f32 %v4306_v5, %v4306_v5 }
 0x24a   : > { %v2053_v46 = vadd.f32 %v2052_v31, %v4296_v30  ;;  %v2121_v60 = vadd.f32 %v2120_v15, %v2090_v54  ;;  %v2095_v30 = vmul.f32 %v4324_v43, %v4324_v43 }
 0x24c   : > { %v2054_v53 = vadd.f32 %v2053_v46, %v4292_v58  ;;  %v2122_v49 = vadd.f32 %v2121_v60, %v2091_v50  ;;  %v2096_v58 = vmul.f32 %v4320_v52, %v4320_v52  ;;  %v2111_v60 = vmul.f32 %v4429_v28, %v4429_v28 }
 0x24e   : > { %v2055_v59 = vadd.f32 %v2054_v53, %v4310_v1  ;;  %v2123_v63 = vadd.f32 %v2122_v49, %v2092_v22  ;;  %v2097_v1 = vmul.f32 %v4338_v39, %v4338_v39  ;;  %v2112_v22 = vmul.f32 %v4424_v11, %v4424_v11 }
 0x250   : > { %v2056_v8 = vadd.f32 %v2055_v59, %v4306_v5  ;;  %v2124_v37 = vadd.f32 %v2123_v63, %v2093_v36  ;;  %v2098_v5 = vmul.f32 %v4334_v19, %v4334_v19 }
 0x252   : > { %v2057_v3 = vadd.f32 %v2056_v8, %v4324_v43  ;;  %v2125_v0 = vadd.f32 %v2124_v37, %v2094_v26  ;;  %v2099_v43 = vmul.f32 %v4351_v42, %v4351_v42 }
 0x254   : > { %v2058_v18 = vadd.f32 %v2057_v3, %v4320_v52  ;;  %v2126_v17 = vadd.f32 %v2125_v0, %v2095_v30  ;;  %v2100_v52 = vmul.f32 %v4346_v4, %v4346_v4 }
 0x256   : > { %v2059_v9 = vadd.f32 %v2058_v18, %v4338_v39  ;;  %v2127_v23 = vadd.f32 %v2126_v17, %v2096_v58  ;;  %v2101_v39 = vmul.f32 %v4364_v21, %v4364_v21 }
 0x258   : > { %v2060_v7 = vadd.f32 %v2059_v9, %v4334_v19  ;;  %v2128_v38 = vadd.f32 %v2127_v23, %v2097_v1  ;;  %v2102_v19 = vmul.f32 %v4359_v2, %v4359_v2 }
 0x25a   : > { %v2129_v32 = vadd.f32 %v2128_v38, %v2098_v5  ;;  %v2061_v47 = vadd.f32 %v2060_v7, %v4351_v42  ;;  %v2103_v42 = vmul.f32 %v4377_v33, %v4377_v33 }
 0x25c   : > { %v2062_v14 = vadd.f32 %v2061_v47, %v4346_v4  ;;  %v2130_v35 = vadd.f32 %v2129_v32, %v2099_v43  ;;  %v2104_v4 = vmul.f32 %v4372_v12, %v4372_v12 }
 0x25e   : > { %v2063_v57 = vadd.f32 %v2062_v14, %v4364_v21  ;;  %v2131_v45 = vadd.f32 %v2130_v35, %v2100_v52  ;;  %v2105_v21 = vmul.f32 %v4390_v25, %v4390_v25 }
 0x260   : > { %v2064_v44 = vadd.f32 %v2063_v57, %v4359_v2  ;;  %v2132_v61 = vadd.f32 %v2131_v45, %v2101_v39  ;;  %v2106_v2 = vmul.f32 %v4385_v34, %v4385_v34 }
 0x262   : > { %v2065_v20 = vadd.f32 %v2064_v44, %v4377_v33  ;;  %v2133_v55 = vadd.f32 %v2132_v61, %v2102_v19  ;;  %v2107_v33 = vmul.f32 %v4403_v51, %v4403_v51 }
 0x264   : > { %v2066_v41 = vadd.f32 %v2065_v20, %v4372_v12  ;;  %v2134_v24 = vadd.f32 %v2133_v55, %v2103_v42  ;;  %v2108_v12 = vmul.f32 %v4398_v10, %v4398_v10 }
 0x266   : > { %v2067_v48 = vadd.f32 %v2066_v41, %v4390_v25  ;;  %v2135_v13 = vadd.f32 %v2134_v24, %v2104_v4  ;;  %v2109_v25 = vmul.f32 %v4416_v56, %v4416_v56 }
 0x268   : > { %v2068_v6 = vadd.f32 %v2067_v48, %v4385_v34  ;;  %v2136_v40 = vadd.f32 %v2135_v13, %v2105_v21  ;;  %v2110_v34 = vmul.f32 %v4411_v29, %v4411_v29 }
 0x26a   : > { %v2069_v62 = vadd.f32 %v2068_v6, %v4403_v51  ;;  %v2137_v16 = vadd.f32 %v2136_v40, %v2106_v2 }
 0x26c   : > { %v2070_v27 = vadd.f32 %v2069_v62, %v4398_v10  ;;  %v2138_v54 = vadd.f32 %v2137_v16, %v2107_v33 }
 0x26e   : > { %v2071_v31 = vadd.f32 %v2070_v27, %v4416_v56  ;;  %v2139_v15 = vadd.f32 %v2138_v54, %v2108_v12 }
 0x270   : > { %v2072_v50 = vadd.f32 %v2071_v31, %v4411_v29  ;;  %v2140_v46 = vadd.f32 %v2139_v15, %v2109_v25 }
 0x272   : > { %v2073_v51 = vadd.f32 %v2072_v50, %v4429_v28  ;;  %v2141_v10 = vadd.f32 %v2140_v46, %v2110_v34 }
 0x274   : > { %v2074_v53 = vadd.f32 %v2073_v51, %v4424_v11  ;;  %v2142_v56 = vadd.f32 %v2141_v10, %v2111_v60 }
 0x276   : > { %v2075_v49 = vrot.slane %v2074_v53, 4  ;;  %v2143_v36 = vadd.f32 %v2142_v56, %v2112_v22 }
 0x278   : > { %v2076_v59 = vadd.f32 %v2075_v49, %v2074_v53  ;;  %v2144_v63 = vrot.slane %v2143_v36, 4 }
 0x27a   : > { %v2077_v26 = vrot.slane %v2076_v59, 2  ;;  %v2145_v29 = vadd.f32 %v2144_v63, %v2143_v36 }
 0x27c   : > { %v2078_v8 = vadd.f32 %v2077_v26, %v2076_v59  ;;  %v2146_v37 = vrot.slane %v2145_v29, 2 }
 0x27e   : > { %v2079_v30 = vrot.slane %v2078_v8, 1  ;;  %v2147_v3 = vadd.f32 %v2146_v37, %v2145_v29 }
 0x280   : > { %v2148_v0 = vrot.slane %v2147_v3, 1  ;;  %v2080_v28 = vadd.f32 %v2079_v30, %v2078_v8 }
 0x282   : > { %v2149_v58 = vadd.f32 %v2148_v0, %v2147_v3 }
 0x284   : > { %v2151_v11 = vsel %vm2150_vm0, %v2080_v28, %v2149_v58 }
 0x285   : > { %v2153_v18 = vsel %vm2152_vm1, %v2151_v11, 0.0 }
 0x286   : > { %2154 = vst [vmem:[%s235_s13] sm:$0xff] %v2153_v18 }
 0x287 PF: > { %s16_s18 = sadd.s32 1, %s2816_s18  }
 0x288   : > { %p13_p4 = scmp.ge.s32.totalorder %s16_s18, 4  }
 0x28a   :  { %15 = sbr.rel (!%p13_p4) target bundleno = 1 (0x1), region = 81 }

</bundles_post_ra>
